<compile_context>
chip_gen: v6e
topology: v6e:2x2x1
jax: 0.10.0
libtpu: 0.0.40
codegen_flags: <defaults>
</compile_context>

<pallas_src>
import math
from functools import partial

import jax
import jax.numpy as jnp
from jax import lax
from jax.experimental import pallas as pl
from jax.experimental.pallas import tpu as pltpu


# ----------------------------- in-kernel helpers -----------------------------

def _gelu(x):
    # TODO(synk): PyTorch F.gelu defaults to the exact erf form; the tanh
    # approximation is used here (Mosaic-safe elementwise ops only).
    c = math.sqrt(2.0 / math.pi)
    return 0.5 * x * (1.0 + jnp.tanh(c * (x + 0.044715 * x * x * x)))


def _softplus(x):
    return jnp.maximum(x, 0.0) + jnp.log(1.0 + jnp.exp(-jnp.abs(x)))


def _silu(x):
    return x * jax.nn.sigmoid(x)


def _shift_rows(x, s, rows, cols):
    """Shift rows of x down by s (zero fill); s is a static Python int."""
    if s == 0:
        return x
    z = jnp.zeros((abs(s), cols), x.dtype)
    if s > 0:
        return jnp.concatenate([z, x[:rows - s, :]], axis=0)
    return jnp.concatenate([x[-s:, :], z], axis=0)


def _tile_m(m, target=256):
    """Largest row tile <= target dividing m (falls back to the full dim)."""
    if m <= target:
        return m
    for t in range(target, 7, -8):
        if m % t == 0:
            return t
    return m


# ------------------- tiled linear (bf16 operands, f32 acc) --------------------

def _linear_kernel(x_ref, w_ref, b_ref, o_ref, *, act):
    y = jnp.dot(x_ref[...], w_ref[...], preferred_element_type=jnp.float32)
    y = y + b_ref[...]
    if act == "gelu":
        y = _gelu(y)
    elif act == "sigmoid":
        y = jax.nn.sigmoid(y)
    elif act == "silu":
        y = _silu(y)
    o_ref[...] = y


def linear(x, w, b=None, act="none"):
    """x: (M, K) @ w: (K, N) + b  (w is the transposed torch Linear weight)."""
    M, K = x.shape
    N = w.shape[1]
    if b is None:
        b = jnp.zeros((N,), jnp.float32)
    tm = _tile_m(M)
    return pl.pallas_call(
        partial(_linear_kernel, act=act),
        out_shape=jax.ShapeDtypeStruct((M, N), jnp.float32),
        grid=(M // tm,),
        in_specs=[pl.BlockSpec((tm, K), lambda i: (i, 0)),
                  pl.BlockSpec((K, N), lambda i: (0, 0)),
                  pl.BlockSpec((1, N), lambda i: (0, 0))],
        out_specs=pl.BlockSpec((tm, N), lambda i: (i, 0)),
        compiler_params=pltpu.CompilerParams(
            dimension_semantics=("parallel",)),
    )(x.astype(jnp.bfloat16), w.astype(jnp.bfloat16),
      b.reshape(1, N).astype(jnp.float32))


# ----------------------- fused 2-layer MLP (LGP proj) -------------------------

def _mlp2_kernel(x_ref, w1_ref, b1_ref, w2_ref, b2_ref, o_ref):
    h = jnp.dot(x_ref[...], w1_ref[...],
                preferred_element_type=jnp.float32) + b1_ref[...]
    h = _gelu(h)
    o_ref[...] = jnp.dot(h.astype(jnp.bfloat16), w2_ref[...],
                         preferred_element_type=jnp.float32) + b2_ref[...]


def mlp2(x, w1, b1, w2, b2):
    M, K = x.shape
    H = w1.shape[1]
    N = w2.shape[1]
    tm = _tile_m(M)
    return pl.pallas_call(
        _mlp2_kernel,
        out_shape=jax.ShapeDtypeStruct((M, N), jnp.float32),
        grid=(M // tm,),
        in_specs=[pl.BlockSpec((tm, K), lambda i: (i, 0)),
                  pl.BlockSpec((K, H), lambda i: (0, 0)),
                  pl.BlockSpec((1, H), lambda i: (0, 0)),
                  pl.BlockSpec((H, N), lambda i: (0, 0)),
                  pl.BlockSpec((1, N), lambda i: (0, 0))],
        out_specs=pl.BlockSpec((tm, N), lambda i: (i, 0)),
        compiler_params=pltpu.CompilerParams(
            dimension_semantics=("parallel",)),
    )(x.astype(jnp.bfloat16), w1.astype(jnp.bfloat16),
      b1.reshape(1, H).astype(jnp.float32),
      w2.astype(jnp.bfloat16), b2.reshape(1, N).astype(jnp.float32))


# ------------------------------ layernorm kernel ------------------------------

def _ln_kernel(x_ref, w_ref, b_ref, o_ref, *, eps):
    x = x_ref[...]
    mu = jnp.mean(x, axis=-1, keepdims=True)
    xc = x - mu
    var = jnp.mean(xc * xc, axis=-1, keepdims=True)
    o_ref[...] = xc * lax.rsqrt(var + eps) * w_ref[...] + b_ref[...]


def layernorm(x, w=None, b=None, eps=1e-5):
    shape = x.shape
    C = shape[-1]
    x2 = x.reshape(-1, C).astype(jnp.float32)
    M = x2.shape[0]
    if w is None:
        w = jnp.ones((C,), jnp.float32)
    if b is None:
        b = jnp.zeros((C,), jnp.float32)
    tm = _tile_m(M, 512)
    out = pl.pallas_call(
        partial(_ln_kernel, eps=eps),
        out_shape=jax.ShapeDtypeStruct((M, C), jnp.float32),
        grid=(M // tm,),
        in_specs=[pl.BlockSpec((tm, C), lambda i: (i, 0)),
                  pl.BlockSpec((1, C), lambda i: (0, 0)),
                  pl.BlockSpec((1, C), lambda i: (0, 0))],
        out_specs=pl.BlockSpec((tm, C), lambda i: (i, 0)),
        compiler_params=pltpu.CompilerParams(
            dimension_semantics=("parallel",)),
    )(x2, w.reshape(1, C).astype(jnp.float32),
      b.reshape(1, C).astype(jnp.float32))
    return out.reshape(shape)


# --------------- fused Mamba inner kernel (conv + proj + scan) ----------------
# One grid step per (batch, direction); the whole (L, din) slab stays in VMEM:
#   x -> causal depthwise conv + SiLU -> u
#   u @ [W_dt_fused | W_B | W_C]  (bf16 MXU, f32 acc)
#   sequential selective scan over t (lax.fori_loop, h kept in registers)
#   y = (scan + D*u) * SiLU(z)

def _mamba_inner_kernel(x_ref, z_ref, cw_ref, cb_ref, wdt_ref, wb_ref, wc_ref,
                        at_ref, d_ref, dtb_ref, o_ref,
                        u_sc, dl_sc, b_sc, c_sc, *, L, K, din, dstate):
    pad = K - 1

    # causal depthwise conv (cross-correlation) + SiLU
    x = x_ref[...]
    acc = jnp.broadcast_to(cb_ref[...], (L, din))
    for j in range(K):                              # static unrolled taps
        acc = acc + cw_ref[j:j + 1, :] * _shift_rows(x, pad - j, L, din)
    u = _silu(acc)
    u_sc[...] = u

    # fused x_proj / dt_proj projections (bf16 operands, f32 accumulation)
    ub = u.astype(jnp.bfloat16)
    dt = jnp.dot(ub, wdt_ref[...], preferred_element_type=jnp.float32)
    dl_sc[...] = _softplus(dt + dtb_ref[...])                   # delta (L, din)
    b_sc[...] = jnp.dot(ub, wb_ref[...], preferred_element_type=jnp.float32)
    c_sc[...] = jnp.dot(ub, wc_ref[...], preferred_element_type=jnp.float32)

    # sequential selective scan; h: (dstate, din) carried in registers
    at = at_ref[...]                                            # -exp(A_log)^T
    rows = lax.broadcasted_iota(jnp.int32, (dstate, dstate), 0)
    cols = lax.broadcasted_iota(jnp.int32, (dstate, dstate), 1)
    eye = (rows == cols).astype(jnp.float32)

    def step(t, h):
        delta_t = dl_sc[pl.ds(t, 1), :]                         # (1, din)
        u_t = u_sc[pl.ds(t, 1), :]                              # (1, din)
        b_t = b_sc[pl.ds(t, 1), :]                              # (1, dstate)
        c_t = c_sc[pl.ds(t, 1), :]                              # (1, dstate)
        dA = jnp.exp(delta_t * at)                              # (dstate, din)
        du = jnp.broadcast_to(delta_t * u_t, (dstate, din))
        # outer product b_t (x) du without any transpose: diag(b_t) @ du
        dBu = jnp.dot(eye * b_t, du, preferred_element_type=jnp.float32)
        h = dA * h + dBu
        y_t = jnp.dot(c_t, h, preferred_element_type=jnp.float32)   # (1, din)
        o_ref[pl.ds(t, 1), :] = y_t
        return h

    lax.fori_loop(0, L, step, jnp.zeros((dstate, din), jnp.float32))

    # skip connection (D*u) and SiLU(z) gate, vectorized over the sequence
    o_ref[...] = (o_ref[...] + d_ref[...] * u_sc[...]) * _silu(z_ref[...])


def _mamba_inner(x2, z2, conv_w, conv_b, wdt, wb, wc, at, D, dt_bias):
    G, L, din = x2.shape
    dstate = wb.shape[1]
    K = conv_w.shape[0]
    return pl.pallas_call(
        partial(_mamba_inner_kernel, L=L, K=K, din=din, dstate=dstate),
        out_shape=jax.ShapeDtypeStruct((G, L, din), jnp.float32),
        grid=(G,),
        in_specs=[pl.BlockSpec((None, L, din), lambda g: (g, 0, 0)),
                  pl.BlockSpec((None, L, din), lambda g: (g, 0, 0)),
                  pl.BlockSpec((K, din), lambda g: (0, 0)),
                  pl.BlockSpec((1, din), lambda g: (0, 0)),
                  pl.BlockSpec((din, din), lambda g: (0, 0)),
                  pl.BlockSpec((din, dstate), lambda g: (0, 0)),
                  pl.BlockSpec((din, dstate), lambda g: (0, 0)),
                  pl.BlockSpec((dstate, din), lambda g: (0, 0)),
                  pl.BlockSpec((1, din), lambda g: (0, 0)),
                  pl.BlockSpec((1, din), lambda g: (0, 0))],
        out_specs=pl.BlockSpec((None, L, din), lambda g: (g, 0, 0)),
        scratch_shapes=[pltpu.VMEM((L, din), jnp.float32),      # u
                        pltpu.VMEM((L, din), jnp.float32),      # delta
                        pltpu.VMEM((L, dstate), jnp.float32),   # B
                        pltpu.VMEM((L, dstate), jnp.float32)],  # C
        compiler_params=pltpu.CompilerParams(
            dimension_semantics=("parallel",)),
    )(x2.astype(jnp.float32), z2.astype(jnp.float32),
      conv_w.astype(jnp.float32), conv_b.reshape(1, din).astype(jnp.float32),
      wdt.astype(jnp.bfloat16), wb.astype(jnp.bfloat16),
      wc.astype(jnp.bfloat16), at.astype(jnp.float32),
      D.reshape(1, din).astype(jnp.float32),
      dt_bias.reshape(1, din).astype(jnp.float32))


def mamba_bidir(feat, p):
    """Bidirectional Mamba (shared weights, as in EmbaMambaLayer)."""
    B, L, dm = feat.shape
    din = p["conv_w"].shape[1]
    dstate = p["A_log"].shape[1]
    dt_rank = p["dt_w"].shape[0]

    # in_proj once (pointwise over L); flip its output for the reverse branch
    xz = linear(feat.reshape(-1, dm), p["in_proj_w"]).reshape(B, L, 2 * din)
    xs, z = xz[..., :din], xz[..., din:]
    x2 = jnp.concatenate([xs, jnp.flip(xs, axis=1)], axis=0)    # (2B, L, din)
    z2 = jnp.concatenate([z, jnp.flip(z, axis=1)], axis=0)

    # fold the low-rank dt projection into one (din, din) weight
    wdt = jnp.dot(p["x_proj_w"][:, :dt_rank], p["dt_w"])
    wb = p["x_proj_w"][:, dt_rank:dt_rank + dstate]
    wc = p["x_proj_w"][:, dt_rank + dstate:]
    at = -jnp.exp(p["A_log"]).T                                 # (dstate, din)

    y2 = _mamba_inner(x2, z2, p["conv_w"], p["conv_b"], wdt, wb, wc,
                      at, p["D"], p["dt_b"])

    # single out_proj over both directions (2*B*L rows)
    out = linear(y2.reshape(-1, din), p["out_proj_w"]).reshape(2 * B, L, dm)
    return out[:B], jnp.flip(out[B:], axis=1)


# ------------------------- fused CoFE-SE kernel (per batch) -------------------

def _cofe_kernel(x_ref, dww_ref, dwb_ref, w1_ref, b1_ref, w2_ref, b2_ref,
                 wm_ref, bm_ref, o_ref, *, N, C, K):
    pad = (K - 1) // 2
    x = x_ref[...]

    # depthwise conv ('same' padding) + GELU
    a = jnp.broadcast_to(dwb_ref[...], (N, C))
    for j in range(K):
        a = a + dww_ref[j:j + 1, :] * _shift_rows(x, pad - j, N, C)
    a = _gelu(a)

    # squeeze-excite gate from the per-channel mean
    m = jnp.mean(x, axis=0, keepdims=True)                      # (1, C)
    g = _gelu(jnp.dot(m, w1_ref[...],
                      preferred_element_type=jnp.float32) + b1_ref[...])
    g = jax.nn.sigmoid(jnp.dot(g, w2_ref[...],
                               preferred_element_type=jnp.float32) + b2_ref[...])

    # softmax over the N points of the channel-mean scores
    s = jnp.mean(a + x * g, axis=-1, keepdims=True)             # (N, 1)
    s = s - jnp.max(s, axis=0, keepdims=True)
    e = jnp.exp(s)
    w = e / jnp.sum(e, axis=0, keepdims=True)

    # NOTE: CoFE_SE defines a GroupNorm that is never used in forward().
    o_ref[...] = jnp.dot(x * w, wm_ref[...],
                         preferred_element_type=jnp.float32) + bm_ref[...]


def cofe_forward(x, p):
    B, N, C = x.shape
    K = p["dw_w"].shape[0]
    H = p["se1_w"].shape[1]
    return pl.pallas_call(
        partial(_cofe_kernel, N=N, C=C, K=K),
        out_shape=jax.ShapeDtypeStruct((B, N, C), jnp.float32),
        grid=(B,),
        in_specs=[pl.BlockSpec((None, N, C), lambda b: (b, 0, 0)),
                  pl.BlockSpec((K, C), lambda b: (0, 0)),
                  pl.BlockSpec((1, C), lambda b: (0, 0)),
                  pl.BlockSpec((C, H), lambda b: (0, 0)),
                  pl.BlockSpec((1, H), lambda b: (0, 0)),
                  pl.BlockSpec((H, C), lambda b: (0, 0)),
                  pl.BlockSpec((1, C), lambda b: (0, 0)),
                  pl.BlockSpec((C, C), lambda b: (0, 0)),
                  pl.BlockSpec((1, C), lambda b: (0, 0))],
        out_specs=pl.BlockSpec((None, N, C), lambda b: (b, 0, 0)),
        compiler_params=pltpu.CompilerParams(
            dimension_semantics=("parallel",)),
    )(x.astype(jnp.float32),
      p["dw_w"].astype(jnp.float32),
      p["dw_b"].reshape(1, C).astype(jnp.float32),
      p["se1_w"].astype(jnp.float32),
      p["se1_b"].reshape(1, H).astype(jnp.float32),
      p["se2_w"].astype(jnp.float32),
      p["se2_b"].reshape(1, C).astype(jnp.float32),
      p["mix_w"].astype(jnp.float32),
      p["mix_b"].reshape(1, C).astype(jnp.float32))


# ------------------------------------ LGP -------------------------------------

def lgp_forward(xyz, feat, p, k=16):
    # k = round(clamp(exp(logk), 4, 32)); with logk = log(16) this is static 16.
    # TODO(synk): the k-NN search (cdist + top_k + gather) stays in XLA; it
    # should become a tiled Pallas kernel at realistic point-cloud sizes.
    B, N, C = feat.shape
    diff = xyz[:, :, None, :] - xyz[:, None, :, :]
    d = jnp.sqrt(jnp.maximum(jnp.sum(diff * diff, -1), 0.0))
    _, idx = jax.lax.top_k(-d, k)                                # k nearest
    neigh_f = jax.vmap(lambda f, i: f[i])(feat, idx)             # (B, N, k, C)
    neigh_x = jax.vmap(lambda xx, i: xx[i])(xyz, idx)            # (B, N, k, 3)
    delta_f = layernorm(neigh_f - feat[:, :, None, :])           # no affine
    offset = neigh_x - jnp.mean(neigh_x, axis=2, keepdims=True)
    sigma = jnp.std(offset, axis=2, keepdims=True, ddof=1) + 1e-6
    dist = jnp.linalg.norm(offset / sigma, axis=-1, keepdims=True)
    w = jnp.exp(-0.5 * dist)
    fused = jnp.mean(jnp.concatenate([delta_f * w, dist], -1), axis=2)
    out = mlp2(fused.reshape(-1, C + 1), p["w1"], p["b1"], p["w2"], p["b2"])
    return out.reshape(B, N, C)


# ------------------------------- model modules --------------------------------

def emba_layer_forward(feat, xyz, p):
    feat = feat + lgp_forward(xyz, feat, p["lgp"])
    y_fwd, y_rev = mamba_bidir(feat, p["mamba"])
    feat = feat + y_fwd + y_rev + y_fwd * y_rev
    feat = feat + cofe_forward(feat, p["cofe"])
    return feat


def mixer_model_forward(input_ids, pos, params, xyz=None):
    h = input_ids + pos
    if xyz is None:
        xyz = jnp.zeros((h.shape[0], h.shape[1], 3), h.dtype)
    for lp in params["layers"]:
        h = h + emba_layer_forward(layernorm(h, lp["norm_w"], lp["norm_b"]),
                                   xyz, lp)
        # drop_out = 0.0 -> Identity
    return layernorm(h, params["norm_f_w"], params["norm_f_b"])


# ----------------------------- parameter creation ------------------------------

def init_params(key, d_model, n_layer, d_state=16, d_conv=4, expand=2):
    din = expand * d_model
    dt_rank = math.ceil(d_model / 16)
    cnt = [0]

    def normal(shape, scale=0.02):
        cnt[0] += 1
        return scale * jax.random.normal(jax.random.fold_in(key, cnt[0]), shape,
                                         dtype=jnp.float32)

    layers = []
    for _ in range(n_layer):
        layers.append({
            "norm_w": jnp.ones((d_model,), jnp.float32),
            "norm_b": jnp.zeros((d_model,), jnp.float32),
            "lgp": {
                "w1": normal((d_model + 1, d_model)),
                "b1": jnp.zeros((d_model,), jnp.float32),
                "w2": normal((d_model, d_model)),
                "b2": jnp.zeros((d_model,), jnp.float32),
            },
            "mamba": {
                "in_proj_w": normal((d_model, 2 * din)),
                "conv_w": normal((d_conv, din)),
                "conv_b": jnp.zeros((din,), jnp.float32),
                "x_proj_w": normal((din, dt_rank + 2 * d_state)),
                "dt_w": normal((dt_rank, din), scale=dt_rank ** -0.5),
                "dt_b": jnp.full((din,), math.log(math.expm1(0.01)), jnp.float32),
                "A_log": jnp.log(jnp.broadcast_to(
                    jnp.arange(1, d_state + 1, dtype=jnp.float32),
                    (din, d_state))),
                "D": jnp.ones((din,), jnp.float32),
                # rescale_prenorm_residual on out_proj.weight (cf. _init_weights)
                "out_proj_w": normal((din, d_model)) / math.sqrt(n_layer),
            },
            "cofe": {
                "dw_w": normal((3, d_model)),
                "dw_b": jnp.zeros((d_model,), jnp.float32),
                "se1_w": normal((d_model, d_model // 4)),
                "se1_b": jnp.zeros((d_model // 4,), jnp.float32),
                "se2_w": normal((d_model // 4, d_model)),
                "se2_b": jnp.zeros((d_model,), jnp.float32),
                "mix_w": normal((d_model, d_model)),
                "mix_b": jnp.zeros((d_model,), jnp.float32),
            },
        })
    return {"layers": layers,
            "norm_f_w": jnp.ones((d_model,), jnp.float32),
            "norm_f_b": jnp.zeros((d_model,), jnp.float32)}


# ------------------------------------ main -------------------------------------

if __name__ == "__main__":
    d_model, n_layer = 32, 2
    B, N = 2, 32            # N >= k (=16) required by LGP's topk

    key = jax.random.PRNGKey(0)
    params = init_params(jax.random.fold_in(key, 1), d_model, n_layer)
    k1, k2, k3 = jax.random.split(jax.random.fold_in(key, 2), 3)
    input_ids = jax.random.normal(k1, (B, N, d_model), jnp.float32)
    pos = jax.random.normal(k2, (B, N, d_model), jnp.float32)
    xyz = jax.random.normal(k3, (B, N, 3), jnp.float32)

    fwd = jax.jit(mixer_model_forward)
    out = jax.block_until_ready(fwd(input_ids, pos, params, xyz))

    assert out.shape == (B, N, d_model)
    assert bool(jnp.all(jnp.isfinite(out)))
    print("KERNEL_OK")
</pallas_src>

<mosaic_0001>
module attributes {stable_mosaic.version = 11 : i64} {
  func.func @_ln_kernel(%arg0: i32, %arg1: memref<64x32xf32, #tpu.memory_space<vmem>>, %arg2: memref<1x32xf32, #tpu.memory_space<vmem>>, %arg3: memref<1x32xf32, #tpu.memory_space<vmem>>, %arg4: memref<64x32xf32, #tpu.memory_space<vmem>>) attributes {dimension_semantics = [#tpu.dimension_semantics<parallel>], iteration_bounds = array<i64: 1>, scalar_prefetch = 0 : i64, scratch_operands = 0 : i64, tpu.core_type = #tpu.core_type<tc>, window_params = [{transform_indices = @transform_0, window_bounds = array<i64: 64, 32>}, {pipeline_mode = #tpu.pipeline_mode<synchronous>, transform_indices = @transform_1, window_bounds = array<i64: 1, 32>}, {pipeline_mode = #tpu.pipeline_mode<synchronous>, transform_indices = @transform_2, window_bounds = array<i64: 1, 32>}, {transform_indices = @transform_3, window_bounds = array<i64: 64, 32>}]} {
    %c0 = arith.constant 0 : index
    %c0_0 = arith.constant 0 : index
    %0 = vector.load %arg1[%c0, %c0_0] : memref<64x32xf32, #tpu.memory_space<vmem>>, vector<64x32xf32>
    %cst = arith.constant dense<0.000000e+00> : vector<64xf32>
    %1 = vector.multi_reduction <add>, %0, %cst [1] : vector<64x32xf32> to vector<64xf32>
    %2 = vector.shape_cast %1 : vector<64xf32> to vector<64x1xf32>
    %cst_1 = arith.constant 3.200000e+01 : f32
    %3 = vector.broadcast %cst_1 : f32 to vector<64x1xf32>
    %4 = arith.divf %2, %3 : vector<64x1xf32>
    %5 = vector.broadcast %4 : vector<64x1xf32> to vector<64x32xf32>
    %6 = arith.subf %0, %5 : vector<64x32xf32>
    %7 = arith.mulf %6, %6 : vector<64x32xf32>
    %cst_2 = arith.constant dense<0.000000e+00> : vector<64xf32>
    %8 = vector.multi_reduction <add>, %7, %cst_2 [1] : vector<64x32xf32> to vector<64xf32>
    %9 = vector.shape_cast %8 : vector<64xf32> to vector<64x1xf32>
    %cst_3 = arith.constant 3.200000e+01 : f32
    %10 = vector.broadcast %cst_3 : f32 to vector<64x1xf32>
    %11 = arith.divf %9, %10 : vector<64x1xf32>
    %cst_4 = arith.constant 9.99999974E-6 : f32
    %12 = vector.broadcast %cst_4 : f32 to vector<64x1xf32>
    %13 = arith.addf %11, %12 : vector<64x1xf32>
    %14 = math.rsqrt %13 : vector<64x1xf32>
    %15 = vector.broadcast %14 : vector<64x1xf32> to vector<64x32xf32>
    %16 = arith.mulf %6, %15 : vector<64x32xf32>
    %c0_5 = arith.constant 0 : index
    %c0_6 = arith.constant 0 : index
    %17 = vector.load %arg2[%c0_5, %c0_6] : memref<1x32xf32, #tpu.memory_space<vmem>>, vector<1x32xf32>
    %18 = vector.broadcast %17 : vector<1x32xf32> to vector<64x32xf32>
    %19 = arith.mulf %16, %18 : vector<64x32xf32>
    %c0_7 = arith.constant 0 : index
    %c0_8 = arith.constant 0 : index
    %20 = vector.load %arg3[%c0_7, %c0_8] : memref<1x32xf32, #tpu.memory_space<vmem>>, vector<1x32xf32>
    %21 = vector.broadcast %20 : vector<1x32xf32> to vector<64x32xf32>
    %22 = arith.addf %19, %21 : vector<64x32xf32>
    %c0_9 = arith.constant 0 : index
    %c0_10 = arith.constant 0 : index
    %23 = vector.load %arg4[%c0_9, %c0_10] : memref<64x32xf32, #tpu.memory_space<vmem>>, vector<64x32xf32>
    tpu.vector_store %arg4[%c0_9, %c0_10], %22 {strides = array<i32>} : memref<64x32xf32, #tpu.memory_space<vmem>>, vector<64x32xf32>,
    return
  }
  func.func @transform_0(%arg0: i32) -> (i32, i32) {
    %c0_i32 = arith.constant 0 : i32
    %c0_i32_0 = arith.constant 0 : i32
    return %arg0, %c0_i32 : i32, i32
  }
  func.func @transform_1(%arg0: i32) -> (i32, i32) {
    %c0_i32 = arith.constant 0 : i32
    %c0_i32_0 = arith.constant 0 : i32
    %c0_i32_1 = arith.constant 0 : i32
    return %c0_i32, %c0_i32_0 : i32, i32
  }
  func.func @transform_2(%arg0: i32) -> (i32, i32) {
    %c0_i32 = arith.constant 0 : i32
    %c0_i32_0 = arith.constant 0 : i32
    %c0_i32_1 = arith.constant 0 : i32
    return %c0_i32, %c0_i32_0 : i32, i32
  }
  func.func @transform_3(%arg0: i32) -> (i32, i32) {
    %c0_i32 = arith.constant 0 : i32
    %c0_i32_0 = arith.constant 0 : i32
    return %arg0, %c0_i32 : i32, i32
  }
}

module attributes {stable_mosaic.version = 11 : i64} {
  func.func @_ln_kernel(%arg0: i32, %arg1: memref<512x32xf32, #tpu.memory_space<vmem>>, %arg2: memref<1x32xf32, #tpu.memory_space<vmem>>, %arg3: memref<1x32xf32, #tpu.memory_space<vmem>>, %arg4: memref<512x32xf32, #tpu.memory_space<vmem>>) attributes {dimension_semantics = [#tpu.dimension_semantics<parallel>], iteration_bounds = array<i64: 2>, scalar_prefetch = 0 : i64, scratch_operands = 0 : i64, tpu.core_type = #tpu.core_type<tc>, window_params = [{transform_indices = @transform_0, window_bounds = array<i64: 512, 32>}, {pipeline_mode = #tpu.pipeline_mode<synchronous>, transform_indices = @transform_1, window_bounds = array<i64: 1, 32>}, {pipeline_mode = #tpu.pipeline_mode<synchronous>, transform_indices = @transform_2, window_bounds = array<i64: 1, 32>}, {transform_indices = @transform_3, window_bounds = array<i64: 512, 32>}]} {
    %c0 = arith.constant 0 : index
    %c0_0 = arith.constant 0 : index
    %0 = vector.load %arg1[%c0, %c0_0] : memref<512x32xf32, #tpu.memory_space<vmem>>, vector<512x32xf32>
    %cst = arith.constant dense<0.000000e+00> : vector<512xf32>
    %1 = vector.multi_reduction <add>, %0, %cst [1] : vector<512x32xf32> to vector<512xf32>
    %2 = vector.shape_cast %1 : vector<512xf32> to vector<512x1xf32>
    %cst_1 = arith.constant 3.200000e+01 : f32
    %3 = vector.broadcast %cst_1 : f32 to vector<512x1xf32>
    %4 = arith.divf %2, %3 : vector<512x1xf32>
    %5 = vector.broadcast %4 : vector<512x1xf32> to vector<512x32xf32>
    %6 = arith.subf %0, %5 : vector<512x32xf32>
    %7 = arith.mulf %6, %6 : vector<512x32xf32>
    %cst_2 = arith.constant dense<0.000000e+00> : vector<512xf32>
    %8 = vector.multi_reduction <add>, %7, %cst_2 [1] : vector<512x32xf32> to vector<512xf32>
    %9 = vector.shape_cast %8 : vector<512xf32> to vector<512x1xf32>
    %cst_3 = arith.constant 3.200000e+01 : f32
    %10 = vector.broadcast %cst_3 : f32 to vector<512x1xf32>
    %11 = arith.divf %9, %10 : vector<512x1xf32>
    %cst_4 = arith.constant 9.99999974E-6 : f32
    %12 = vector.broadcast %cst_4 : f32 to vector<512x1xf32>
    %13 = arith.addf %11, %12 : vector<512x1xf32>
    %14 = math.rsqrt %13 : vector<512x1xf32>
    %15 = vector.broadcast %14 : vector<512x1xf32> to vector<512x32xf32>
    %16 = arith.mulf %6, %15 : vector<512x32xf32>
    %c0_5 = arith.constant 0 : index
    %c0_6 = arith.constant 0 : index
    %17 = vector.load %arg2[%c0_5, %c0_6] : memref<1x32xf32, #tpu.memory_space<vmem>>, vector<1x32xf32>
    %18 = vector.broadcast %17 : vector<1x32xf32> to vector<512x32xf32>
    %19 = arith.mulf %16, %18 : vector<512x32xf32>
    %c0_7 = arith.constant 0 : index
    %c0_8 = arith.constant 0 : index
    %20 = vector.load %arg3[%c0_7, %c0_8] : memref<1x32xf32, #tpu.memory_space<vmem>>, vector<1x32xf32>
    %21 = vector.broadcast %20 : vector<1x32xf32> to vector<512x32xf32>
    %22 = arith.addf %19, %21 : vector<512x32xf32>
    %c0_9 = arith.constant 0 : index
    %c0_10 = arith.constant 0 : index
    %23 = vector.load %arg4[%c0_9, %c0_10] : memref<512x32xf32, #tpu.memory_space<vmem>>, vector<512x32xf32>
    tpu.vector_store %arg4[%c0_9, %c0_10], %22 {strides = array<i32>} : memref<512x32xf32, #tpu.memory_space<vmem>>, vector<512x32xf32>,
    return
  }
  func.func @transform_0(%arg0: i32) -> (i32, i32) {
    %c0_i32 = arith.constant 0 : i32
    %c0_i32_0 = arith.constant 0 : i32
    return %arg0, %c0_i32 : i32, i32
  }
  func.func @transform_1(%arg0: i32) -> (i32, i32) {
    %c0_i32 = arith.constant 0 : i32
    %c0_i32_0 = arith.constant 0 : i32
    %c0_i32_1 = arith.constant 0 : i32
    return %c0_i32, %c0_i32_0 : i32, i32
  }
  func.func @transform_2(%arg0: i32) -> (i32, i32) {
    %c0_i32 = arith.constant 0 : i32
    %c0_i32_0 = arith.constant 0 : i32
    %c0_i32_1 = arith.constant 0 : i32
    return %c0_i32, %c0_i32_0 : i32, i32
  }
  func.func @transform_3(%arg0: i32) -> (i32, i32) {
    %c0_i32 = arith.constant 0 : i32
    %c0_i32_0 = arith.constant 0 : i32
    return %arg0, %c0_i32 : i32, i32
  }
}

module attributes {stable_mosaic.version = 11 : i64} {
  func.func @_mlp2_kernel(%arg0: i32, %arg1: memref<64x33xbf16, #tpu.memory_space<vmem>>, %arg2: memref<33x32xbf16, #tpu.memory_space<vmem>>, %arg3: memref<1x32xf32, #tpu.memory_space<vmem>>, %arg4: memref<32x32xbf16, #tpu.memory_space<vmem>>, %arg5: memref<1x32xf32, #tpu.memory_space<vmem>>, %arg6: memref<64x32xf32, #tpu.memory_space<vmem>>) attributes {dimension_semantics = [#tpu.dimension_semantics<parallel>], iteration_bounds = array<i64: 1>, scalar_prefetch = 0 : i64, scratch_operands = 0 : i64, tpu.core_type = #tpu.core_type<tc>, window_params = [{transform_indices = @transform_0, window_bounds = array<i64: 64, 33>}, {pipeline_mode = #tpu.pipeline_mode<synchronous>, transform_indices = @transform_1, window_bounds = array<i64: 33, 32>}, {pipeline_mode = #tpu.pipeline_mode<synchronous>, transform_indices = @transform_2, window_bounds = array<i64: 1, 32>}, {pipeline_mode = #tpu.pipeline_mode<synchronous>, transform_indices = @transform_3, window_bounds = array<i64: 32, 32>}, {pipeline_mode = #tpu.pipeline_mode<synchronous>, transform_indices = @transform_4, window_bounds = array<i64: 1, 32>}, {transform_indices = @transform_5, window_bounds = array<i64: 64, 32>}]} {
    %c0 = arith.constant 0 : index
    %c0_0 = arith.constant 0 : index
    %0 = vector.load %arg1[%c0, %c0_0] : memref<64x33xbf16, #tpu.memory_space<vmem>>, vector<64x33xbf16>
    %c0_1 = arith.constant 0 : index
    %c0_2 = arith.constant 0 : index
    %1 = vector.load %arg2[%c0_1, %c0_2] : memref<33x32xbf16, #tpu.memory_space<vmem>>, vector<33x32xbf16>
    %cst = arith.constant dense<0.000000e+00> : vector<64x32xf32>
    %2 = tpu.matmul %0, %1, %cst {dimension_numbers = #tpu.dot_dimension_numbers<[1], [0], [0], [1], [0, 0, 1, 1], [], []>} : vector<64x33xbf16>, vector<33x32xbf16>, vector<64x32xf32> -> vector<64x32xf32>
    %c0_3 = arith.constant 0 : index
    %c0_4 = arith.constant 0 : index
    %3 = vector.load %arg3[%c0_3, %c0_4] : memref<1x32xf32, #tpu.memory_space<vmem>>, vector<1x32xf32>
    %4 = vector.broadcast %3 : vector<1x32xf32> to vector<64x32xf32>
    %5 = arith.addf %2, %4 : vector<64x32xf32>
    %cst_5 = arith.constant 5.000000e-01 : f32
    %6 = vector.broadcast %cst_5 : f32 to vector<64x32xf32>
    %7 = arith.mulf %6, %5 : vector<64x32xf32>
    %cst_6 = arith.constant 4.471500e-02 : f32
    %8 = vector.broadcast %cst_6 : f32 to vector<64x32xf32>
    %9 = arith.mulf %8, %5 : vector<64x32xf32>
    %10 = arith.mulf %9, %5 : vector<64x32xf32>
    %11 = arith.mulf %10, %5 : vector<64x32xf32>
    %12 = arith.addf %5, %11 : vector<64x32xf32>
    %cst_7 = arith.constant 0.797884583 : f32
    %13 = vector.broadcast %cst_7 : f32 to vector<64x32xf32>
    %14 = arith.mulf %13, %12 : vector<64x32xf32>
    %15 = math.tanh %14 : vector<64x32xf32>
    %cst_8 = arith.constant 1.000000e+00 : f32
    %16 = vector.broadcast %cst_8 : f32 to vector<64x32xf32>
    %17 = arith.addf %16, %15 : vector<64x32xf32>
    %18 = arith.mulf %7, %17 : vector<64x32xf32>
    %19 = arith.truncf %18 : vector<64x32xf32> to vector<64x32xbf16>
    %c0_9 = arith.constant 0 : index
    %c0_10 = arith.constant 0 : index
    %20 = vector.load %arg4[%c0_9, %c0_10] : memref<32x32xbf16, #tpu.memory_space<vmem>>, vector<32x32xbf16>
    %cst_11 = arith.constant dense<0.000000e+00> : vector<64x32xf32>
    %21 = tpu.matmul %19, %20, %cst_11 {dimension_numbers = #tpu.dot_dimension_numbers<[1], [0], [0], [1], [0, 0, 1, 1], [], []>} : vector<64x32xbf16>, vector<32x32xbf16>, vector<64x32xf32> -> vector<64x32xf32>
    %c0_12 = arith.constant 0 : index
    %c0_13 = arith.constant 0 : index
    %22 = vector.load %arg5[%c0_12, %c0_13] : memref<1x32xf32, #tpu.memory_space<vmem>>, vector<1x32xf32>
    %23 = vector.broadcast %22 : vector<1x32xf32> to vector<64x32xf32>
    %24 = arith.addf %21, %23 : vector<64x32xf32>
    %c0_14 = arith.constant 0 : index
    %c0_15 = arith.constant 0 : index
    %25 = vector.load %arg6[%c0_14, %c0_15] : memref<64x32xf32, #tpu.memory_space<vmem>>, vector<64x32xf32>
    tpu.vector_store %arg6[%c0_14, %c0_15], %24 {strides = array<i32>} : memref<64x32xf32, #tpu.memory_space<vmem>>, vector<64x32xf32>,
    return
  }
  func.func @transform_0(%arg0: i32) -> (i32, i32) {
    %c0_i32 = arith.constant 0 : i32
    %c0_i32_0 = arith.constant 0 : i32
    return %arg0, %c0_i32 : i32, i32
  }
  func.func @transform_1(%arg0: i32) -> (i32, i32) {
    %c0_i32 = arith.constant 0 : i32
    %c0_i32_0 = arith.constant 0 : i32
    %c0_i32_1 = arith.constant 0 : i32
    return %c0_i32, %c0_i32_0 : i32, i32
  }
  func.func @transform_2(%arg0: i32) -> (i32, i32) {
    %c0_i32 = arith.constant 0 : i32
    %c0_i32_0 = arith.constant 0 : i32
    %c0_i32_1 = arith.constant 0 : i32
    return %c0_i32, %c0_i32_0 : i32, i32
  }
  func.func @transform_3(%arg0: i32) -> (i32, i32) {
    %c0_i32 = arith.constant 0 : i32
    %c0_i32_0 = arith.constant 0 : i32
    %c0_i32_1 = arith.constant 0 : i32
    return %c0_i32, %c0_i32_0 : i32, i32
  }
  func.func @transform_4(%arg0: i32) -> (i32, i32) {
    %c0_i32 = arith.constant 0 : i32
    %c0_i32_0 = arith.constant 0 : i32
    %c0_i32_1 = arith.constant 0 : i32
    return %c0_i32, %c0_i32_0 : i32, i32
  }
  func.func @transform_5(%arg0: i32) -> (i32, i32) {
    %c0_i32 = arith.constant 0 : i32
    %c0_i32_0 = arith.constant 0 : i32
    return %arg0, %c0_i32 : i32, i32
  }
}

module attributes {stable_mosaic.version = 11 : i64} {
  func.func @_linear_kernel(%arg0: i32, %arg1: memref<64x32xbf16, #tpu.memory_space<vmem>>, %arg2: memref<32x128xbf16, #tpu.memory_space<vmem>>, %arg3: memref<1x128xf32, #tpu.memory_space<vmem>>, %arg4: memref<64x128xf32, #tpu.memory_space<vmem>>) attributes {dimension_semantics = [#tpu.dimension_semantics<parallel>], iteration_bounds = array<i64: 1>, scalar_prefetch = 0 : i64, scratch_operands = 0 : i64, tpu.core_type = #tpu.core_type<tc>, window_params = [{transform_indices = @transform_0, window_bounds = array<i64: 64, 32>}, {pipeline_mode = #tpu.pipeline_mode<synchronous>, transform_indices = @transform_1, window_bounds = array<i64: 32, 128>}, {pipeline_mode = #tpu.pipeline_mode<synchronous>, transform_indices = @transform_2, window_bounds = array<i64: 1, 128>}, {transform_indices = @transform_3, window_bounds = array<i64: 64, 128>}]} {
    %c0 = arith.constant 0 : index
    %c0_0 = arith.constant 0 : index
    %0 = vector.load %arg1[%c0, %c0_0] : memref<64x32xbf16, #tpu.memory_space<vmem>>, vector<64x32xbf16>
    %c0_1 = arith.constant 0 : index
    %c0_2 = arith.constant 0 : index
    %1 = vector.load %arg2[%c0_1, %c0_2] : memref<32x128xbf16, #tpu.memory_space<vmem>>, vector<32x128xbf16>
    %cst = arith.constant dense<0.000000e+00> : vector<64x128xf32>
    %2 = tpu.matmul %0, %1, %cst {dimension_numbers = #tpu.dot_dimension_numbers<[1], [0], [0], [1], [0, 0, 1, 1], [], []>} : vector<64x32xbf16>, vector<32x128xbf16>, vector<64x128xf32> -> vector<64x128xf32>
    %c0_3 = arith.constant 0 : index
    %c0_4 = arith.constant 0 : index
    %3 = vector.load %arg3[%c0_3, %c0_4] : memref<1x128xf32, #tpu.memory_space<vmem>>, vector<1x128xf32>
    %4 = vector.broadcast %3 : vector<1x128xf32> to vector<64x128xf32>
    %5 = arith.addf %2, %4 : vector<64x128xf32>
    %c0_5 = arith.constant 0 : index
    %c0_6 = arith.constant 0 : index
    %6 = vector.load %arg4[%c0_5, %c0_6] : memref<64x128xf32, #tpu.memory_space<vmem>>, vector<64x128xf32>
    tpu.vector_store %arg4[%c0_5, %c0_6], %5 {strides = array<i32>} : memref<64x128xf32, #tpu.memory_space<vmem>>, vector<64x128xf32>,
    return
  }
  func.func @transform_0(%arg0: i32) -> (i32, i32) {
    %c0_i32 = arith.constant 0 : i32
    %c0_i32_0 = arith.constant 0 : i32
    return %arg0, %c0_i32 : i32, i32
  }
  func.func @transform_1(%arg0: i32) -> (i32, i32) {
    %c0_i32 = arith.constant 0 : i32
    %c0_i32_0 = arith.constant 0 : i32
    %c0_i32_1 = arith.constant 0 : i32
    return %c0_i32, %c0_i32_0 : i32, i32
  }
  func.func @transform_2(%arg0: i32) -> (i32, i32) {
    %c0_i32 = arith.constant 0 : i32
    %c0_i32_0 = arith.constant 0 : i32
    %c0_i32_1 = arith.constant 0 : i32
    return %c0_i32, %c0_i32_0 : i32, i32
  }
  func.func @transform_3(%arg0: i32) -> (i32, i32) {
    %c0_i32 = arith.constant 0 : i32
    %c0_i32_0 = arith.constant 0 : i32
    return %arg0, %c0_i32 : i32, i32
  }
}

module attributes {stable_mosaic.version = 11 : i64} {
  func.func @_mamba_inner_kernel(%arg0: i32, %arg1: memref<1x32x64xf32, #tpu.memory_space<vmem>>, %arg2: memref<1x32x64xf32, #tpu.memory_space<vmem>>, %arg3: memref<4x64xf32, #tpu.memory_space<vmem>>, %arg4: memref<1x64xf32, #tpu.memory_space<vmem>>, %arg5: memref<64x64xbf16, #tpu.memory_space<vmem>>, %arg6: memref<64x16xbf16, #tpu.memory_space<vmem>>, %arg7: memref<64x16xbf16, #tpu.memory_space<vmem>>, %arg8: memref<16x64xf32, #tpu.memory_space<vmem>>, %arg9: memref<1x64xf32, #tpu.memory_space<vmem>>, %arg10: memref<1x64xf32, #tpu.memory_space<vmem>>, %arg11: memref<1x32x64xf32, #tpu.memory_space<vmem>>, %arg12: memref<32x64xf32, #tpu.memory_space<vmem>>, %arg13: memref<32x64xf32, #tpu.memory_space<vmem>>, %arg14: memref<32x16xf32, #tpu.memory_space<vmem>>, %arg15: memref<32x16xf32, #tpu.memory_space<vmem>>) attributes {dimension_semantics = [#tpu.dimension_semantics<parallel>], iteration_bounds = array<i64: 4>, scalar_prefetch = 0 : i64, scratch_operands = 4 : i64, tpu.core_type = #tpu.core_type<tc>, window_params = [{transform_indices = @transform_0, window_bounds = array<i64: 1, 32, 64>}, {transform_indices = @transform_1, window_bounds = array<i64: 1, 32, 64>}, {pipeline_mode = #tpu.pipeline_mode<synchronous>, transform_indices = @transform_2, window_bounds = array<i64: 4, 64>}, {pipeline_mode = #tpu.pipeline_mode<synchronous>, transform_indices = @transform_3, window_bounds = array<i64: 1, 64>}, {pipeline_mode = #tpu.pipeline_mode<synchronous>, transform_indices = @transform_4, window_bounds = array<i64: 64, 64>}, {pipeline_mode = #tpu.pipeline_mode<synchronous>, transform_indices = @transform_5, window_bounds = array<i64: 64, 16>}, {pipeline_mode = #tpu.pipeline_mode<synchronous>, transform_indices = @transform_6, window_bounds = array<i64: 64, 16>}, {pipeline_mode = #tpu.pipeline_mode<synchronous>, transform_indices = @transform_7, window_bounds = array<i64: 16, 64>}, {pipeline_mode = #tpu.pipeline_mode<synchronous>, transform_indices = @transform_8, window_bounds = array<i64: 1, 64>}, {pipeline_mode = #tpu.pipeline_mode<synchronous>, transform_indices = @transform_9, window_bounds = array<i64: 1, 64>}, {transform_indices = @transform_10, window_bounds = array<i64: 1, 32, 64>}]} {
    %c0 = arith.constant 0 : index
    %c0_0 = arith.constant 0 : index
    %c0_1 = arith.constant 0 : index
    %0 = vector.load %arg1[%c0, %c0_0, %c0_1] : memref<1x32x64xf32, #tpu.memory_space<vmem>>, vector<1x32x64xf32>
    %1 = vector.shape_cast %0 : vector<1x32x64xf32> to vector<32x64xf32>
    %c0_2 = arith.constant 0 : index
    %c0_3 = arith.constant 0 : index
    %2 = vector.load %arg4[%c0_2, %c0_3] : memref<1x64xf32, #tpu.memory_space<vmem>>, vector<1x64xf32>
    %3 = vector.shape_cast %2 : vector<1x64xf32> to vector<1x64xf32>
    %4 = vector.broadcast %3 : vector<1x64xf32> to vector<32x64xf32>
    %c0_4 = arith.constant 0 : index
    %c0_5 = arith.constant 0 : index
    %5 = vector.load %arg3[%c0_4, %c0_5] : memref<4x64xf32, #tpu.memory_space<vmem>>, vector<1x64xf32>
    %cst = arith.constant 0.000000e+00 : f32
    %6 = vector.broadcast %cst : f32 to vector<3x64xf32>
    %7 = vector.extract_strided_slice %1 {offsets = [0, 0], sizes = [29, 64], strides = [1, 1]} : vector<32x64xf32> to vector<29x64xf32>
    %8 = tpu.concatenate %6, %7 in 0 : vector<3x64xf32>, vector<29x64xf32> -> vector<32x64xf32>
    %9 = vector.broadcast %5 : vector<1x64xf32> to vector<32x64xf32>
    %10 = arith.mulf %9, %8 : vector<32x64xf32>
    %11 = arith.addf %4, %10 : vector<32x64xf32>
    %c1 = arith.constant 1 : index
    %c0_6 = arith.constant 0 : index
    %12 = vector.load %arg3[%c1, %c0_6] : memref<4x64xf32, #tpu.memory_space<vmem>>, vector<1x64xf32>
    %cst_7 = arith.constant 0.000000e+00 : f32
    %13 = vector.broadcast %cst_7 : f32 to vector<2x64xf32>
    %14 = vector.extract_strided_slice %1 {offsets = [0, 0], sizes = [30, 64], strides = [1, 1]} : vector<32x64xf32> to vector<30x64xf32>
    %15 = tpu.concatenate %13, %14 in 0 : vector<2x64xf32>, vector<30x64xf32> -> vector<32x64xf32>
    %16 = vector.broadcast %12 : vector<1x64xf32> to vector<32x64xf32>
    %17 = arith.mulf %16, %15 : vector<32x64xf32>
    %18 = arith.addf %11, %17 : vector<32x64xf32>
    %c2 = arith.constant 2 : index
    %c0_8 = arith.constant 0 : index
    %19 = vector.load %arg3[%c2, %c0_8] : memref<4x64xf32, #tpu.memory_space<vmem>>, vector<1x64xf32>
    %cst_9 = arith.constant 0.000000e+00 : f32
    %20 = vector.broadcast %cst_9 : f32 to vector<1x64xf32>
    %21 = vector.extract_strided_slice %1 {offsets = [0, 0], sizes = [31, 64], strides = [1, 1]} : vector<32x64xf32> to vector<31x64xf32>
    %22 = tpu.concatenate %20, %21 in 0 : vector<1x64xf32>, vector<31x64xf32> -> vector<32x64xf32>
    %23 = vector.broadcast %19 : vector<1x64xf32> to vector<32x64xf32>
    %24 = arith.mulf %23, %22 : vector<32x64xf32>
    %25 = arith.addf %18, %24 : vector<32x64xf32>
    %c3 = arith.constant 3 : index
    %c0_10 = arith.constant 0 : index
    %26 = vector.load %arg3[%c3, %c0_10] : memref<4x64xf32, #tpu.memory_space<vmem>>, vector<1x64xf32>
    %27 = vector.broadcast %26 : vector<1x64xf32> to vector<32x64xf32>
    %28 = arith.mulf %27, %1 : vector<32x64xf32>
    %29 = arith.addf %25, %28 : vector<32x64xf32>
    %30 = arith.negf %29 : vector<32x64xf32>
    %31 = math.exp %30 : vector<32x64xf32>
    %cst_11 = arith.constant 1.000000e+00 : f32
    %32 = vector.broadcast %cst_11 : f32 to vector<32x64xf32>
    %33 = arith.addf %32, %31 : vector<32x64xf32>
    %34 = arith.divf %32, %33 : vector<32x64xf32>
    %35 = arith.mulf %29, %34 : vector<32x64xf32>
    %c0_12 = arith.constant 0 : index
    %c0_13 = arith.constant 0 : index
    %36 = vector.load %arg12[%c0_12, %c0_13] : memref<32x64xf32, #tpu.memory_space<vmem>>, vector<32x64xf32>
    tpu.vector_store %arg12[%c0_12, %c0_13], %35 {strides = array<i32>} : memref<32x64xf32, #tpu.memory_space<vmem>>, vector<32x64xf32>,
    %37 = arith.truncf %35 : vector<32x64xf32> to vector<32x64xbf16>
    %c0_14 = arith.constant 0 : index
    %c0_15 = arith.constant 0 : index
    %38 = vector.load %arg5[%c0_14, %c0_15] : memref<64x64xbf16, #tpu.memory_space<vmem>>, vector<64x64xbf16>
    %cst_16 = arith.constant dense<0.000000e+00> : vector<32x64xf32>
    %39 = tpu.matmul %37, %38, %cst_16 {dimension_numbers = #tpu.dot_dimension_numbers<[1], [0], [0], [1], [0, 0, 1, 1], [], []>} : vector<32x64xbf16>, vector<64x64xbf16>, vector<32x64xf32> -> vector<32x64xf32>
    %c0_17 = arith.constant 0 : index
    %c0_18 = arith.constant 0 : index
    %40 = vector.load %arg10[%c0_17, %c0_18] : memref<1x64xf32, #tpu.memory_space<vmem>>, vector<1x64xf32>
    %41 = vector.broadcast %40 : vector<1x64xf32> to vector<32x64xf32>
    %42 = arith.addf %39, %41 : vector<32x64xf32>
    %cst_19 = arith.constant 0.000000e+00 : f32
    %43 = vector.broadcast %cst_19 : f32 to vector<32x64xf32>
    %44 = arith.maximumf %42, %43 : vector<32x64xf32>
    %45 = math.absf %42 : vector<32x64xf32>
    %cst_20 = arith.constant 0.000000e+00 : f32
    %46 = vector.broadcast %cst_20 : f32 to vector<32x64xf32>
    %47 = arith.subf %46, %45 : vector<32x64xf32>
    %48 = math.exp %47 : vector<32x64xf32>
    %cst_21 = arith.constant 1.000000e+00 : f32
    %49 = vector.broadcast %cst_21 : f32 to vector<32x64xf32>
    %50 = arith.addf %49, %48 : vector<32x64xf32>
    %51 = math.log %50 : vector<32x64xf32>
    %52 = arith.addf %44, %51 : vector<32x64xf32>
    %c0_22 = arith.constant 0 : index
    %c0_23 = arith.constant 0 : index
    %53 = vector.load %arg13[%c0_22, %c0_23] : memref<32x64xf32, #tpu.memory_space<vmem>>, vector<32x64xf32>
    tpu.vector_store %arg13[%c0_22, %c0_23], %52 {strides = array<i32>} : memref<32x64xf32, #tpu.memory_space<vmem>>, vector<32x64xf32>,
    %c0_24 = arith.constant 0 : index
    %c0_25 = arith.constant 0 : index
    %54 = vector.load %arg6[%c0_24, %c0_25] : memref<64x16xbf16, #tpu.memory_space<vmem>>, vector<64x16xbf16>
    %cst_26 = arith.constant dense<0.000000e+00> : vector<32x16xf32>
    %55 = tpu.matmul %37, %54, %cst_26 {dimension_numbers = #tpu.dot_dimension_numbers<[1], [0], [0], [1], [0, 0, 1, 1], [], []>} : vector<32x64xbf16>, vector<64x16xbf16>, vector<32x16xf32> -> vector<32x16xf32>
    %c0_27 = arith.constant 0 : index
    %c0_28 = arith.constant 0 : index
    %56 = vector.load %arg14[%c0_27, %c0_28] : memref<32x16xf32, #tpu.memory_space<vmem>>, vector<32x16xf32>
    tpu.vector_store %arg14[%c0_27, %c0_28], %55 {strides = array<i32>} : memref<32x16xf32, #tpu.memory_space<vmem>>, vector<32x16xf32>,
    %c0_29 = arith.constant 0 : index
    %c0_30 = arith.constant 0 : index
    %57 = vector.load %arg7[%c0_29, %c0_30] : memref<64x16xbf16, #tpu.memory_space<vmem>>, vector<64x16xbf16>
    %cst_31 = arith.constant dense<0.000000e+00> : vector<32x16xf32>
    %58 = tpu.matmul %37, %57, %cst_31 {dimension_numbers = #tpu.dot_dimension_numbers<[1], [0], [0], [1], [0, 0, 1, 1], [], []>} : vector<32x64xbf16>, vector<64x16xbf16>, vector<32x16xf32> -> vector<32x16xf32>
    %c0_32 = arith.constant 0 : index
    %c0_33 = arith.constant 0 : index
    %59 = vector.load %arg15[%c0_32, %c0_33] : memref<32x16xf32, #tpu.memory_space<vmem>>, vector<32x16xf32>
    tpu.vector_store %arg15[%c0_32, %c0_33], %58 {strides = array<i32>} : memref<32x16xf32, #tpu.memory_space<vmem>>, vector<32x16xf32>,
    %c0_34 = arith.constant 0 : index
    %c0_35 = arith.constant 0 : index
    %60 = vector.load %arg8[%c0_34, %c0_35] : memref<16x64xf32, #tpu.memory_space<vmem>>, vector<16x64xf32>
    %61 = tpu.iota {dimensions = array<i32: 0>} : vector<16x16xi32>
    %62 = tpu.iota {dimensions = array<i32: 1>} : vector<16x16xi32>
    %63 = arith.cmpi eq, %61, %62 : vector<16x16xi32>
    %64 = arith.extui %63 : vector<16x16xi1> to vector<16x16xi32>
    %65 = arith.sitofp %64 : vector<16x16xi32> to vector<16x16xf32>
    %cst_36 = arith.constant 0.000000e+00 : f32
    %66 = vector.broadcast %cst_36 : f32 to vector<16x64xf32>
    %c0_i32 = arith.constant 0 : i32
    %c32_i32 = arith.constant 32 : i32
    %67 = arith.addi %c0_i32, %c32_i32 : i32
    %c1_i32 = arith.constant 1 : i32
    %68 = scf.for %arg16 = %c0_i32 to %67 step %c1_i32 iter_args(%arg17 = %66) -> (vector<16x64xf32>)  : i32 {
      %88 = arith.index_cast %arg16 : i32 to index
      %c0_52 = arith.constant 0 : index
      %89 = vector.load %arg13[%88, %c0_52] : memref<32x64xf32, #tpu.memory_space<vmem>>, vector<1x64xf32>
      %90 = arith.index_cast %arg16 : i32 to index
      %c0_53 = arith.constant 0 : index
      %91 = vector.load %arg12[%90, %c0_53] : memref<32x64xf32, #tpu.memory_space<vmem>>, vector<1x64xf32>
      %92 = arith.index_cast %arg16 : i32 to index
      %c0_54 = arith.constant 0 : index
      %93 = vector.load %arg14[%92, %c0_54] : memref<32x16xf32, #tpu.memory_space<vmem>>, vector<1x16xf32>
      %94 = arith.index_cast %arg16 : i32 to index
      %c0_55 = arith.constant 0 : index
      %95 = vector.load %arg15[%94, %c0_55] : memref<32x16xf32, #tpu.memory_space<vmem>>, vector<1x16xf32>
      %96 = vector.broadcast %89 : vector<1x64xf32> to vector<16x64xf32>
      %97 = arith.mulf %96, %60 : vector<16x64xf32>
      %98 = math.exp %97 : vector<16x64xf32>
      %99 = arith.mulf %89, %91 : vector<1x64xf32>
      %100 = vector.shape_cast %99 : vector<1x64xf32> to vector<1x64xf32>
      %101 = vector.broadcast %100 : vector<1x64xf32> to vector<16x64xf32>
      %102 = vector.broadcast %93 : vector<1x16xf32> to vector<16x16xf32>
      %103 = arith.mulf %65, %102 : vector<16x16xf32>
      %cst_56 = arith.constant dense<0.000000e+00> : vector<16x64xf32>
      %104 = tpu.matmul %103, %101, %cst_56 {dimension_numbers = #tpu.dot_dimension_numbers<[1], [0], [0], [1], [0, 0, 1, 1], [], []>} : vector<16x16xf32>, vector<16x64xf32>, vector<16x64xf32> -> vector<16x64xf32>
      %105 = arith.mulf %98, %arg17 : vector<16x64xf32>
      %106 = arith.addf %105, %104 : vector<16x64xf32>
      %cst_57 = arith.constant dense<0.000000e+00> : vector<1x64xf32>
      %107 = tpu.matmul %95, %106, %cst_57 {dimension_numbers = #tpu.dot_dimension_numbers<[1], [0], [0], [1], [0, 0, 1, 1], [], []>} : vector<1x16xf32>, vector<16x64xf32>, vector<1x64xf32> -> vector<1x64xf32>
      %c0_58 = arith.constant 0 : index
      %108 = arith.index_cast %arg16 : i32 to index
      %c0_59 = arith.constant 0 : index
      %109 = vector.load %arg11[%c0_58, %108, %c0_59] : memref<1x32x64xf32, #tpu.memory_space<vmem>>, vector<1x1x64xf32>
      %110 = vector.shape_cast %109 : vector<1x1x64xf32> to vector<1x64xf32>
      %111 = vector.shape_cast %107 : vector<1x64xf32> to vector<1x1x64xf32>
      tpu.vector_store %arg11[%c0_58, %108, %c0_59], %111 {strides = array<i32>} : memref<1x32x64xf32, #tpu.memory_space<vmem>>, vector<1x1x64xf32>,
      scf.yield %106 : vector<16x64xf32>
    }
    %c32_i32_37 = arith.constant 32 : i32
    %c0_38 = arith.constant 0 : index
    %c0_39 = arith.constant 0 : index
    %c0_40 = arith.constant 0 : index
    %69 = vector.load %arg11[%c0_38, %c0_39, %c0_40] : memref<1x32x64xf32, #tpu.memory_space<vmem>>, vector<1x32x64xf32>
    %70 = vector.shape_cast %69 : vector<1x32x64xf32> to vector<32x64xf32>
    %c0_41 = arith.constant 0 : index
    %c0_42 = arith.constant 0 : index
    %71 = vector.load %arg9[%c0_41, %c0_42] : memref<1x64xf32, #tpu.memory_space<vmem>>, vector<1x64xf32>
    %c0_43 = arith.constant 0 : index
    %c0_44 = arith.constant 0 : index
    %72 = vector.load %arg12[%c0_43, %c0_44] : memref<32x64xf32, #tpu.memory_space<vmem>>, vector<32x64xf32>
    %73 = vector.broadcast %71 : vector<1x64xf32> to vector<32x64xf32>
    %74 = arith.mulf %73, %72 : vector<32x64xf32>
    %75 = arith.addf %70, %74 : vector<32x64xf32>
    %c0_45 = arith.constant 0 : index
    %c0_46 = arith.constant 0 : index
    %c0_47 = arith.constant 0 : index
    %76 = vector.load %arg2[%c0_45, %c0_46, %c0_47] : memref<1x32x64xf32, #tpu.memory_space<vmem>>, vector<1x32x64xf32>
    %77 = vector.shape_cast %76 : vector<1x32x64xf32> to vector<32x64xf32>
    %78 = arith.negf %77 : vector<32x64xf32>
    %79 = math.exp %78 : vector<32x64xf32>
    %cst_48 = arith.constant 1.000000e+00 : f32
    %80 = vector.broadcast %cst_48 : f32 to vector<32x64xf32>
    %81 = arith.addf %80, %79 : vector<32x64xf32>
    %82 = arith.divf %80, %81 : vector<32x64xf32>
    %83 = arith.mulf %77, %82 : vector<32x64xf32>
    %84 = arith.mulf %75, %83 : vector<32x64xf32>
    %c0_49 = arith.constant 0 : index
    %c0_50 = arith.constant 0 : index
    %c0_51 = arith.constant 0 : index
    %85 = vector.load %arg11[%c0_49, %c0_50, %c0_51] : memref<1x32x64xf32, #tpu.memory_space<vmem>>, vector<1x32x64xf32>
    %86 = vector.shape_cast %85 : vector<1x32x64xf32> to vector<32x64xf32>
    %87 = vector.shape_cast %84 : vector<32x64xf32> to vector<1x32x64xf32>
    tpu.vector_store %arg11[%c0_49, %c0_50, %c0_51], %87 {strides = array<i32>} : memref<1x32x64xf32, #tpu.memory_space<vmem>>, vector<1x32x64xf32>,
    return
  }
  func.func @transform_0(%arg0: i32) -> (i32, i32, i32) {
    %c0_i32 = arith.constant 0 : i32
    %c0_i32_0 = arith.constant 0 : i32
    %c0_i32_1 = arith.constant 0 : i32
    return %arg0, %c0_i32, %c0_i32_0 : i32, i32, i32
  }
  func.func @transform_1(%arg0: i32) -> (i32, i32, i32) {
    %c0_i32 = arith.constant 0 : i32
    %c0_i32_0 = arith.constant 0 : i32
    %c0_i32_1 = arith.constant 0 : i32
    return %arg0, %c0_i32, %c0_i32_0 : i32, i32, i32
  }
  func.func @transform_2(%arg0: i32) -> (i32, i32) {
    %c0_i32 = arith.constant 0 : i32
    %c0_i32_0 = arith.constant 0 : i32
    %c0_i32_1 = arith.constant 0 : i32
    return %c0_i32, %c0_i32_0 : i32, i32
  }
  func.func @transform_3(%arg0: i32) -> (i32, i32) {
    %c0_i32 = arith.constant 0 : i32
    %c0_i32_0 = arith.constant 0 : i32
    %c0_i32_1 = arith.constant 0 : i32
    return %c0_i32, %c0_i32_0 : i32, i32
  }
  func.func @transform_4(%arg0: i32) -> (i32, i32) {
    %c0_i32 = arith.constant 0 : i32
    %c0_i32_0 = arith.constant 0 : i32
    %c0_i32_1 = arith.constant 0 : i32
    return %c0_i32, %c0_i32_0 : i32, i32
  }
  func.func @transform_5(%arg0: i32) -> (i32, i32) {
    %c0_i32 = arith.constant 0 : i32
    %c0_i32_0 = arith.constant 0 : i32
    %c0_i32_1 = arith.constant 0 : i32
    return %c0_i32, %c0_i32_0 : i32, i32
  }
  func.func @transform_6(%arg0: i32) -> (i32, i32) {
    %c0_i32 = arith.constant 0 : i32
    %c0_i32_0 = arith.constant 0 : i32
    %c0_i32_1 = arith.constant 0 : i32
    return %c0_i32, %c0_i32_0 : i32, i32
  }
  func.func @transform_7(%arg0: i32) -> (i32, i32) {
    %c0_i32 = arith.constant 0 : i32
    %c0_i32_0 = arith.constant 0 : i32
    %c0_i32_1 = arith.constant 0 : i32
    return %c0_i32, %c0_i32_0 : i32, i32
  }
  func.func @transform_8(%arg0: i32) -> (i32, i32) {
    %c0_i32 = arith.constant 0 : i32
    %c0_i32_0 = arith.constant 0 : i32
    %c0_i32_1 = arith.constant 0 : i32
    return %c0_i32, %c0_i32_0 : i32, i32
  }
  func.func @transform_9(%arg0: i32) -> (i32, i32) {
    %c0_i32 = arith.constant 0 : i32
    %c0_i32_0 = arith.constant 0 : i32
    %c0_i32_1 = arith.constant 0 : i32
    return %c0_i32, %c0_i32_0 : i32, i32
  }
  func.func @transform_10(%arg0: i32) -> (i32, i32, i32) {
    %c0_i32 = arith.constant 0 : i32
    %c0_i32_0 = arith.constant 0 : i32
    %c0_i32_1 = arith.constant 0 : i32
    return %arg0, %c0_i32, %c0_i32_0 : i32, i32, i32
  }
}

module attributes {stable_mosaic.version = 11 : i64} {
  func.func @_linear_kernel(%arg0: i32, %arg1: memref<128x64xbf16, #tpu.memory_space<vmem>>, %arg2: memref<64x32xbf16, #tpu.memory_space<vmem>>, %arg3: memref<1x32xf32, #tpu.memory_space<vmem>>, %arg4: memref<128x32xf32, #tpu.memory_space<vmem>>) attributes {dimension_semantics = [#tpu.dimension_semantics<parallel>], iteration_bounds = array<i64: 1>, scalar_prefetch = 0 : i64, scratch_operands = 0 : i64, tpu.core_type = #tpu.core_type<tc>, window_params = [{transform_indices = @transform_0, window_bounds = array<i64: 128, 64>}, {pipeline_mode = #tpu.pipeline_mode<synchronous>, transform_indices = @transform_1, window_bounds = array<i64: 64, 32>}, {pipeline_mode = #tpu.pipeline_mode<synchronous>, transform_indices = @transform_2, window_bounds = array<i64: 1, 32>}, {transform_indices = @transform_3, window_bounds = array<i64: 128, 32>}]} {
    %c0 = arith.constant 0 : index
    %c0_0 = arith.constant 0 : index
    %0 = vector.load %arg1[%c0, %c0_0] : memref<128x64xbf16, #tpu.memory_space<vmem>>, vector<128x64xbf16>
    %c0_1 = arith.constant 0 : index
    %c0_2 = arith.constant 0 : index
    %1 = vector.load %arg2[%c0_1, %c0_2] : memref<64x32xbf16, #tpu.memory_space<vmem>>, vector<64x32xbf16>
    %cst = arith.constant dense<0.000000e+00> : vector<128x32xf32>
    %2 = tpu.matmul %0, %1, %cst {dimension_numbers = #tpu.dot_dimension_numbers<[1], [0], [0], [1], [0, 0, 1, 1], [], []>} : vector<128x64xbf16>, vector<64x32xbf16>, vector<128x32xf32> -> vector<128x32xf32>
    %c0_3 = arith.constant 0 : index
    %c0_4 = arith.constant 0 : index
    %3 = vector.load %arg3[%c0_3, %c0_4] : memref<1x32xf32, #tpu.memory_space<vmem>>, vector<1x32xf32>
    %4 = vector.broadcast %3 : vector<1x32xf32> to vector<128x32xf32>
    %5 = arith.addf %2, %4 : vector<128x32xf32>
    %c0_5 = arith.constant 0 : index
    %c0_6 = arith.constant 0 : index
    %6 = vector.load %arg4[%c0_5, %c0_6] : memref<128x32xf32, #tpu.memory_space<vmem>>, vector<128x32xf32>
    tpu.vector_store %arg4[%c0_5, %c0_6], %5 {strides = array<i32>} : memref<128x32xf32, #tpu.memory_space<vmem>>, vector<128x32xf32>,
    return
  }
  func.func @transform_0(%arg0: i32) -> (i32, i32) {
    %c0_i32 = arith.constant 0 : i32
    %c0_i32_0 = arith.constant 0 : i32
    return %arg0, %c0_i32 : i32, i32
  }
  func.func @transform_1(%arg0: i32) -> (i32, i32) {
    %c0_i32 = arith.constant 0 : i32
    %c0_i32_0 = arith.constant 0 : i32
    %c0_i32_1 = arith.constant 0 : i32
    return %c0_i32, %c0_i32_0 : i32, i32
  }
  func.func @transform_2(%arg0: i32) -> (i32, i32) {
    %c0_i32 = arith.constant 0 : i32
    %c0_i32_0 = arith.constant 0 : i32
    %c0_i32_1 = arith.constant 0 : i32
    return %c0_i32, %c0_i32_0 : i32, i32
  }
  func.func @transform_3(%arg0: i32) -> (i32, i32) {
    %c0_i32 = arith.constant 0 : i32
    %c0_i32_0 = arith.constant 0 : i32
    return %arg0, %c0_i32 : i32, i32
  }
}

module attributes {stable_mosaic.version = 11 : i64} {
  func.func @_cofe_kernel(%arg0: i32, %arg1: memref<1x32x32xf32, #tpu.memory_space<vmem>>, %arg2: memref<3x32xf32, #tpu.memory_space<vmem>>, %arg3: memref<1x32xf32, #tpu.memory_space<vmem>>, %arg4: memref<32x8xf32, #tpu.memory_space<vmem>>, %arg5: memref<1x8xf32, #tpu.memory_space<vmem>>, %arg6: memref<8x32xf32, #tpu.memory_space<vmem>>, %arg7: memref<1x32xf32, #tpu.memory_space<vmem>>, %arg8: memref<32x32xf32, #tpu.memory_space<vmem>>, %arg9: memref<1x32xf32, #tpu.memory_space<vmem>>, %arg10: memref<1x32x32xf32, #tpu.memory_space<vmem>>) attributes {dimension_semantics = [#tpu.dimension_semantics<parallel>], iteration_bounds = array<i64: 2>, scalar_prefetch = 0 : i64, scratch_operands = 0 : i64, tpu.core_type = #tpu.core_type<tc>, window_params = [{transform_indices = @transform_0, window_bounds = array<i64: 1, 32, 32>}, {pipeline_mode = #tpu.pipeline_mode<synchronous>, transform_indices = @transform_1, window_bounds = array<i64: 3, 32>}, {pipeline_mode = #tpu.pipeline_mode<synchronous>, transform_indices = @transform_2, window_bounds = array<i64: 1, 32>}, {pipeline_mode = #tpu.pipeline_mode<synchronous>, transform_indices = @transform_3, window_bounds = array<i64: 32, 8>}, {pipeline_mode = #tpu.pipeline_mode<synchronous>, transform_indices = @transform_4, window_bounds = array<i64: 1, 8>}, {pipeline_mode = #tpu.pipeline_mode<synchronous>, transform_indices = @transform_5, window_bounds = array<i64: 8, 32>}, {pipeline_mode = #tpu.pipeline_mode<synchronous>, transform_indices = @transform_6, window_bounds = array<i64: 1, 32>}, {pipeline_mode = #tpu.pipeline_mode<synchronous>, transform_indices = @transform_7, window_bounds = array<i64: 32, 32>}, {pipeline_mode = #tpu.pipeline_mode<synchronous>, transform_indices = @transform_8, window_bounds = array<i64: 1, 32>}, {transform_indices = @transform_9, window_bounds = array<i64: 1, 32, 32>}]} {
    %c0 = arith.constant 0 : index
    %c0_0 = arith.constant 0 : index
    %c0_1 = arith.constant 0 : index
    %0 = vector.load %arg1[%c0, %c0_0, %c0_1] : memref<1x32x32xf32, #tpu.memory_space<vmem>>, vector<1x32x32xf32>
    %1 = vector.shape_cast %0 : vector<1x32x32xf32> to vector<32x32xf32>
    %c0_2 = arith.constant 0 : index
    %c0_3 = arith.constant 0 : index
    %2 = vector.load %arg3[%c0_2, %c0_3] : memref<1x32xf32, #tpu.memory_space<vmem>>, vector<1x32xf32>
    %3 = vector.shape_cast %2 : vector<1x32xf32> to vector<1x32xf32>
    %4 = vector.broadcast %3 : vector<1x32xf32> to vector<32x32xf32>
    %c0_4 = arith.constant 0 : index
    %c0_5 = arith.constant 0 : index
    %5 = vector.load %arg2[%c0_4, %c0_5] : memref<3x32xf32, #tpu.memory_space<vmem>>, vector<1x32xf32>
    %cst = arith.constant 0.000000e+00 : f32
    %6 = vector.broadcast %cst : f32 to vector<1x32xf32>
    %7 = vector.extract_strided_slice %1 {offsets = [0, 0], sizes = [31, 32], strides = [1, 1]} : vector<32x32xf32> to vector<31x32xf32>
    %8 = tpu.concatenate %6, %7 in 0 : vector<1x32xf32>, vector<31x32xf32> -> vector<32x32xf32>
    %9 = vector.broadcast %5 : vector<1x32xf32> to vector<32x32xf32>
    %10 = arith.mulf %9, %8 : vector<32x32xf32>
    %11 = arith.addf %4, %10 : vector<32x32xf32>
    %c1 = arith.constant 1 : index
    %c0_6 = arith.constant 0 : index
    %12 = vector.load %arg2[%c1, %c0_6] : memref<3x32xf32, #tpu.memory_space<vmem>>, vector<1x32xf32>
    %13 = vector.broadcast %12 : vector<1x32xf32> to vector<32x32xf32>
    %14 = arith.mulf %13, %1 : vector<32x32xf32>
    %15 = arith.addf %11, %14 : vector<32x32xf32>
    %c2 = arith.constant 2 : index
    %c0_7 = arith.constant 0 : index
    %16 = vector.load %arg2[%c2, %c0_7] : memref<3x32xf32, #tpu.memory_space<vmem>>, vector<1x32xf32>
    %cst_8 = arith.constant 0.000000e+00 : f32
    %17 = vector.broadcast %cst_8 : f32 to vector<1x32xf32>
    %18 = vector.extract_strided_slice %1 {offsets = [1, 0], sizes = [31, 32], strides = [1, 1]} : vector<32x32xf32> to vector<31x32xf32>
    %19 = tpu.concatenate %18, %17 in 0 : vector<31x32xf32>, vector<1x32xf32> -> vector<32x32xf32>
    %20 = vector.broadcast %16 : vector<1x32xf32> to vector<32x32xf32>
    %21 = arith.mulf %20, %19 : vector<32x32xf32>
    %22 = arith.addf %15, %21 : vector<32x32xf32>
    %cst_9 = arith.constant 5.000000e-01 : f32
    %23 = vector.broadcast %cst_9 : f32 to vector<32x32xf32>
    %24 = arith.mulf %23, %22 : vector<32x32xf32>
    %cst_10 = arith.constant 4.471500e-02 : f32
    %25 = vector.broadcast %cst_10 : f32 to vector<32x32xf32>
    %26 = arith.mulf %25, %22 : vector<32x32xf32>
    %27 = arith.mulf %26, %22 : vector<32x32xf32>
    %28 = arith.mulf %27, %22 : vector<32x32xf32>
    %29 = arith.addf %22, %28 : vector<32x32xf32>
    %cst_11 = arith.constant 0.797884583 : f32
    %30 = vector.broadcast %cst_11 : f32 to vector<32x32xf32>
    %31 = arith.mulf %30, %29 : vector<32x32xf32>
    %32 = math.tanh %31 : vector<32x32xf32>
    %cst_12 = arith.constant 1.000000e+00 : f32
    %33 = vector.broadcast %cst_12 : f32 to vector<32x32xf32>
    %34 = arith.addf %33, %32 : vector<32x32xf32>
    %35 = arith.mulf %24, %34 : vector<32x32xf32>
    %cst_13 = arith.constant dense<0.000000e+00> : vector<32xf32>
    %36 = vector.multi_reduction <add>, %1, %cst_13 [0] : vector<32x32xf32> to vector<32xf32>
    %37 = vector.shape_cast %36 : vector<32xf32> to vector<1x32xf32>
    %cst_14 = arith.constant 3.200000e+01 : f32
    %38 = vector.broadcast %cst_14 : f32 to vector<1x32xf32>
    %39 = arith.divf %37, %38 : vector<1x32xf32>
    %c0_15 = arith.constant 0 : index
    %c0_16 = arith.constant 0 : index
    %40 = vector.load %arg4[%c0_15, %c0_16] : memref<32x8xf32, #tpu.memory_space<vmem>>, vector<32x8xf32>
    %cst_17 = arith.constant dense<0.000000e+00> : vector<1x8xf32>
    %41 = tpu.matmul %39, %40, %cst_17 {dimension_numbers = #tpu.dot_dimension_numbers<[1], [0], [0], [1], [0, 0, 1, 1], [], []>} : vector<1x32xf32>, vector<32x8xf32>, vector<1x8xf32> -> vector<1x8xf32>
    %c0_18 = arith.constant 0 : index
    %c0_19 = arith.constant 0 : index
    %42 = vector.load %arg5[%c0_18, %c0_19] : memref<1x8xf32, #tpu.memory_space<vmem>>, vector<1x8xf32>
    %43 = arith.addf %41, %42 : vector<1x8xf32>
    %cst_20 = arith.constant 5.000000e-01 : f32
    %44 = vector.broadcast %cst_20 : f32 to vector<1x8xf32>
    %45 = arith.mulf %44, %43 : vector<1x8xf32>
    %cst_21 = arith.constant 4.471500e-02 : f32
    %46 = vector.broadcast %cst_21 : f32 to vector<1x8xf32>
    %47 = arith.mulf %46, %43 : vector<1x8xf32>
    %48 = arith.mulf %47, %43 : vector<1x8xf32>
    %49 = arith.mulf %48, %43 : vector<1x8xf32>
    %50 = arith.addf %43, %49 : vector<1x8xf32>
    %cst_22 = arith.constant 0.797884583 : f32
    %51 = vector.broadcast %cst_22 : f32 to vector<1x8xf32>
    %52 = arith.mulf %51, %50 : vector<1x8xf32>
    %53 = math.tanh %52 : vector<1x8xf32>
    %cst_23 = arith.constant 1.000000e+00 : f32
    %54 = vector.broadcast %cst_23 : f32 to vector<1x8xf32>
    %55 = arith.addf %54, %53 : vector<1x8xf32>
    %56 = arith.mulf %45, %55 : vector<1x8xf32>
    %c0_24 = arith.constant 0 : index
    %c0_25 = arith.constant 0 : index
    %57 = vector.load %arg6[%c0_24, %c0_25] : memref<8x32xf32, #tpu.memory_space<vmem>>, vector<8x32xf32>
    %cst_26 = arith.constant dense<0.000000e+00> : vector<1x32xf32>
    %58 = tpu.matmul %56, %57, %cst_26 {dimension_numbers = #tpu.dot_dimension_numbers<[1], [0], [0], [1], [0, 0, 1, 1], [], []>} : vector<1x8xf32>, vector<8x32xf32>, vector<1x32xf32> -> vector<1x32xf32>
    %c0_27 = arith.constant 0 : index
    %c0_28 = arith.constant 0 : index
    %59 = vector.load %arg7[%c0_27, %c0_28] : memref<1x32xf32, #tpu.memory_space<vmem>>, vector<1x32xf32>
    %60 = arith.addf %58, %59 : vector<1x32xf32>
    %61 = arith.negf %60 : vector<1x32xf32>
    %62 = math.exp %61 : vector<1x32xf32>
    %cst_29 = arith.constant 1.000000e+00 : f32
    %63 = vector.broadcast %cst_29 : f32 to vector<1x32xf32>
    %64 = arith.addf %63, %62 : vector<1x32xf32>
    %65 = arith.divf %63, %64 : vector<1x32xf32>
    %66 = vector.broadcast %65 : vector<1x32xf32> to vector<32x32xf32>
    %67 = arith.mulf %1, %66 : vector<32x32xf32>
    %68 = arith.addf %35, %67 : vector<32x32xf32>
    %cst_30 = arith.constant dense<0.000000e+00> : vector<32xf32>
    %69 = vector.multi_reduction <add>, %68, %cst_30 [1] : vector<32x32xf32> to vector<32xf32>
    %70 = vector.shape_cast %69 : vector<32xf32> to vector<32x1xf32>
    %cst_31 = arith.constant 3.200000e+01 : f32
    %71 = vector.broadcast %cst_31 : f32 to vector<32x1xf32>
    %72 = arith.divf %70, %71 : vector<32x1xf32>
    %cst_32 = arith.constant dense<0xFF800000> : vector<1xf32>
    %73 = vector.multi_reduction <maximumf>, %72, %cst_32 [0] : vector<32x1xf32> to vector<1xf32>
    %74 = vector.shape_cast %73 : vector<1xf32> to vector<1x1xf32>
    %75 = vector.broadcast %74 : vector<1x1xf32> to vector<32x1xf32>
    %76 = arith.subf %72, %75 : vector<32x1xf32>
    %77 = math.exp %76 : vector<32x1xf32>
    %cst_33 = arith.constant dense<0.000000e+00> : vector<1xf32>
    %78 = vector.multi_reduction <add>, %77, %cst_33 [0] : vector<32x1xf32> to vector<1xf32>
    %79 = vector.shape_cast %78 : vector<1xf32> to vector<1x1xf32>
    %80 = vector.broadcast %79 : vector<1x1xf32> to vector<32x1xf32>
    %81 = arith.divf %77, %80 : vector<32x1xf32>
    %82 = vector.broadcast %81 : vector<32x1xf32> to vector<32x32xf32>
    %83 = arith.mulf %1, %82 : vector<32x32xf32>
    %c0_34 = arith.constant 0 : index
    %c0_35 = arith.constant 0 : index
    %84 = vector.load %arg8[%c0_34, %c0_35] : memref<32x32xf32, #tpu.memory_space<vmem>>, vector<32x32xf32>
    %cst_36 = arith.constant dense<0.000000e+00> : vector<32x32xf32>
    %85 = tpu.matmul %83, %84, %cst_36 {dimension_numbers = #tpu.dot_dimension_numbers<[1], [0], [0], [1], [0, 0, 1, 1], [], []>} : vector<32x32xf32>, vector<32x32xf32>, vector<32x32xf32> -> vector<32x32xf32>
    %c0_37 = arith.constant 0 : index
    %c0_38 = arith.constant 0 : index
    %86 = vector.load %arg9[%c0_37, %c0_38] : memref<1x32xf32, #tpu.memory_space<vmem>>, vector<1x32xf32>
    %87 = vector.broadcast %86 : vector<1x32xf32> to vector<32x32xf32>
    %88 = arith.addf %85, %87 : vector<32x32xf32>
    %c0_39 = arith.constant 0 : index
    %c0_40 = arith.constant 0 : index
    %c0_41 = arith.constant 0 : index
    %89 = vector.load %arg10[%c0_39, %c0_40, %c0_41] : memref<1x32x32xf32, #tpu.memory_space<vmem>>, vector<1x32x32xf32>
    %90 = vector.shape_cast %89 : vector<1x32x32xf32> to vector<32x32xf32>
    %91 = vector.shape_cast %88 : vector<32x32xf32> to vector<1x32x32xf32>
    tpu.vector_store %arg10[%c0_39, %c0_40, %c0_41], %91 {strides = array<i32>} : memref<1x32x32xf32, #tpu.memory_space<vmem>>, vector<1x32x32xf32>,
    return
  }
  func.func @transform_0(%arg0: i32) -> (i32, i32, i32) {
    %c0_i32 = arith.constant 0 : i32
    %c0_i32_0 = arith.constant 0 : i32
    %c0_i32_1 = arith.constant 0 : i32
    return %arg0, %c0_i32, %c0_i32_0 : i32, i32, i32
  }
  func.func @transform_1(%arg0: i32) -> (i32, i32) {
    %c0_i32 = arith.constant 0 : i32
    %c0_i32_0 = arith.constant 0 : i32
    %c0_i32_1 = arith.constant 0 : i32
    return %c0_i32, %c0_i32_0 : i32, i32
  }
  func.func @transform_2(%arg0: i32) -> (i32, i32) {
    %c0_i32 = arith.constant 0 : i32
    %c0_i32_0 = arith.constant 0 : i32
    %c0_i32_1 = arith.constant 0 : i32
    return %c0_i32, %c0_i32_0 : i32, i32
  }
  func.func @transform_3(%arg0: i32) -> (i32, i32) {
    %c0_i32 = arith.constant 0 : i32
    %c0_i32_0 = arith.constant 0 : i32
    %c0_i32_1 = arith.constant 0 : i32
    return %c0_i32, %c0_i32_0 : i32, i32
  }
  func.func @transform_4(%arg0: i32) -> (i32, i32) {
    %c0_i32 = arith.constant 0 : i32
    %c0_i32_0 = arith.constant 0 : i32
    %c0_i32_1 = arith.constant 0 : i32
    return %c0_i32, %c0_i32_0 : i32, i32
  }
  func.func @transform_5(%arg0: i32) -> (i32, i32) {
    %c0_i32 = arith.constant 0 : i32
    %c0_i32_0 = arith.constant 0 : i32
    %c0_i32_1 = arith.constant 0 : i32
    return %c0_i32, %c0_i32_0 : i32, i32
  }
  func.func @transform_6(%arg0: i32) -> (i32, i32) {
    %c0_i32 = arith.constant 0 : i32
    %c0_i32_0 = arith.constant 0 : i32
    %c0_i32_1 = arith.constant 0 : i32
    return %c0_i32, %c0_i32_0 : i32, i32
  }
  func.func @transform_7(%arg0: i32) -> (i32, i32) {
    %c0_i32 = arith.constant 0 : i32
    %c0_i32_0 = arith.constant 0 : i32
    %c0_i32_1 = arith.constant 0 : i32
    return %c0_i32, %c0_i32_0 : i32, i32
  }
  func.func @transform_8(%arg0: i32) -> (i32, i32) {
    %c0_i32 = arith.constant 0 : i32
    %c0_i32_0 = arith.constant 0 : i32
    %c0_i32_1 = arith.constant 0 : i32
    return %c0_i32, %c0_i32_0 : i32, i32
  }
  func.func @transform_9(%arg0: i32) -> (i32, i32, i32) {
    %c0_i32 = arith.constant 0 : i32
    %c0_i32_0 = arith.constant 0 : i32
    %c0_i32_1 = arith.constant 0 : i32
    return %arg0, %c0_i32, %c0_i32_0 : i32, i32, i32
  }
}

module attributes {stable_mosaic.version = 11 : i64} {
  func.func @_ln_kernel(%arg0: i32, %arg1: memref<64x32xf32, #tpu.memory_space<vmem>>, %arg2: memref<1x32xf32, #tpu.memory_space<vmem>>, %arg3: memref<1x32xf32, #tpu.memory_space<vmem>>, %arg4: memref<64x32xf32, #tpu.memory_space<vmem>>) attributes {dimension_semantics = [#tpu.dimension_semantics<parallel>], iteration_bounds = array<i64: 1>, scalar_prefetch = 0 : i64, scratch_operands = 0 : i64, tpu.core_type = #tpu.core_type<tc>, window_params = [{transform_indices = @transform_0, window_bounds = array<i64: 64, 32>}, {pipeline_mode = #tpu.pipeline_mode<synchronous>, transform_indices = @transform_1, window_bounds = array<i64: 1, 32>}, {pipeline_mode = #tpu.pipeline_mode<synchronous>, transform_indices = @transform_2, window_bounds = array<i64: 1, 32>}, {transform_indices = @transform_3, window_bounds = array<i64: 64, 32>}]} {
    %c0 = arith.constant 0 : index
    %c0_0 = arith.constant 0 : index
    %0 = vector.load %arg1[%c0, %c0_0] : memref<64x32xf32, #tpu.memory_space<vmem>>, vector<64x32xf32>
    %cst = arith.constant dense<0.000000e+00> : vector<64xf32>
    %1 = vector.multi_reduction <add>, %0, %cst [1] : vector<64x32xf32> to vector<64xf32>
    %2 = vector.shape_cast %1 : vector<64xf32> to vector<64x1xf32>
    %cst_1 = arith.constant 3.200000e+01 : f32
    %3 = vector.broadcast %cst_1 : f32 to vector<64x1xf32>
    %4 = arith.divf %2, %3 : vector<64x1xf32>
    %5 = vector.broadcast %4 : vector<64x1xf32> to vector<64x32xf32>
    %6 = arith.subf %0, %5 : vector<64x32xf32>
    %7 = arith.mulf %6, %6 : vector<64x32xf32>
    %cst_2 = arith.constant dense<0.000000e+00> : vector<64xf32>
    %8 = vector.multi_reduction <add>, %7, %cst_2 [1] : vector<64x32xf32> to vector<64xf32>
    %9 = vector.shape_cast %8 : vector<64xf32> to vector<64x1xf32>
    %cst_3 = arith.constant 3.200000e+01 : f32
    %10 = vector.broadcast %cst_3 : f32 to vector<64x1xf32>
    %11 = arith.divf %9, %10 : vector<64x1xf32>
    %cst_4 = arith.constant 9.99999974E-6 : f32
    %12 = vector.broadcast %cst_4 : f32 to vector<64x1xf32>
    %13 = arith.addf %11, %12 : vector<64x1xf32>
    %14 = math.rsqrt %13 : vector<64x1xf32>
    %15 = vector.broadcast %14 : vector<64x1xf32> to vector<64x32xf32>
    %16 = arith.mulf %6, %15 : vector<64x32xf32>
    %c0_5 = arith.constant 0 : index
    %c0_6 = arith.constant 0 : index
    %17 = vector.load %arg2[%c0_5, %c0_6] : memref<1x32xf32, #tpu.memory_space<vmem>>, vector<1x32xf32>
    %18 = vector.broadcast %17 : vector<1x32xf32> to vector<64x32xf32>
    %19 = arith.mulf %16, %18 : vector<64x32xf32>
    %c0_7 = arith.constant 0 : index
    %c0_8 = arith.constant 0 : index
    %20 = vector.load %arg3[%c0_7, %c0_8] : memref<1x32xf32, #tpu.memory_space<vmem>>, vector<1x32xf32>
    %21 = vector.broadcast %20 : vector<1x32xf32> to vector<64x32xf32>
    %22 = arith.addf %19, %21 : vector<64x32xf32>
    %c0_9 = arith.constant 0 : index
    %c0_10 = arith.constant 0 : index
    %23 = vector.load %arg4[%c0_9, %c0_10] : memref<64x32xf32, #tpu.memory_space<vmem>>, vector<64x32xf32>
    tpu.vector_store %arg4[%c0_9, %c0_10], %22 {strides = array<i32>} : memref<64x32xf32, #tpu.memory_space<vmem>>, vector<64x32xf32>,
    return
  }
  func.func @transform_0(%arg0: i32) -> (i32, i32) {
    %c0_i32 = arith.constant 0 : i32
    %c0_i32_0 = arith.constant 0 : i32
    return %arg0, %c0_i32 : i32, i32
  }
  func.func @transform_1(%arg0: i32) -> (i32, i32) {
    %c0_i32 = arith.constant 0 : i32
    %c0_i32_0 = arith.constant 0 : i32
    %c0_i32_1 = arith.constant 0 : i32
    return %c0_i32, %c0_i32_0 : i32, i32
  }
  func.func @transform_2(%arg0: i32) -> (i32, i32) {
    %c0_i32 = arith.constant 0 : i32
    %c0_i32_0 = arith.constant 0 : i32
    %c0_i32_1 = arith.constant 0 : i32
    return %c0_i32, %c0_i32_0 : i32, i32
  }
  func.func @transform_3(%arg0: i32) -> (i32, i32) {
    %c0_i32 = arith.constant 0 : i32
    %c0_i32_0 = arith.constant 0 : i32
    return %arg0, %c0_i32 : i32, i32
  }
}

</mosaic_0001>

<bundles_post_ra>
// kernel: mixer_model_forward.15
= control target key start
LH: loop header
LB: loop body
LE: loop exit
PB: predicated region body
PF: predicated region fallthrough
CT: control target
= control target key end

     0   :  { %vm22_vm0 = vcmask 261120   ;;  %s326_s0 = inlined_call_operand.vmem [shape: f32[64,32], index: 0, kind: input, shape index: {}]   ;;  %s327_s1 = inlined_call_operand.vmem [shape: f32[1,32], index: 1, kind: input, shape index: {}]   ;;  %s328_s2 = inlined_call_operand.vmem [shape: f32[1,32], index: 2, kind: input, shape index: {}]   ;;  %s329_s3 = inlined_call_operand.vmem [shape: f32[64,32], index: 3, kind: output, shape index: {}]  }
   0x1   :  { %v14_v0 = vld [vmem:[%s326_s0] sm:$0xff]  ;;  %v16_v1 = vld [vmem:[%s326_s0 + $0x10] sm:$0xff]  ;;  %v15_v2 = vld [vmem:[%s326_s0 + $0x8] sm:$0xff] }
   0x2   :  { %v23_v3 = vsel %vm22_vm0, %v14_v0, 0.0  ;;  %v29_v4 = vsel %vm22_vm0, %v16_v1, 0.0  ;;  %v17_v5 = vld [vmem:[%s326_s0 + $0x18] sm:$0xff]  ;;  %v26_v6 = vsel %vm22_vm0, %v15_v2, 0.0  ;;  %v18_v8 = vld [vmem:[%s326_s0 + $0x20] sm:$0xff]  ;;  %v19_v9 = vld [vmem:[%s326_s0 + $0x28] sm:$0xff] }
   0x3   :  { %24 = vadd.xlane.f32.xlu0 %v23_v3  ;;  %30 = vadd.xlane.f32.xlu1 %v29_v4  ;;  %v32_v7 = vsel %vm22_vm0, %v17_v5, 0.0  ;;  %v35_v10 = vsel %vm22_vm0, %v18_v8, 0.0  ;;  %v38_v11 = vsel %vm22_vm0, %v19_v9, 0.0  ;;  %v20_v12 = vld [vmem:[%s326_s0 + $0x30] sm:$0xff]  ;;  %v21_v13 = vld [vmem:[%s326_s0 + $0x38] sm:$0xff] }
   0x4   :  { %v41_v14 = vsel %vm22_vm0, %v20_v12, 0.0  ;;  %v44_v15 = vsel %vm22_vm0, %v21_v13, 0.0 }
   0x7   :  { %27 = vadd.xlane.f32.xlu0 %v26_v6  ;;  %33 = vadd.xlane.f32.xlu1 %v32_v7 }
   0xb   :  { %36 = vadd.xlane.f32.xlu0 %v35_v10  ;;  %39 = vadd.xlane.f32.xlu1 %v38_v11 }
   0xf   :  { %42 = vadd.xlane.f32.xlu0 %v41_v14  ;;  %45 = vadd.xlane.f32.xlu1 %v44_v15 }
  0x8c   :  { %v25_v16 = vpop.xlane.xlu0 %24  ;;  %v31_v17 = vpop.xlane.xlu1 %30 }
  0x8d   :  { %v48_v18 = vmul.f32 0.03125, %v25_v16  ;;  %v50_v19 = vmul.f32 0.03125, %v31_v17  ;;  %v170_v16 = vld [vmem:[%s327_s1] ss:$0 sm:$0xff] }
  0x8f   :  { %v240_v20 = vsub.f32 %v14_v0, %v48_v18  ;;  %v242_v21 = vsub.f32 %v16_v1, %v50_v19  ;;  %v171_v19 = vld [vmem:[%s328_s2] ss:$0 sm:$0xff] }
  0x90   :  { %v28_v22 = vpop.xlane.xlu0 %27  ;;  %v34_v23 = vpop.xlane.xlu1 %33 }
  0x91   :  { %v49_v24 = vmul.f32 0.03125, %v28_v22  ;;  %v51_v25 = vmul.f32 0.03125, %v34_v23  ;;  %v64_v26 = vmul.f32 %v240_v20, %v240_v20  ;;  %v66_v27 = vmul.f32 %v242_v21, %v242_v21 }
  0x93   :  { %v248_v28 = vsub.f32 %v15_v2, %v49_v24  ;;  %v250_v29 = vsub.f32 %v17_v5, %v51_v25  ;;  %v72_v30 = vsel %vm22_vm0, %v64_v26, 0.0  ;;  %v78_v33 = vsel %vm22_vm0, %v66_v27, 0.0 }
  0x94   :  { %73 = vadd.xlane.f32.xlu0 %v72_v30  ;;  %v37_v31 = vpop.xlane.xlu0 %36  ;;  %v40_v32 = vpop.xlane.xlu1 %39 }
  0x95   :  { %v52_v34 = vmul.f32 0.03125, %v37_v31  ;;  %v53_v35 = vmul.f32 0.03125, %v40_v32  ;;  %v65_v36 = vmul.f32 %v248_v28, %v248_v28  ;;  %v67_v37 = vmul.f32 %v250_v29, %v250_v29 }
  0x97   :  { %v258_v38 = vsub.f32 %v18_v8, %v52_v34  ;;  %v260_v39 = vsub.f32 %v19_v9, %v53_v35  ;;  %v75_v40 = vsel %vm22_vm0, %v65_v36, 0.0  ;;  %v81_v43 = vsel %vm22_vm0, %v67_v37, 0.0 }
  0x98   :  { %79 = vadd.xlane.f32.xlu0 %v78_v33  ;;  %76 = vadd.xlane.f32.xlu1 %v75_v40  ;;  %v43_v41 = vpop.xlane.xlu0 %42  ;;  %v46_v42 = vpop.xlane.xlu1 %45 }
  0x99   :  { %v54_v44 = vmul.f32 0.03125, %v43_v41  ;;  %v55_v45 = vmul.f32 0.03125, %v46_v42  ;;  %v68_v46 = vmul.f32 %v258_v38, %v258_v38  ;;  %v69_v47 = vmul.f32 %v260_v39, %v260_v39 }
  0x9b   :  { %v268_v48 = vsub.f32 %v20_v12, %v54_v44  ;;  %v270_v49 = vsub.f32 %v21_v13, %v55_v45  ;;  %v84_v50 = vsel %vm22_vm0, %v68_v46, 0.0  ;;  %v87_v51 = vsel %vm22_vm0, %v69_v47, 0.0 }
  0x9c   :  { %82 = vadd.xlane.f32.xlu1 %v81_v43  ;;  %85 = vadd.xlane.f32.xlu0 %v84_v50 }
  0x9d   :  { %v70_v52 = vmul.f32 %v268_v48, %v268_v48  ;;  %v71_v53 = vmul.f32 %v270_v49, %v270_v49 }
  0x9f   :  { %v90_v54 = vsel %vm22_vm0, %v70_v52, 0.0  ;;  %v93_v55 = vsel %vm22_vm0, %v71_v53, 0.0 }
  0xa0   :  { %88 = vadd.xlane.f32.xlu1 %v87_v51  ;;  %91 = vadd.xlane.f32.xlu0 %v90_v54 }
  0xa4   :  { %94 = vadd.xlane.f32.xlu1 %v93_v55 }
 0x11d   :  { %v74_v56 = vpop.xlane.xlu0 %73 }
 0x11e   :  { %v96_v57 = vmul.f32 0.03125, %v74_v56 }
 0x120   :  { %v104_v58 = vadd.f32 1e-05, %v96_v57 }
 0x121   :  { %v77_v59 = vpop.xlane.xlu1 %76  ;;  %v80_v60 = vpop.xlane.xlu0 %79 }
 0x122   :  { %172 = vrsqrt.f32 %v104_v58  ;;  %v97_v61 = vmul.f32 0.03125, %v77_v59  ;;  %v98_v62 = vmul.f32 0.03125, %v80_v60 }
 0x124   :  { %v105_v63 = vadd.f32 1e-05, %v97_v61  ;;  %v106_v0 = vadd.f32 1e-05, %v98_v62 }
 0x125   :  { %v83_v1 = vpop.xlane.xlu1 %82  ;;  %v86_v2 = vpop.xlane.xlu0 %85 }
 0x126   :  { %174 = vrsqrt.f32 %v105_v63  ;;  %v99_v3 = vmul.f32 0.03125, %v83_v1  ;;  %v100_v4 = vmul.f32 0.03125, %v86_v2 }
 0x127   :  { %176 = vrsqrt.f32 %v106_v0 }
 0x128   :  { %v107_v5 = vadd.f32 1e-05, %v99_v3  ;;  %v108_v6 = vadd.f32 1e-05, %v100_v4 }
 0x129   :  { %v89_v7 = vpop.xlane.xlu1 %88  ;;  %v92_v8 = vpop.xlane.xlu0 %91 }
 0x12a   :  { %178 = vrsqrt.f32 %v107_v5  ;;  %v101_v9 = vmul.f32 0.03125, %v89_v7  ;;  %v102_v10 = vmul.f32 0.03125, %v92_v8 }
 0x12b   :  { %180 = vrsqrt.f32 %v108_v6 }
 0x12c   :  { %v109_v11 = vadd.f32 1e-05, %v101_v9  ;;  %v110_v12 = vadd.f32 1e-05, %v102_v10 }
 0x12d   :  { %v95_v13 = vpop.xlane.xlu1 %94 }
 0x12e   :  { %182 = vrsqrt.f32 %v109_v11  ;;  %v103_v14 = vmul.f32 0.03125, %v95_v13 }
 0x12f   :  { %v173_v15 = vpop.eup %172  ;;  %184 = vrsqrt.f32 %v110_v12 }
 0x130   :  { %v120_v17 = vmul.f32 %v173_v15, %v240_v20  ;;  %v111_v18 = vadd.f32 1e-05, %v103_v14 }
 0x132   :  { %v135_v22 = vmul.f32 %v170_v16, %v120_v17  ;;  %186 = vrsqrt.f32 %v111_v18 }
 0x133   :  { %v175_v23 = vpop.eup %174 }
 0x134   :  { %v177_v24 = vpop.eup %176  ;;  %v150_v25 = vadd.f32 %v171_v19, %v135_v22  ;;  %v121_v26 = vmul.f32 %v175_v23, %v248_v28 }
 0x135   :  { %v122_v27 = vmul.f32 %v177_v24, %v242_v21 }
 0x136   :  { %158 = vst.msk [vmem:[%s329_s3] sm:$0xff] %vm22_vm0, %v150_v25  ;;  %v136_v20 = vmul.f32 %v170_v16, %v121_v26 }
 0x137   :  { %v179_v30 = vpop.eup %178  ;;  %v137_v31 = vmul.f32 %v170_v16, %v122_v27 }
 0x138   :  { %v181_v32 = vpop.eup %180  ;;  %v151_v33 = vadd.f32 %v171_v19, %v136_v20  ;;  %v123_v34 = vmul.f32 %v179_v30, %v250_v29 }
 0x139   :  { %v152_v35 = vadd.f32 %v171_v19, %v137_v31  ;;  %v124_v36 = vmul.f32 %v181_v32, %v258_v38 }
 0x13a   :  { %159 = vst.msk [vmem:[%s329_s3 + $0x8] sm:$0xff] %vm22_vm0, %v151_v33  ;;  %v138_v21 = vmul.f32 %v170_v16, %v123_v34 }
 0x13b   :  { %v183_v28 = vpop.eup %182  ;;  %160 = vst.msk [vmem:[%s329_s3 + $0x10] sm:$0xff] %vm22_vm0, %v152_v35  ;;  %v139_v37 = vmul.f32 %v170_v16, %v124_v36 }
 0x13c   :  { %v185_v40 = vpop.eup %184  ;;  %v153_v41 = vadd.f32 %v171_v19, %v138_v21  ;;  %v125_v29 = vmul.f32 %v183_v28, %v260_v39 }
 0x13d   :  { %v154_v42 = vadd.f32 %v171_v19, %v139_v37  ;;  %v126_v38 = vmul.f32 %v185_v40, %v268_v48 }
 0x13e   :  { %161 = vst.msk [vmem:[%s329_s3 + $0x18] sm:$0xff] %vm22_vm0, %v153_v41  ;;  %v140_v43 = vmul.f32 %v170_v16, %v125_v29 }
 0x13f   :  { %v187_v44 = vpop.eup %186  ;;  %162 = vst.msk [vmem:[%s329_s3 + $0x20] sm:$0xff] %vm22_vm0, %v154_v42  ;;  %v141_v45 = vmul.f32 %v170_v16, %v126_v38 }
 0x140   :  { %v155_v46 = vadd.f32 %v171_v19, %v140_v43  ;;  %v127_v47 = vmul.f32 %v187_v44, %v270_v49 }
 0x141   :  { %v156_v39 = vadd.f32 %v171_v19, %v141_v45 }
 0x142   :  { %163 = vst.msk [vmem:[%s329_s3 + $0x28] sm:$0xff] %vm22_vm0, %v155_v46  ;;  %v142_v48 = vmul.f32 %v170_v16, %v127_v47 }
 0x143   :  { %164 = vst.msk [vmem:[%s329_s3 + $0x30] sm:$0xff] %vm22_vm0, %v156_v39 }
 0x144   :  { %v157_v50 = vadd.f32 %v171_v19, %v142_v48 }
 0x146   :  { %165 = vst.msk [vmem:[%s329_s3 + $0x38] sm:$0xff] %vm22_vm0, %v157_v50 }

// kernel: mixer_model_forward.16
= control target key start
LH: loop header
LB: loop body
LE: loop exit
PB: predicated region body
PF: predicated region fallthrough
CT: control target
= control target key end

     0   :  { %s1513_s12 = smov 0   ;;  %s2567_s0 = inlined_call_operand.vmem [shape: f32[1024,32], index: 0, kind: input, shape index: {}]   ;;  %s2568_s1 = inlined_call_operand.vmem [shape: f32[1,32], index: 1, kind: input, shape index: {}]   ;;  %s2569_s2 = inlined_call_operand.vmem [shape: f32[1,32], index: 2, kind: input, shape index: {}]   ;;  %s2570_s3 = inlined_call_operand.vmem [shape: f32[1024,32], index: 3, kind: output, shape index: {}]  }
   0x1 LB: > { %s1334_s13 = sadd.s32 4294967295, %s1491_s12   ;;  %p1338_p0 = scmp.ge.s32.totalorder %s1491_s12, 1  ;;  %s1491_s12 = sphi %s1513_s12, %s13_s12  }
   0x2   : > { %p138_p1 = scmp.lt.s32.totalorder %s1491_s12, 3 }
   0x4   : > { %p139_p2 = pnand %p1338_p0, %p138_p1 }
   0x6   : > { %142 = sbr.rel (%p139_p2) target bundleno = 455 (0x1c7), region = 32 }
   0xb   : > { %s1339_s14 = sshll.u32 %s1334_s13, 6  ;;  %vm238_vm0 = vcmask 261120  }
   0xc   : > { %p163_p3 = scmp.lt.s32.totalorder %s1339_s14, 127 }
   0xe   : > { %s2668_s14 = smov (!%p163_p3, %s1339_s14), 127 }
   0xf   : > { %s1340_s15 = sshll.u32 %s2668_s14, 3 }
  0x10   : > { %s1529_s18 = scalar_lea.vmem %s2567_s0, %s1340_s15  ;;  %s2252_s25 = scalar_lea.vmem %s2570_s3, %s1340_s15 }
  0x11   : > { %v1532_v0 = vld [vmem:[%s1529_s18] sm:$0xff]  ;;  %v1535_v1 = vld [vmem:[%s1529_s18 + $0x10] sm:$0xff]  ;;  %v1538_v2 = vld [vmem:[%s1529_s18 + $0x8] sm:$0xff] }
  0x12   : > { %v239_v3 = vsel %vm238_vm0, %v1532_v0, 0.0  ;;  %v245_v4 = vsel %vm238_vm0, %v1535_v1, 0.0  ;;  %v1545_v5 = vld [vmem:[%s1529_s18 + $0x18] sm:$0xff]  ;;  %v242_v6 = vsel %vm238_vm0, %v1538_v2, 0.0  ;;  %v1552_v8 = vld [vmem:[%s1529_s18 + $0x20] sm:$0xff]  ;;  %v1555_v9 = vld [vmem:[%s1529_s18 + $0x28] sm:$0xff] }
  0x13   : > { %240 = vadd.xlane.f32.xlu0 %v239_v3  ;;  %246 = vadd.xlane.f32.xlu1 %v245_v4  ;;  %v248_v7 = vsel %vm238_vm0, %v1545_v5, 0.0  ;;  %v251_v10 = vsel %vm238_vm0, %v1552_v8, 0.0  ;;  %v254_v11 = vsel %vm238_vm0, %v1555_v9, 0.0  ;;  %v1562_v12 = vld [vmem:[%s1529_s18 + $0x30] sm:$0xff]  ;;  %v1565_v13 = vld [vmem:[%s1529_s18 + $0x38] sm:$0xff]  ;;  %v1572_v16 = vld [vmem:[%s1529_s18 + $0x40] sm:$0xff] }
  0x14   : > { %v257_v14 = vsel %vm238_vm0, %v1562_v12, 0.0  ;;  %v260_v15 = vsel %vm238_vm0, %v1565_v13, 0.0  ;;  %v1575_v17 = vld [vmem:[%s1529_s18 + $0x48] sm:$0xff]  ;;  %v263_v18 = vsel %vm238_vm0, %v1572_v16, 0.0  ;;  %v1582_v20 = vld [vmem:[%s1529_s18 + $0x50] sm:$0xff]  ;;  %v1585_v21 = vld [vmem:[%s1529_s18 + $0x58] sm:$0xff] }
  0x15   : > { %v266_v19 = vsel %vm238_vm0, %v1575_v17, 0.0  ;;  %v269_v22 = vsel %vm238_vm0, %v1582_v20, 0.0  ;;  %v272_v23 = vsel %vm238_vm0, %v1585_v21, 0.0  ;;  %v1592_v24 = vld [vmem:[%s1529_s18 + $0x60] sm:$0xff]  ;;  %v1595_v25 = vld [vmem:[%s1529_s18 + $0x68] sm:$0xff]  ;;  %v1602_v28 = vld [vmem:[%s1529_s18 + $0x70] sm:$0xff] }
  0x16   : > { %v275_v26 = vsel %vm238_vm0, %v1592_v24, 0.0  ;;  %v278_v27 = vsel %vm238_vm0, %v1595_v25, 0.0  ;;  %v1605_v29 = vld [vmem:[%s1529_s18 + $0x78] sm:$0xff]  ;;  %v281_v30 = vsel %vm238_vm0, %v1602_v28, 0.0  ;;  %v1612_v32 = vld [vmem:[%s1529_s18 + $0x80] sm:$0xff]  ;;  %v1615_v33 = vld [vmem:[%s1529_s18 + $0x88] sm:$0xff] }
  0x17   : > { %243 = vadd.xlane.f32.xlu0 %v242_v6  ;;  %249 = vadd.xlane.f32.xlu1 %v248_v7  ;;  %v284_v31 = vsel %vm238_vm0, %v1605_v29, 0.0  ;;  %v287_v34 = vsel %vm238_vm0, %v1612_v32, 0.0  ;;  %v290_v35 = vsel %vm238_vm0, %v1615_v33, 0.0  ;;  %v1622_v36 = vld [vmem:[%s1529_s18 + $0x90] sm:$0xff]  ;;  %v1625_v37 = vld [vmem:[%s1529_s18 + $0x98] sm:$0xff]  ;;  %v1632_v40 = vld [vmem:[%s1529_s18 + $0xa0] sm:$0xff] }
  0x18   : > { %v293_v38 = vsel %vm238_vm0, %v1622_v36, 0.0  ;;  %v296_v39 = vsel %vm238_vm0, %v1625_v37, 0.0  ;;  %v1635_v41 = vld [vmem:[%s1529_s18 + $0xa8] sm:$0xff]  ;;  %v299_v42 = vsel %vm238_vm0, %v1632_v40, 0.0  ;;  %v1642_v44 = vld [vmem:[%s1529_s18 + $0xb0] sm:$0xff]  ;;  %v1645_v45 = vld [vmem:[%s1529_s18 + $0xb8] sm:$0xff] }
  0x19   : > { %v302_v43 = vsel %vm238_vm0, %v1635_v41, 0.0  ;;  %v305_v46 = vsel %vm238_vm0, %v1642_v44, 0.0  ;;  %v308_v47 = vsel %vm238_vm0, %v1645_v45, 0.0  ;;  %v1652_v48 = vld [vmem:[%s1529_s18 + $0xc0] sm:$0xff]  ;;  %v1655_v49 = vld [vmem:[%s1529_s18 + $0xc8] sm:$0xff]  ;;  %v1662_v52 = vld [vmem:[%s1529_s18 + $0xd0] sm:$0xff] }
  0x1a   : > { %v311_v50 = vsel %vm238_vm0, %v1652_v48, 0.0  ;;  %v314_v51 = vsel %vm238_vm0, %v1655_v49, 0.0  ;;  %v1665_v53 = vld [vmem:[%s1529_s18 + $0xd8] sm:$0xff]  ;;  %v317_v54 = vsel %vm238_vm0, %v1662_v52, 0.0  ;;  %v1672_v56 = vld [vmem:[%s1529_s18 + $0xe0] sm:$0xff]  ;;  %v1675_v57 = vld [vmem:[%s1529_s18 + $0xe8] sm:$0xff] }
  0x1b   : > { %252 = vadd.xlane.f32.xlu0 %v251_v10  ;;  %255 = vadd.xlane.f32.xlu1 %v254_v11  ;;  %v320_v55 = vsel %vm238_vm0, %v1665_v53, 0.0  ;;  %v323_v58 = vsel %vm238_vm0, %v1672_v56, 0.0  ;;  %v326_v59 = vsel %vm238_vm0, %v1675_v57, 0.0  ;;  %v1682_v60 = vld [vmem:[%s1529_s18 + $0xf0] sm:$0xff]  ;;  %v1685_v61 = vld [vmem:[%s1529_s18 + $0xf8] sm:$0xff]  ;;  %v1692_v3 = vld [vmem:[%s1529_s18 + $0x100] sm:$0xff] }
  0x1c   : > { %v329_v62 = vsel %vm238_vm0, %v1682_v60, 0.0  ;;  %v332_v63 = vsel %vm238_vm0, %v1685_v61, 0.0  ;;  %v1695_v4 = vld [vmem:[%s1529_s18 + $0x108] sm:$0xff]  ;;  %v335_v6 = vsel %vm238_vm0, %v1692_v3, 0.0  ;;  %v1702_v10 = vld [vmem:[%s1529_s18 + $0x110] sm:$0xff]  ;;  %v1705_v11 = vld [vmem:[%s1529_s18 + $0x118] sm:$0xff] }
  0x1d   : > { %v338_v7 = vsel %vm238_vm0, %v1695_v4, 0.0 }
  0x1f   : > { %258 = vadd.xlane.f32.xlu0 %v257_v14  ;;  %261 = vadd.xlane.f32.xlu1 %v260_v15  ;;  %v341_v14 = vsel %vm238_vm0, %v1702_v10, 0.0  ;;  %v344_v15 = vsel %vm238_vm0, %v1705_v11, 0.0 }
  0x23   : > { %264 = vadd.xlane.f32.xlu0 %v263_v18  ;;  %267 = vadd.xlane.f32.xlu1 %v266_v19  ;;  %v1712_v18 = vld [vmem:[%s1529_s18 + $0x120] sm:$0xff]  ;;  %v1715_v19 = vld [vmem:[%s1529_s18 + $0x128] sm:$0xff] }
  0x27   : > { %270 = vadd.xlane.f32.xlu0 %v269_v22  ;;  %273 = vadd.xlane.f32.xlu1 %v272_v23  ;;  %v347_v22 = vsel %vm238_vm0, %v1712_v18, 0.0  ;;  %v350_v23 = vsel %vm238_vm0, %v1715_v19, 0.0 }
  0x2b   : > { %276 = vadd.xlane.f32.xlu0 %v275_v26  ;;  %279 = vadd.xlane.f32.xlu1 %v278_v27  ;;  %v1722_v26 = vld [vmem:[%s1529_s18 + $0x130] sm:$0xff]  ;;  %v1725_v27 = vld [vmem:[%s1529_s18 + $0x138] sm:$0xff] }
  0x2f   : > { %282 = vadd.xlane.f32.xlu0 %v281_v30  ;;  %285 = vadd.xlane.f32.xlu1 %v284_v31  ;;  %v353_v30 = vsel %vm238_vm0, %v1722_v26, 0.0  ;;  %v356_v31 = vsel %vm238_vm0, %v1725_v27, 0.0 }
  0x33   : > { %288 = vadd.xlane.f32.xlu0 %v287_v34  ;;  %291 = vadd.xlane.f32.xlu1 %v290_v35  ;;  %v1732_v34 = vld [vmem:[%s1529_s18 + $0x140] sm:$0xff]  ;;  %v1735_v35 = vld [vmem:[%s1529_s18 + $0x148] sm:$0xff] }
  0x37   : > { %294 = vadd.xlane.f32.xlu0 %v293_v38  ;;  %297 = vadd.xlane.f32.xlu1 %v296_v39  ;;  %v359_v38 = vsel %vm238_vm0, %v1732_v34, 0.0  ;;  %v362_v39 = vsel %vm238_vm0, %v1735_v35, 0.0 }
  0x3b   : > { %300 = vadd.xlane.f32.xlu0 %v299_v42  ;;  %303 = vadd.xlane.f32.xlu1 %v302_v43  ;;  %v1742_v42 = vld [vmem:[%s1529_s18 + $0x150] sm:$0xff]  ;;  %v1745_v43 = vld [vmem:[%s1529_s18 + $0x158] sm:$0xff] }
  0x3f   : > { %306 = vadd.xlane.f32.xlu0 %v305_v46  ;;  %309 = vadd.xlane.f32.xlu1 %v308_v47  ;;  %v365_v46 = vsel %vm238_vm0, %v1742_v42, 0.0  ;;  %v368_v47 = vsel %vm238_vm0, %v1745_v43, 0.0 }
  0x43   : > { %312 = vadd.xlane.f32.xlu0 %v311_v50  ;;  %315 = vadd.xlane.f32.xlu1 %v314_v51  ;;  %v1752_v50 = vld [vmem:[%s1529_s18 + $0x160] sm:$0xff]  ;;  %v1755_v51 = vld [vmem:[%s1529_s18 + $0x168] sm:$0xff] }
  0x47   : > { %318 = vadd.xlane.f32.xlu0 %v317_v54  ;;  %321 = vadd.xlane.f32.xlu1 %v320_v55  ;;  %v371_v54 = vsel %vm238_vm0, %v1752_v50, 0.0  ;;  %v374_v55 = vsel %vm238_vm0, %v1755_v51, 0.0 }
  0x4b   : > { %324 = vadd.xlane.f32.xlu0 %v323_v58  ;;  %327 = vadd.xlane.f32.xlu1 %v326_v59  ;;  %v1762_v58 = vld [vmem:[%s1529_s18 + $0x170] sm:$0xff]  ;;  %v1765_v59 = vld [vmem:[%s1529_s18 + $0x178] sm:$0xff] }
  0x4f   : > { %330 = vadd.xlane.f32.xlu0 %v329_v62  ;;  %333 = vadd.xlane.f32.xlu1 %v332_v63  ;;  %v377_v62 = vsel %vm238_vm0, %v1762_v58, 0.0  ;;  %v380_v63 = vsel %vm238_vm0, %v1765_v59, 0.0 }
  0x53   : > { %336 = vadd.xlane.f32.xlu0 %v335_v6  ;;  %339 = vadd.xlane.f32.xlu1 %v338_v7  ;;  %v1772_v6 = vld [vmem:[%s1529_s18 + $0x180] sm:$0xff]  ;;  %v1775_v7 = vld [vmem:[%s1529_s18 + $0x188] sm:$0xff] }
  0x57   : > { %342 = vadd.xlane.f32.xlu0 %v341_v14  ;;  %345 = vadd.xlane.f32.xlu1 %v344_v15  ;;  %v383_v14 = vsel %vm238_vm0, %v1772_v6, 0.0  ;;  %v386_v15 = vsel %vm238_vm0, %v1775_v7, 0.0 }
  0x5b   : > { %348 = vadd.xlane.f32.xlu0 %v347_v22  ;;  %351 = vadd.xlane.f32.xlu1 %v350_v23  ;;  %v1782_v22 = vld [vmem:[%s1529_s18 + $0x190] sm:$0xff]  ;;  %v1785_v23 = vld [vmem:[%s1529_s18 + $0x198] sm:$0xff] }
  0x5c   : > { %2603 = vst [vmem:[#allocation2_spill] sm:$0xff] %v1782_v22  ;;  %2604 = vst [vmem:[#allocation3_spill] sm:$0xff] %v1785_v23 }
  0x5f   : > { %354 = vadd.xlane.f32.xlu0 %v353_v30  ;;  %357 = vadd.xlane.f32.xlu1 %v356_v31  ;;  %v389_v30 = vsel %vm238_vm0, %v1782_v22, 0.0  ;;  %v392_v31 = vsel %vm238_vm0, %v1785_v23, 0.0 }
  0x63   : > { %360 = vadd.xlane.f32.xlu0 %v359_v38  ;;  %363 = vadd.xlane.f32.xlu1 %v362_v39  ;;  %v1792_v38 = vld [vmem:[%s1529_s18 + $0x1a0] sm:$0xff]  ;;  %v1795_v39 = vld [vmem:[%s1529_s18 + $0x1a8] sm:$0xff] }
  0x64   : > { %2605 = vst [vmem:[#allocation4_spill] sm:$0xff] %v1792_v38  ;;  %2606 = vst [vmem:[#allocation5_spill] sm:$0xff] %v1795_v39 }
  0x67   : > { %366 = vadd.xlane.f32.xlu0 %v365_v46  ;;  %369 = vadd.xlane.f32.xlu1 %v368_v47  ;;  %v395_v46 = vsel %vm238_vm0, %v1792_v38, 0.0  ;;  %v398_v47 = vsel %vm238_vm0, %v1795_v39, 0.0 }
  0x6b   : > { %372 = vadd.xlane.f32.xlu0 %v371_v54  ;;  %375 = vadd.xlane.f32.xlu1 %v374_v55  ;;  %v1802_v54 = vld [vmem:[%s1529_s18 + $0x1b0] sm:$0xff]  ;;  %v1805_v55 = vld [vmem:[%s1529_s18 + $0x1b8] sm:$0xff] }
  0x6c   : > { %2607 = vst [vmem:[#allocation6_spill] sm:$0xff] %v1802_v54  ;;  %2608 = vst [vmem:[#allocation7_spill] sm:$0xff] %v1805_v55 }
  0x6f   : > { %378 = vadd.xlane.f32.xlu0 %v377_v62  ;;  %381 = vadd.xlane.f32.xlu1 %v380_v63  ;;  %v401_v62 = vsel %vm238_vm0, %v1802_v54, 0.0  ;;  %v404_v63 = vsel %vm238_vm0, %v1805_v55, 0.0  ;;  %v1835_v54 = vld [vmem:[%s1529_s18 + $0x1e8] sm:$0xff] }
  0x70   : > { %2614 = vst [vmem:[#allocation13_spill] sm:$0xff] %v1835_v54 }
  0x73   : > { %384 = vadd.xlane.f32.xlu0 %v383_v14  ;;  %387 = vadd.xlane.f32.xlu1 %v386_v15  ;;  %v1812_v14 = vld [vmem:[%s1529_s18 + $0x1c0] sm:$0xff]  ;;  %v1815_v15 = vld [vmem:[%s1529_s18 + $0x1c8] sm:$0xff] }
  0x74   : > { %2609 = vst [vmem:[#allocation8_spill] sm:$0xff] %v1812_v14  ;;  %2610 = vst [vmem:[#allocation9_spill] sm:$0xff] %v1815_v15 }
  0x77   : > { %390 = vadd.xlane.f32.xlu0 %v389_v30  ;;  %393 = vadd.xlane.f32.xlu1 %v392_v31  ;;  %v407_v30 = vsel %vm238_vm0, %v1812_v14, 0.0  ;;  %v410_v31 = vsel %vm238_vm0, %v1815_v15, 0.0  ;;  %v422_v14 = vsel %vm238_vm0, %v1835_v54, 0.0 }
  0x7b   : > { %396 = vadd.xlane.f32.xlu0 %v395_v46  ;;  %399 = vadd.xlane.f32.xlu1 %v398_v47  ;;  %v1822_v46 = vld [vmem:[%s1529_s18 + $0x1d0] sm:$0xff]  ;;  %v1825_v47 = vld [vmem:[%s1529_s18 + $0x1d8] sm:$0xff] }
  0x7c   : > { %2611 = vst [vmem:[#allocation10_spill] sm:$0xff] %v1822_v46  ;;  %2612 = vst [vmem:[#allocation11_spill] sm:$0xff] %v1825_v47  ;;  %v413_v55 = vsel %vm238_vm0, %v1822_v46, 0.0 }
  0x7f   : > { %402 = vadd.xlane.f32.xlu0 %v401_v62  ;;  %405 = vadd.xlane.f32.xlu1 %v404_v63  ;;  %v416_v62 = vsel %vm238_vm0, %v1825_v47, 0.0  ;;  %v1832_v63 = vld [vmem:[%s1529_s18 + $0x1e0] sm:$0xff] }
  0x80   : > { %2613 = vst [vmem:[#allocation12_spill] sm:$0xff] %v1832_v63  ;;  %v419_v15 = vsel %vm238_vm0, %v1832_v63, 0.0 }
  0x83   : > { %408 = vadd.xlane.f32.xlu0 %v407_v30  ;;  %411 = vadd.xlane.f32.xlu1 %v410_v31  ;;  %v1842_v30 = vld [vmem:[%s1529_s18 + $0x1f0] sm:$0xff]  ;;  %v1845_v31 = vld [vmem:[%s1529_s18 + $0x1f8] sm:$0xff] }
  0x84   : > { %2615 = vst [vmem:[#allocation14_spill] sm:$0xff] %v1842_v30  ;;  %v425_v47 = vsel %vm238_vm0, %v1842_v30, 0.0  ;;  %v428_v46 = vsel %vm238_vm0, %v1845_v31, 0.0 }
  0x87   : > { %414 = vadd.xlane.f32.xlu0 %v413_v55  ;;  %417 = vadd.xlane.f32.xlu1 %v416_v62 }
  0x8b   : > { %420 = vadd.xlane.f32.xlu0 %v419_v15  ;;  %423 = vadd.xlane.f32.xlu1 %v422_v14 }
  0x8f   : > { %426 = vadd.xlane.f32.xlu0 %v425_v47  ;;  %429 = vadd.xlane.f32.xlu1 %v428_v46 }
  0x9c   : > { %v241_v55 = vpop.xlane.xlu0 %240  ;;  %v247_v62 = vpop.xlane.xlu1 %246 }
  0x9d   : > { %v432_v63 = vmul.f32 0.03125, %v241_v55  ;;  %v434_v39 = vmul.f32 0.03125, %v247_v62 }
  0x9f   : > { %v1852_v54 = vsub.f32 %v1532_v0, %v432_v63  ;;  %v1855_v38 = vsub.f32 %v1535_v1, %v434_v39 }
  0xa0   : > { %v244_v15 = vpop.xlane.xlu0 %243  ;;  %v250_v14 = vpop.xlane.xlu1 %249 }
  0xa1   : > { %2616 = vst [vmem:[#allocation15_spill] sm:$0xff] %v1855_v38  ;;  %v433_v23 = vmul.f32 0.03125, %v244_v15  ;;  %v435_v22 = vmul.f32 0.03125, %v250_v14  ;;  %v560_v30 = vmul.f32 %v1852_v54, %v1852_v54  ;;  %v562_v46 = vmul.f32 %v1855_v38, %v1855_v38 }
  0xa3   : > { %v1862_v47 = vsub.f32 %v1538_v2, %v433_v23  ;;  %v1865_v55 = vsub.f32 %v1545_v5, %v435_v22  ;;  %v624_v0 = vsel %vm238_vm0, %v560_v30, 0.0  ;;  %v630_v63 = vsel %vm238_vm0, %v562_v46, 0.0 }
  0xa4   : > { %625 = vadd.xlane.f32.xlu0 %v624_v0  ;;  %v253_v1 = vpop.xlane.xlu0 %252  ;;  %v256_v39 = vpop.xlane.xlu1 %255 }
  0xa5   : > { %v436_v62 = vmul.f32 0.03125, %v253_v1  ;;  %v437_v15 = vmul.f32 0.03125, %v256_v39  ;;  %v561_v14 = vmul.f32 %v1862_v47, %v1862_v47  ;;  %v563_v38 = vmul.f32 %v1865_v55, %v1865_v55 }
  0xa7   : > { %v1874_v2 = vsub.f32 %v1552_v8, %v436_v62  ;;  %v1877_v5 = vsub.f32 %v1555_v9, %v437_v15  ;;  %v627_v22 = vsel %vm238_vm0, %v561_v14, 0.0  ;;  %v633_v46 = vsel %vm238_vm0, %v563_v38, 0.0 }
  0xa8   : > { %631 = vadd.xlane.f32.xlu0 %v630_v63  ;;  %628 = vadd.xlane.f32.xlu1 %v627_v22  ;;  %v259_v23 = vpop.xlane.xlu0 %258  ;;  %v262_v30 = vpop.xlane.xlu1 %261 }
  0xa9   : > { %v438_v0 = vmul.f32 0.03125, %v259_v23  ;;  %v439_v1 = vmul.f32 0.03125, %v262_v30  ;;  %v564_v39 = vmul.f32 %v1874_v2, %v1874_v2  ;;  %v565_v8 = vmul.f32 %v1877_v5, %v1877_v5 }
  0xab   : > { %v1886_v62 = vsub.f32 %v1562_v12, %v438_v0  ;;  %v1889_v9 = vsub.f32 %v1565_v13, %v439_v1  ;;  %v636_v63 = vsel %vm238_vm0, %v564_v39, 0.0  ;;  %v639_v14 = vsel %vm238_vm0, %v565_v8, 0.0 }
  0xac   : > { %634 = vadd.xlane.f32.xlu1 %v633_v46  ;;  %637 = vadd.xlane.f32.xlu0 %v636_v63  ;;  %v265_v15 = vpop.xlane.xlu0 %264  ;;  %v268_v38 = vpop.xlane.xlu1 %267 }
  0xad   : > { %v440_v22 = vmul.f32 0.03125, %v265_v15  ;;  %v441_v23 = vmul.f32 0.03125, %v268_v38  ;;  %v566_v30 = vmul.f32 %v1886_v62, %v1886_v62  ;;  %v567_v12 = vmul.f32 %v1889_v9, %v1889_v9 }
  0xaf   : > { %v1898_v0 = vsub.f32 %v1572_v16, %v440_v22  ;;  %v1901_v13 = vsub.f32 %v1575_v17, %v441_v23  ;;  %v642_v46 = vsel %vm238_vm0, %v566_v30, 0.0  ;;  %v645_v8 = vsel %vm238_vm0, %v567_v12, 0.0 }
  0xb0   : > { %640 = vadd.xlane.f32.xlu1 %v639_v14  ;;  %643 = vadd.xlane.f32.xlu0 %v642_v46  ;;  %v271_v1 = vpop.xlane.xlu0 %270  ;;  %v274_v39 = vpop.xlane.xlu1 %273 }
  0xb1   : > { %v442_v63 = vmul.f32 0.03125, %v271_v1  ;;  %v443_v15 = vmul.f32 0.03125, %v274_v39  ;;  %v568_v38 = vmul.f32 %v1898_v0, %v1898_v0  ;;  %v569_v16 = vmul.f32 %v1901_v13, %v1901_v13 }
  0xb3   : > { %v1910_v22 = vsub.f32 %v1582_v20, %v442_v63  ;;  %v1913_v17 = vsub.f32 %v1585_v21, %v443_v15  ;;  %v648_v14 = vsel %vm238_vm0, %v568_v38, 0.0  ;;  %v651_v12 = vsel %vm238_vm0, %v569_v16, 0.0 }
  0xb4   : > { %646 = vadd.xlane.f32.xlu1 %v645_v8  ;;  %649 = vadd.xlane.f32.xlu0 %v648_v14  ;;  %v277_v23 = vpop.xlane.xlu0 %276  ;;  %v280_v30 = vpop.xlane.xlu1 %279 }
  0xb5   : > { %v444_v46 = vmul.f32 0.03125, %v277_v23  ;;  %v445_v1 = vmul.f32 0.03125, %v280_v30  ;;  %v570_v39 = vmul.f32 %v1910_v22, %v1910_v22  ;;  %v571_v20 = vmul.f32 %v1913_v17, %v1913_v17 }
  0xb7   : > { %v1922_v63 = vsub.f32 %v1592_v24, %v444_v46  ;;  %v1925_v21 = vsub.f32 %v1595_v25, %v445_v1  ;;  %v654_v8 = vsel %vm238_vm0, %v570_v39, 0.0  ;;  %v657_v16 = vsel %vm238_vm0, %v571_v20, 0.0 }
  0xb8   : > { %652 = vadd.xlane.f32.xlu1 %v651_v12  ;;  %655 = vadd.xlane.f32.xlu0 %v654_v8  ;;  %v283_v15 = vpop.xlane.xlu0 %282  ;;  %v286_v38 = vpop.xlane.xlu1 %285 }
  0xb9   : > { %v446_v14 = vmul.f32 0.03125, %v283_v15  ;;  %v447_v23 = vmul.f32 0.03125, %v286_v38  ;;  %v572_v30 = vmul.f32 %v1922_v63, %v1922_v63  ;;  %v573_v24 = vmul.f32 %v1925_v21, %v1925_v21 }
  0xbb   : > { %v1934_v46 = vsub.f32 %v1602_v28, %v446_v14  ;;  %v1937_v25 = vsub.f32 %v1605_v29, %v447_v23  ;;  %v660_v12 = vsel %vm238_vm0, %v572_v30, 0.0  ;;  %v663_v20 = vsel %vm238_vm0, %v573_v24, 0.0 }
  0xbc   : > { %658 = vadd.xlane.f32.xlu1 %v657_v16  ;;  %661 = vadd.xlane.f32.xlu0 %v660_v12  ;;  %v289_v1 = vpop.xlane.xlu0 %288  ;;  %v292_v39 = vpop.xlane.xlu1 %291 }
  0xbd   : > { %v448_v8 = vmul.f32 0.03125, %v289_v1  ;;  %v449_v15 = vmul.f32 0.03125, %v292_v39  ;;  %v574_v38 = vmul.f32 %v1934_v46, %v1934_v46  ;;  %v575_v28 = vmul.f32 %v1937_v25, %v1937_v25 }
  0xbf   : > { %v1946_v14 = vsub.f32 %v1612_v32, %v448_v8  ;;  %v1949_v29 = vsub.f32 %v1615_v33, %v449_v15  ;;  %v666_v16 = vsel %vm238_vm0, %v574_v38, 0.0  ;;  %v669_v24 = vsel %vm238_vm0, %v575_v28, 0.0 }
  0xc0   : > { %664 = vadd.xlane.f32.xlu1 %v663_v20  ;;  %667 = vadd.xlane.f32.xlu0 %v666_v16  ;;  %v295_v23 = vpop.xlane.xlu0 %294  ;;  %v298_v30 = vpop.xlane.xlu1 %297 }
  0xc1   : > { %v450_v12 = vmul.f32 0.03125, %v295_v23  ;;  %v451_v1 = vmul.f32 0.03125, %v298_v30  ;;  %v576_v39 = vmul.f32 %v1946_v14, %v1946_v14  ;;  %v577_v32 = vmul.f32 %v1949_v29, %v1949_v29 }
  0xc3   : > { %v1958_v8 = vsub.f32 %v1622_v36, %v450_v12  ;;  %v1961_v33 = vsub.f32 %v1625_v37, %v451_v1  ;;  %v672_v20 = vsel %vm238_vm0, %v576_v39, 0.0  ;;  %v675_v28 = vsel %vm238_vm0, %v577_v32, 0.0 }
  0xc4   : > { %670 = vadd.xlane.f32.xlu1 %v669_v24  ;;  %673 = vadd.xlane.f32.xlu0 %v672_v20  ;;  %v301_v15 = vpop.xlane.xlu0 %300  ;;  %v304_v38 = vpop.xlane.xlu1 %303 }
  0xc5   : > { %v452_v16 = vmul.f32 0.03125, %v301_v15  ;;  %v453_v23 = vmul.f32 0.03125, %v304_v38  ;;  %v578_v30 = vmul.f32 %v1958_v8, %v1958_v8  ;;  %v579_v36 = vmul.f32 %v1961_v33, %v1961_v33 }
  0xc7   : > { %v1970_v12 = vsub.f32 %v1632_v40, %v452_v16  ;;  %v1973_v37 = vsub.f32 %v1635_v41, %v453_v23  ;;  %v678_v24 = vsel %vm238_vm0, %v578_v30, 0.0  ;;  %v681_v32 = vsel %vm238_vm0, %v579_v36, 0.0 }
  0xc8   : > { %676 = vadd.xlane.f32.xlu1 %v675_v28  ;;  %679 = vadd.xlane.f32.xlu0 %v678_v24  ;;  %v307_v1 = vpop.xlane.xlu0 %306  ;;  %v310_v39 = vpop.xlane.xlu1 %309 }
  0xc9   : > { %v454_v20 = vmul.f32 0.03125, %v307_v1  ;;  %v455_v15 = vmul.f32 0.03125, %v310_v39  ;;  %v580_v38 = vmul.f32 %v1970_v12, %v1970_v12  ;;  %v581_v40 = vmul.f32 %v1973_v37, %v1973_v37 }
  0xcb   : > { %v1982_v16 = vsub.f32 %v1642_v44, %v454_v20  ;;  %v1985_v41 = vsub.f32 %v1645_v45, %v455_v15  ;;  %v684_v28 = vsel %vm238_vm0, %v580_v38, 0.0  ;;  %v687_v36 = vsel %vm238_vm0, %v581_v40, 0.0 }
  0xcc   : > { %682 = vadd.xlane.f32.xlu1 %v681_v32  ;;  %685 = vadd.xlane.f32.xlu0 %v684_v28  ;;  %v313_v23 = vpop.xlane.xlu0 %312  ;;  %v316_v30 = vpop.xlane.xlu1 %315 }
  0xcd   : > { %v456_v24 = vmul.f32 0.03125, %v313_v23  ;;  %v457_v1 = vmul.f32 0.03125, %v316_v30  ;;  %v582_v39 = vmul.f32 %v1982_v16, %v1982_v16  ;;  %v583_v44 = vmul.f32 %v1985_v41, %v1985_v41 }
  0xcf   : > { %v1994_v20 = vsub.f32 %v1652_v48, %v456_v24  ;;  %v1997_v45 = vsub.f32 %v1655_v49, %v457_v1  ;;  %v690_v32 = vsel %vm238_vm0, %v582_v39, 0.0  ;;  %v693_v40 = vsel %vm238_vm0, %v583_v44, 0.0 }
  0xd0   : > { %688 = vadd.xlane.f32.xlu1 %v687_v36  ;;  %691 = vadd.xlane.f32.xlu0 %v690_v32  ;;  %v319_v15 = vpop.xlane.xlu0 %318  ;;  %v322_v38 = vpop.xlane.xlu1 %321 }
  0xd1   : > { %v458_v28 = vmul.f32 0.03125, %v319_v15  ;;  %v459_v23 = vmul.f32 0.03125, %v322_v38  ;;  %v584_v30 = vmul.f32 %v1994_v20, %v1994_v20  ;;  %v585_v48 = vmul.f32 %v1997_v45, %v1997_v45 }
  0xd3   : > { %v2006_v24 = vsub.f32 %v1662_v52, %v458_v28  ;;  %v2009_v49 = vsub.f32 %v1665_v53, %v459_v23  ;;  %v696_v36 = vsel %vm238_vm0, %v584_v30, 0.0  ;;  %v699_v44 = vsel %vm238_vm0, %v585_v48, 0.0 }
  0xd4   : > { %694 = vadd.xlane.f32.xlu1 %v693_v40  ;;  %697 = vadd.xlane.f32.xlu0 %v696_v36  ;;  %v325_v1 = vpop.xlane.xlu0 %324  ;;  %v328_v39 = vpop.xlane.xlu1 %327 }
  0xd5   : > { %v460_v32 = vmul.f32 0.03125, %v325_v1  ;;  %v461_v15 = vmul.f32 0.03125, %v328_v39  ;;  %v586_v38 = vmul.f32 %v2006_v24, %v2006_v24  ;;  %v587_v52 = vmul.f32 %v2009_v49, %v2009_v49 }
  0xd7   : > { %v2018_v28 = vsub.f32 %v1672_v56, %v460_v32  ;;  %v2021_v53 = vsub.f32 %v1675_v57, %v461_v15  ;;  %v702_v40 = vsel %vm238_vm0, %v586_v38, 0.0  ;;  %v705_v48 = vsel %vm238_vm0, %v587_v52, 0.0 }
  0xd8   : > { %700 = vadd.xlane.f32.xlu1 %v699_v44  ;;  %703 = vadd.xlane.f32.xlu0 %v702_v40  ;;  %v331_v23 = vpop.xlane.xlu0 %330  ;;  %v334_v30 = vpop.xlane.xlu1 %333 }
  0xd9   : > { %v462_v36 = vmul.f32 0.03125, %v331_v23  ;;  %v463_v1 = vmul.f32 0.03125, %v334_v30  ;;  %v588_v39 = vmul.f32 %v2018_v28, %v2018_v28  ;;  %v589_v56 = vmul.f32 %v2021_v53, %v2021_v53 }
  0xdb   : > { %v2030_v32 = vsub.f32 %v1682_v60, %v462_v36  ;;  %v2033_v57 = vsub.f32 %v1685_v61, %v463_v1  ;;  %v708_v44 = vsel %vm238_vm0, %v588_v39, 0.0  ;;  %v711_v52 = vsel %vm238_vm0, %v589_v56, 0.0 }
  0xdc   : > { %706 = vadd.xlane.f32.xlu1 %v705_v48  ;;  %709 = vadd.xlane.f32.xlu0 %v708_v44  ;;  %v337_v15 = vpop.xlane.xlu0 %336  ;;  %v340_v38 = vpop.xlane.xlu1 %339 }
  0xdd   : > { %v464_v40 = vmul.f32 0.03125, %v337_v15  ;;  %v465_v23 = vmul.f32 0.03125, %v340_v38  ;;  %v590_v30 = vmul.f32 %v2030_v32, %v2030_v32  ;;  %v591_v60 = vmul.f32 %v2033_v57, %v2033_v57 }
  0xdf   : > { %v2042_v36 = vsub.f32 %v1692_v3, %v464_v40  ;;  %v2045_v61 = vsub.f32 %v1695_v4, %v465_v23  ;;  %v714_v48 = vsel %vm238_vm0, %v590_v30, 0.0  ;;  %v717_v56 = vsel %vm238_vm0, %v591_v60, 0.0 }
  0xe0   : > { %712 = vadd.xlane.f32.xlu1 %v711_v52  ;;  %715 = vadd.xlane.f32.xlu0 %v714_v48  ;;  %v343_v1 = vpop.xlane.xlu0 %342  ;;  %v346_v39 = vpop.xlane.xlu1 %345 }
  0xe1   : > { %v466_v44 = vmul.f32 0.03125, %v343_v1  ;;  %v467_v15 = vmul.f32 0.03125, %v346_v39  ;;  %v592_v38 = vmul.f32 %v2042_v36, %v2042_v36  ;;  %v593_v3 = vmul.f32 %v2045_v61, %v2045_v61 }
  0xe3   : > { %v2054_v40 = vsub.f32 %v1702_v10, %v466_v44  ;;  %v2057_v4 = vsub.f32 %v1705_v11, %v467_v15  ;;  %v720_v52 = vsel %vm238_vm0, %v592_v38, 0.0  ;;  %v723_v60 = vsel %vm238_vm0, %v593_v3, 0.0 }
  0xe4   : > { %718 = vadd.xlane.f32.xlu1 %v717_v56  ;;  %721 = vadd.xlane.f32.xlu0 %v720_v52  ;;  %v349_v23 = vpop.xlane.xlu0 %348  ;;  %v352_v30 = vpop.xlane.xlu1 %351 }
  0xe5   : > { %v468_v48 = vmul.f32 0.03125, %v349_v23  ;;  %v469_v1 = vmul.f32 0.03125, %v352_v30  ;;  %v594_v39 = vmul.f32 %v2054_v40, %v2054_v40  ;;  %v595_v10 = vmul.f32 %v2057_v4, %v2057_v4 }
  0xe7   : > { %v2066_v44 = vsub.f32 %v1712_v18, %v468_v48  ;;  %v2069_v11 = vsub.f32 %v1715_v19, %v469_v1  ;;  %v726_v56 = vsel %vm238_vm0, %v594_v39, 0.0  ;;  %v729_v3 = vsel %vm238_vm0, %v595_v10, 0.0 }
  0xe8   : > { %724 = vadd.xlane.f32.xlu1 %v723_v60  ;;  %727 = vadd.xlane.f32.xlu0 %v726_v56  ;;  %v355_v15 = vpop.xlane.xlu0 %354  ;;  %v358_v38 = vpop.xlane.xlu1 %357 }
  0xe9   : > { %v470_v52 = vmul.f32 0.03125, %v355_v15  ;;  %v471_v23 = vmul.f32 0.03125, %v358_v38  ;;  %v596_v30 = vmul.f32 %v2066_v44, %v2066_v44  ;;  %v597_v18 = vmul.f32 %v2069_v11, %v2069_v11 }
  0xeb   : > { %v2078_v48 = vsub.f32 %v1722_v26, %v470_v52  ;;  %v2081_v19 = vsub.f32 %v1725_v27, %v471_v23  ;;  %v732_v60 = vsel %vm238_vm0, %v596_v30, 0.0  ;;  %v735_v10 = vsel %vm238_vm0, %v597_v18, 0.0 }
  0xec   : > { %730 = vadd.xlane.f32.xlu1 %v729_v3  ;;  %733 = vadd.xlane.f32.xlu0 %v732_v60  ;;  %v361_v1 = vpop.xlane.xlu0 %360  ;;  %v364_v39 = vpop.xlane.xlu1 %363 }
  0xed   : > { %v472_v56 = vmul.f32 0.03125, %v361_v1  ;;  %v473_v15 = vmul.f32 0.03125, %v364_v39  ;;  %v598_v38 = vmul.f32 %v2078_v48, %v2078_v48  ;;  %v599_v26 = vmul.f32 %v2081_v19, %v2081_v19 }
  0xef   : > { %v2090_v52 = vsub.f32 %v1732_v34, %v472_v56  ;;  %v2093_v27 = vsub.f32 %v1735_v35, %v473_v15  ;;  %v738_v3 = vsel %vm238_vm0, %v598_v38, 0.0  ;;  %v741_v18 = vsel %vm238_vm0, %v599_v26, 0.0 }
  0xf0   : > { %736 = vadd.xlane.f32.xlu1 %v735_v10  ;;  %739 = vadd.xlane.f32.xlu0 %v738_v3  ;;  %v367_v23 = vpop.xlane.xlu0 %366  ;;  %v370_v30 = vpop.xlane.xlu1 %369 }
  0xf1   : > { %v474_v60 = vmul.f32 0.03125, %v367_v23  ;;  %v475_v1 = vmul.f32 0.03125, %v370_v30  ;;  %v600_v39 = vmul.f32 %v2090_v52, %v2090_v52  ;;  %v601_v34 = vmul.f32 %v2093_v27, %v2093_v27 }
  0xf3   : > { %v2102_v56 = vsub.f32 %v1742_v42, %v474_v60  ;;  %v2105_v35 = vsub.f32 %v1745_v43, %v475_v1  ;;  %v744_v10 = vsel %vm238_vm0, %v600_v39, 0.0  ;;  %v747_v26 = vsel %vm238_vm0, %v601_v34, 0.0 }
  0xf4   : > { %742 = vadd.xlane.f32.xlu1 %v741_v18  ;;  %745 = vadd.xlane.f32.xlu0 %v744_v10  ;;  %v373_v15 = vpop.xlane.xlu0 %372  ;;  %v376_v38 = vpop.xlane.xlu1 %375 }
  0xf5   : > { %v476_v3 = vmul.f32 0.03125, %v373_v15  ;;  %v477_v23 = vmul.f32 0.03125, %v376_v38  ;;  %v602_v30 = vmul.f32 %v2102_v56, %v2102_v56  ;;  %v603_v42 = vmul.f32 %v2105_v35, %v2105_v35 }
  0xf7   : > { %v2114_v60 = vsub.f32 %v1752_v50, %v476_v3  ;;  %v2117_v43 = vsub.f32 %v1755_v51, %v477_v23  ;;  %v750_v18 = vsel %vm238_vm0, %v602_v30, 0.0  ;;  %v753_v34 = vsel %vm238_vm0, %v603_v42, 0.0 }
  0xf8   : > { %748 = vadd.xlane.f32.xlu1 %v747_v26  ;;  %751 = vadd.xlane.f32.xlu0 %v750_v18  ;;  %v379_v1 = vpop.xlane.xlu0 %378  ;;  %v382_v39 = vpop.xlane.xlu1 %381 }
  0xf9   : > { %v478_v10 = vmul.f32 0.03125, %v379_v1  ;;  %v479_v15 = vmul.f32 0.03125, %v382_v39  ;;  %v604_v38 = vmul.f32 %v2114_v60, %v2114_v60  ;;  %v605_v50 = vmul.f32 %v2117_v43, %v2117_v43 }
  0xfb   : > { %v2126_v3 = vsub.f32 %v1762_v58, %v478_v10  ;;  %v2129_v51 = vsub.f32 %v1765_v59, %v479_v15  ;;  %v756_v26 = vsel %vm238_vm0, %v604_v38, 0.0  ;;  %v759_v42 = vsel %vm238_vm0, %v605_v50, 0.0 }
  0xfc   : > { %754 = vadd.xlane.f32.xlu1 %v753_v34  ;;  %757 = vadd.xlane.f32.xlu0 %v756_v26  ;;  %v385_v23 = vpop.xlane.xlu0 %384  ;;  %v388_v30 = vpop.xlane.xlu1 %387 }
  0xfd   : > { %2617 = vst [vmem:[#allocation16_spill] sm:$0xff] %v2126_v3  ;;  %2618 = vst [vmem:[#allocation17_spill] sm:$0xff] %v2129_v51  ;;  %v480_v18 = vmul.f32 0.03125, %v385_v23  ;;  %v481_v1 = vmul.f32 0.03125, %v388_v30  ;;  %v606_v39 = vmul.f32 %v2126_v3, %v2126_v3  ;;  %v607_v58 = vmul.f32 %v2129_v51, %v2129_v51 }
  0xff   : > { %v2138_v10 = vsub.f32 %v1772_v6, %v480_v18  ;;  %v2141_v59 = vsub.f32 %v1775_v7, %v481_v1  ;;  %v762_v34 = vsel %vm238_vm0, %v606_v39, 0.0  ;;  %v765_v50 = vsel %vm238_vm0, %v607_v58, 0.0  ;;  %v2621_v18 = vld [vmem:[#allocation2_spill] sm:$0xff]  ;;  %v2623_v7 = vld [vmem:[#allocation3_spill] sm:$0xff] }
 0x100   : > { %760 = vadd.xlane.f32.xlu1 %v759_v42  ;;  %763 = vadd.xlane.f32.xlu0 %v762_v34  ;;  %v391_v15 = vpop.xlane.xlu0 %390  ;;  %v394_v38 = vpop.xlane.xlu1 %393 }
 0x101   : > { %2619 = vst [vmem:[#allocation18_spill] sm:$0xff] %v2138_v10  ;;  %2620 = vst [vmem:[#allocation19_spill] sm:$0xff] %v2141_v59  ;;  %v482_v26 = vmul.f32 0.03125, %v391_v15  ;;  %v483_v23 = vmul.f32 0.03125, %v394_v38  ;;  %v608_v30 = vmul.f32 %v2138_v10, %v2138_v10  ;;  %v609_v6 = vmul.f32 %v2141_v59, %v2141_v59 }
 0x103   : > { %v2150_v51 = vsub.f32 %v2621_v18, %v482_v26  ;;  %v2153_v1 = vsub.f32 %v2623_v7, %v483_v23  ;;  %v768_v42 = vsel %vm238_vm0, %v608_v30, 0.0  ;;  %v771_v34 = vsel %vm238_vm0, %v609_v6, 0.0  ;;  %v2625_v18 = vld [vmem:[#allocation4_spill] sm:$0xff]  ;;  %v2627_v23 = vld [vmem:[#allocation5_spill] sm:$0xff] }
 0x104   : > { %766 = vadd.xlane.f32.xlu1 %v765_v50  ;;  %769 = vadd.xlane.f32.xlu0 %v768_v42  ;;  %v397_v39 = vpop.xlane.xlu0 %396  ;;  %v400_v58 = vpop.xlane.xlu1 %399 }
 0x105   : > { %2622 = vst [vmem:[#allocation2_spill] sm:$0xff] %v2150_v51  ;;  %2624 = vst [vmem:[#allocation3_spill] sm:$0xff] %v2153_v1  ;;  %v484_v15 = vmul.f32 0.03125, %v397_v39  ;;  %v485_v38 = vmul.f32 0.03125, %v400_v58  ;;  %v610_v10 = vmul.f32 %v2150_v51, %v2150_v51  ;;  %v611_v26 = vmul.f32 %v2153_v1, %v2153_v1 }
 0x107   : > { %v2162_v59 = vsub.f32 %v2625_v18, %v484_v15  ;;  %v2165_v7 = vsub.f32 %v2627_v23, %v485_v38  ;;  %v774_v50 = vsel %vm238_vm0, %v610_v10, 0.0  ;;  %v777_v42 = vsel %vm238_vm0, %v611_v26, 0.0  ;;  %v2629_v18 = vld [vmem:[#allocation6_spill] sm:$0xff]  ;;  %v2631_v38 = vld [vmem:[#allocation7_spill] sm:$0xff] }
 0x108   : > { %772 = vadd.xlane.f32.xlu1 %v771_v34  ;;  %775 = vadd.xlane.f32.xlu0 %v774_v50  ;;  %v403_v30 = vpop.xlane.xlu0 %402  ;;  %v406_v6 = vpop.xlane.xlu1 %405 }
 0x109   : > { %2626 = vst [vmem:[#allocation4_spill] sm:$0xff] %v2162_v59  ;;  %2628 = vst [vmem:[#allocation5_spill] sm:$0xff] %v2165_v7  ;;  %v486_v39 = vmul.f32 0.03125, %v403_v30  ;;  %v487_v58 = vmul.f32 0.03125, %v406_v6  ;;  %v612_v51 = vmul.f32 %v2162_v59, %v2162_v59  ;;  %v613_v15 = vmul.f32 %v2165_v7, %v2165_v7 }
 0x10b   : > { %v2174_v1 = vsub.f32 %v2629_v18, %v486_v39  ;;  %v2177_v23 = vsub.f32 %v2631_v38, %v487_v58  ;;  %v780_v10 = vsel %vm238_vm0, %v612_v51, 0.0  ;;  %v783_v50 = vsel %vm238_vm0, %v613_v15, 0.0  ;;  %v2633_v18 = vld [vmem:[#allocation8_spill] sm:$0xff]  ;;  %v2635_v58 = vld [vmem:[#allocation9_spill] sm:$0xff] }
 0x10c   : > { %778 = vadd.xlane.f32.xlu1 %v777_v42  ;;  %781 = vadd.xlane.f32.xlu0 %v780_v10  ;;  %v409_v34 = vpop.xlane.xlu0 %408  ;;  %v412_v26 = vpop.xlane.xlu1 %411 }
 0x10d   : > { %2630 = vst [vmem:[#allocation6_spill] sm:$0xff] %v2174_v1  ;;  %2632 = vst [vmem:[#allocation7_spill] sm:$0xff] %v2177_v23  ;;  %v488_v30 = vmul.f32 0.03125, %v409_v34  ;;  %v489_v6 = vmul.f32 0.03125, %v412_v26  ;;  %v614_v59 = vmul.f32 %v2174_v1, %v2174_v1  ;;  %v615_v39 = vmul.f32 %v2177_v23, %v2177_v23 }
 0x10f   : > { %v2186_v7 = vsub.f32 %v2633_v18, %v488_v30  ;;  %v2189_v38 = vsub.f32 %v2635_v58, %v489_v6  ;;  %v786_v51 = vsel %vm238_vm0, %v614_v59, 0.0  ;;  %v789_v10 = vsel %vm238_vm0, %v615_v39, 0.0  ;;  %v2637_v18 = vld [vmem:[#allocation10_spill] sm:$0xff]  ;;  %v2639_v6 = vld [vmem:[#allocation11_spill] sm:$0xff] }
 0x110   : > { %784 = vadd.xlane.f32.xlu1 %v783_v50  ;;  %787 = vadd.xlane.f32.xlu0 %v786_v51  ;;  %v415_v42 = vpop.xlane.xlu0 %414  ;;  %v418_v15 = vpop.xlane.xlu1 %417 }
 0x111   : > { %2634 = vst [vmem:[#allocation8_spill] sm:$0xff] %v2186_v7  ;;  %2636 = vst [vmem:[#allocation9_spill] sm:$0xff] %v2189_v38  ;;  %v490_v34 = vmul.f32 0.03125, %v415_v42  ;;  %v491_v26 = vmul.f32 0.03125, %v418_v15  ;;  %v616_v1 = vmul.f32 %v2186_v7, %v2186_v7  ;;  %v617_v30 = vmul.f32 %v2189_v38, %v2189_v38 }
 0x113   : > { %v2198_v23 = vsub.f32 %v2637_v18, %v490_v34  ;;  %v2201_v58 = vsub.f32 %v2639_v6, %v491_v26  ;;  %v792_v59 = vsel %vm238_vm0, %v616_v1, 0.0  ;;  %v795_v51 = vsel %vm238_vm0, %v617_v30, 0.0  ;;  %v2641_v18 = vld [vmem:[#allocation12_spill] sm:$0xff]  ;;  %v2643_v26 = vld [vmem:[#allocation13_spill] sm:$0xff] }
 0x114   : > { %790 = vadd.xlane.f32.xlu1 %v789_v10  ;;  %793 = vadd.xlane.f32.xlu0 %v792_v59  ;;  %v421_v50 = vpop.xlane.xlu0 %420  ;;  %v424_v39 = vpop.xlane.xlu1 %423 }
 0x115   : > { %2638 = vst [vmem:[#allocation10_spill] sm:$0xff] %v2198_v23  ;;  %2640 = vst [vmem:[#allocation11_spill] sm:$0xff] %v2201_v58  ;;  %v492_v42 = vmul.f32 0.03125, %v421_v50  ;;  %v493_v15 = vmul.f32 0.03125, %v424_v39  ;;  %v618_v7 = vmul.f32 %v2198_v23, %v2198_v23  ;;  %v619_v34 = vmul.f32 %v2201_v58, %v2201_v58 }
 0x117   : > { %v2210_v38 = vsub.f32 %v2641_v18, %v492_v42  ;;  %v2213_v6 = vsub.f32 %v2643_v26, %v493_v15  ;;  %v798_v1 = vsel %vm238_vm0, %v618_v7, 0.0  ;;  %v801_v59 = vsel %vm238_vm0, %v619_v34, 0.0  ;;  %v2645_v18 = vld [vmem:[#allocation14_spill] sm:$0xff] }
 0x118   : > { %796 = vadd.xlane.f32.xlu1 %v795_v51  ;;  %799 = vadd.xlane.f32.xlu0 %v798_v1  ;;  %v427_v10 = vpop.xlane.xlu0 %426  ;;  %v430_v30 = vpop.xlane.xlu1 %429 }
 0x119   : > { %2642 = vst [vmem:[#allocation12_spill] sm:$0xff] %v2210_v38  ;;  %2644 = vst [vmem:[#allocation13_spill] sm:$0xff] %v2213_v6  ;;  %v494_v50 = vmul.f32 0.03125, %v427_v10  ;;  %v495_v39 = vmul.f32 0.03125, %v430_v30  ;;  %v620_v23 = vmul.f32 %v2210_v38, %v2210_v38  ;;  %v621_v42 = vmul.f32 %v2213_v6, %v2213_v6 }
 0x11b   : > { %v2222_v58 = vsub.f32 %v2645_v18, %v494_v50  ;;  %v2225_v15 = vsub.f32 %v1845_v31, %v495_v39  ;;  %v804_v7 = vsel %vm238_vm0, %v620_v23, 0.0  ;;  %v807_v51 = vsel %vm238_vm0, %v621_v42, 0.0 }
 0x11c   : > { %802 = vadd.xlane.f32.xlu1 %v801_v59  ;;  %805 = vadd.xlane.f32.xlu0 %v804_v7 }
 0x11d   : > { %2646 = vst [vmem:[#allocation14_spill] sm:$0xff] %v2222_v58  ;;  %2647 = vst [vmem:[#allocation20_spill] sm:$0xff] %v2225_v15  ;;  %v622_v34 = vmul.f32 %v2222_v58, %v2222_v58  ;;  %v623_v26 = vmul.f32 %v2225_v15, %v2225_v15 }
 0x11f   : > { %v810_v1 = vsel %vm238_vm0, %v622_v34, 0.0  ;;  %v813_v10 = vsel %vm238_vm0, %v623_v26, 0.0 }
 0x120   : > { %808 = vadd.xlane.f32.xlu1 %v807_v51  ;;  %811 = vadd.xlane.f32.xlu0 %v810_v1 }
 0x124   : > { %814 = vadd.xlane.f32.xlu1 %v813_v10 }
 0x12d   : > { %v626_v31 = vpop.xlane.xlu0 %625 }
 0x12e   : > { %v816_v30 = vmul.f32 0.03125, %v626_v31 }
 0x130   : > { %v880_v23 = vadd.f32 1e-05, %v816_v30 }
 0x131   : > { %v629_v59 = vpop.xlane.xlu1 %628  ;;  %v632_v50 = vpop.xlane.xlu0 %631 }
 0x132   : > { %1355 = vrsqrt.f32 %v880_v23  ;;  %v817_v39 = vmul.f32 0.03125, %v629_v59  ;;  %v818_v42 = vmul.f32 0.03125, %v632_v50 }
 0x134   : > { %v881_v18 = vadd.f32 1e-05, %v817_v39  ;;  %v882_v7 = vadd.f32 1e-05, %v818_v42 }
 0x135   : > { %v635_v58 = vpop.xlane.xlu1 %634  ;;  %v638_v6 = vpop.xlane.xlu0 %637 }
 0x136   : > { %1357 = vrsqrt.f32 %v881_v18  ;;  %v819_v15 = vmul.f32 0.03125, %v635_v58  ;;  %v820_v34 = vmul.f32 0.03125, %v638_v6  ;;  %v2238_v58 = vld [vmem:[%s2568_s1] ss:$0 sm:$0xff] }
 0x137   : > { %1359 = vrsqrt.f32 %v882_v7 }
 0x138   : > { %v883_v51 = vadd.f32 1e-05, %v819_v15  ;;  %v884_v1 = vadd.f32 1e-05, %v820_v34  ;;  %v2244_v34 = vld [vmem:[%s2569_s2] ss:$0 sm:$0xff] }
 0x139   : > { %v641_v26 = vpop.xlane.xlu1 %640  ;;  %v644_v10 = vpop.xlane.xlu0 %643 }
 0x13a   : > { %1361 = vrsqrt.f32 %v883_v51  ;;  %v821_v31 = vmul.f32 0.03125, %v641_v26  ;;  %v822_v30 = vmul.f32 0.03125, %v644_v10 }
 0x13b   : > { %1363 = vrsqrt.f32 %v884_v1 }
 0x13c   : > { %v885_v38 = vadd.f32 1e-05, %v821_v31  ;;  %v886_v23 = vadd.f32 1e-05, %v822_v30 }
 0x13d   : > { %v647_v59 = vpop.xlane.xlu1 %646  ;;  %v650_v50 = vpop.xlane.xlu0 %649 }
 0x13e   : > { %1365 = vrsqrt.f32 %v885_v38  ;;  %v823_v39 = vmul.f32 0.03125, %v647_v59  ;;  %v824_v42 = vmul.f32 0.03125, %v650_v50 }
 0x13f   : > { %v1356_v18 = vpop.eup %1355  ;;  %1367 = vrsqrt.f32 %v886_v23 }
 0x140   : > { %v1008_v6 = vmul.f32 %v1356_v18, %v1852_v54  ;;  %v887_v15 = vadd.f32 1e-05, %v823_v39  ;;  %v888_v7 = vadd.f32 1e-05, %v824_v42  ;;  %v2648_v39 = vld [vmem:[#allocation15_spill] sm:$0xff] }
 0x141   : > { %v653_v38 = vpop.xlane.xlu1 %652  ;;  %v656_v51 = vpop.xlane.xlu0 %655 }
 0x142   : > { %v1079_v1 = vmul.f32 %v2238_v58, %v1008_v6  ;;  %1369 = vrsqrt.f32 %v887_v15  ;;  %v825_v26 = vmul.f32 0.03125, %v653_v38  ;;  %v826_v10 = vmul.f32 0.03125, %v656_v51 }
 0x143   : > { %v1358_v31 = vpop.eup %1357  ;;  %1371 = vrsqrt.f32 %v888_v7 }
 0x144   : > { %v1360_v54 = vpop.eup %1359  ;;  %v1150_v30 = vadd.f32 %v2244_v34, %v1079_v1  ;;  %v1009_v23 = vmul.f32 %v1358_v31, %v1862_v47  ;;  %v889_v59 = vadd.f32 1e-05, %v825_v26  ;;  %v890_v50 = vadd.f32 1e-05, %v826_v10 }
 0x145   : > { %v1010_v42 = vmul.f32 %v1360_v54, %v2648_v39  ;;  %v659_v18 = vpop.xlane.xlu1 %658  ;;  %v662_v6 = vpop.xlane.xlu0 %661 }
 0x146   : > { %1214 = vst.msk [vmem:[%s2252_s25] sm:$0xff] %vm238_vm0, %v1150_v30  ;;  %v1080_v15 = vmul.f32 %v2238_v58, %v1009_v23  ;;  %1373 = vrsqrt.f32 %v889_v59  ;;  %v827_v38 = vmul.f32 0.03125, %v659_v18  ;;  %v828_v51 = vmul.f32 0.03125, %v662_v6 }
 0x147   : > { %v1362_v7 = vpop.eup %1361  ;;  %v1081_v3 = vmul.f32 %v2238_v58, %v1010_v42  ;;  %1375 = vrsqrt.f32 %v890_v50 }
 0x148   : > { %v1364_v47 = vpop.eup %1363  ;;  %v1151_v1 = vadd.f32 %v2244_v34, %v1080_v15  ;;  %v1011_v26 = vmul.f32 %v1362_v7, %v1865_v55  ;;  %v891_v10 = vadd.f32 1e-05, %v827_v38  ;;  %v892_v31 = vadd.f32 1e-05, %v828_v51 }
 0x149   : > { %v1152_v54 = vadd.f32 %v2244_v34, %v1081_v3  ;;  %v1012_v30 = vmul.f32 %v1364_v47, %v1874_v2  ;;  %v665_v23 = vpop.xlane.xlu1 %664  ;;  %v668_v59 = vpop.xlane.xlu0 %667 }
 0x14a   : > { %1215 = vst.msk [vmem:[%s2252_s25 + $0x8] sm:$0xff] %vm238_vm0, %v1151_v1  ;;  %v1082_v39 = vmul.f32 %v2238_v58, %v1011_v26  ;;  %1377 = vrsqrt.f32 %v891_v10  ;;  %v829_v50 = vmul.f32 0.03125, %v665_v23  ;;  %v830_v42 = vmul.f32 0.03125, %v668_v59 }
 0x14b   : > { %v1366_v18 = vpop.eup %1365  ;;  %1216 = vst.msk [vmem:[%s2252_s25 + $0x10] sm:$0xff] %vm238_vm0, %v1152_v54  ;;  %v1083_v55 = vmul.f32 %v2238_v58, %v1012_v30  ;;  %1379 = vrsqrt.f32 %v892_v31 }
 0x14c   : > { %v1368_v3 = vpop.eup %1367  ;;  %v1153_v2 = vadd.f32 %v2244_v34, %v1082_v39  ;;  %v1013_v6 = vmul.f32 %v1366_v18, %v1877_v5  ;;  %v893_v15 = vadd.f32 1e-05, %v829_v50  ;;  %v894_v38 = vadd.f32 1e-05, %v830_v42 }
 0x14d   : > { %v1154_v51 = vadd.f32 %v2244_v34, %v1083_v55  ;;  %v1014_v7 = vmul.f32 %v1368_v3, %v1886_v62  ;;  %v671_v47 = vpop.xlane.xlu1 %670  ;;  %v674_v1 = vpop.xlane.xlu0 %673 }
 0x14e   : > { %1217 = vst.msk [vmem:[%s2252_s25 + $0x18] sm:$0xff] %vm238_vm0, %v1153_v2  ;;  %v1084_v26 = vmul.f32 %v2238_v58, %v1013_v6  ;;  %1381 = vrsqrt.f32 %v893_v15  ;;  %v831_v10 = vmul.f32 0.03125, %v671_v47  ;;  %v832_v31 = vmul.f32 0.03125, %v674_v1 }
 0x14f   : > { %v1370_v54 = vpop.eup %1369  ;;  %1218 = vst.msk [vmem:[%s2252_s25 + $0x20] sm:$0xff] %vm238_vm0, %v1154_v51  ;;  %v1085_v5 = vmul.f32 %v2238_v58, %v1014_v7  ;;  %1383 = vrsqrt.f32 %v894_v38 }
 0x150   : > { %v1372_v30 = vpop.eup %1371  ;;  %v1155_v62 = vadd.f32 %v2244_v34, %v1084_v26  ;;  %v1015_v23 = vmul.f32 %v1370_v54, %v1889_v9  ;;  %v895_v59 = vadd.f32 1e-05, %v831_v10  ;;  %v896_v39 = vadd.f32 1e-05, %v832_v31 }
 0x151   : > { %v1156_v50 = vadd.f32 %v2244_v34, %v1085_v5  ;;  %v1016_v42 = vmul.f32 %v1372_v30, %v1898_v0  ;;  %v677_v18 = vpop.xlane.xlu1 %676  ;;  %v680_v55 = vpop.xlane.xlu0 %679 }
 0x152   : > { %1219 = vst.msk [vmem:[%s2252_s25 + $0x28] sm:$0xff] %vm238_vm0, %v1155_v62  ;;  %v1086_v3 = vmul.f32 %v2238_v58, %v1015_v23  ;;  %1385 = vrsqrt.f32 %v895_v59  ;;  %v833_v2 = vmul.f32 0.03125, %v677_v18  ;;  %v834_v6 = vmul.f32 0.03125, %v680_v55 }
 0x153   : > { %v1374_v15 = vpop.eup %1373  ;;  %1220 = vst.msk [vmem:[%s2252_s25 + $0x30] sm:$0xff] %vm238_vm0, %v1156_v50  ;;  %v1087_v9 = vmul.f32 %v2238_v58, %v1016_v42  ;;  %1387 = vrsqrt.f32 %v896_v39 }
 0x154   : > { %v1376_v38 = vpop.eup %1375  ;;  %v1157_v0 = vadd.f32 %v2244_v34, %v1086_v3  ;;  %v1017_v51 = vmul.f32 %v1374_v15, %v1901_v13  ;;  %v897_v7 = vadd.f32 1e-05, %v833_v2  ;;  %v898_v47 = vadd.f32 1e-05, %v834_v6 }
 0x155   : > { %v1158_v1 = vadd.f32 %v2244_v34, %v1087_v9  ;;  %v1018_v26 = vmul.f32 %v1376_v38, %v1910_v22  ;;  %v683_v10 = vpop.xlane.xlu1 %682  ;;  %v686_v31 = vpop.xlane.xlu0 %685 }
 0x156   : > { %1221 = vst.msk [vmem:[%s2252_s25 + $0x38] sm:$0xff] %vm238_vm0, %v1157_v0  ;;  %v1088_v54 = vmul.f32 %v2238_v58, %v1017_v51  ;;  %1389 = vrsqrt.f32 %v897_v7  ;;  %v835_v5 = vmul.f32 0.03125, %v683_v10  ;;  %v836_v30 = vmul.f32 0.03125, %v686_v31 }
 0x157   : > { %v1378_v62 = vpop.eup %1377  ;;  %1222 = vst.msk [vmem:[%s2252_s25 + $0x40] sm:$0xff] %vm238_vm0, %v1158_v1  ;;  %v1089_v13 = vmul.f32 %v2238_v58, %v1018_v26  ;;  %1391 = vrsqrt.f32 %v898_v47 }
 0x158   : > { %v1380_v23 = vpop.eup %1379  ;;  %v1159_v22 = vadd.f32 %v2244_v34, %v1088_v54  ;;  %v1019_v59 = vmul.f32 %v1378_v62, %v1913_v17  ;;  %v899_v39 = vadd.f32 1e-05, %v835_v5  ;;  %v900_v50 = vadd.f32 1e-05, %v836_v30 }
 0x159   : > { %v1160_v42 = vadd.f32 %v2244_v34, %v1089_v13  ;;  %v1020_v18 = vmul.f32 %v1380_v23, %v1922_v63  ;;  %v689_v55 = vpop.xlane.xlu1 %688  ;;  %v692_v3 = vpop.xlane.xlu0 %691 }
 0x15a   : > { %1223 = vst.msk [vmem:[%s2252_s25 + $0x48] sm:$0xff] %vm238_vm0, %v1159_v22  ;;  %v1090_v2 = vmul.f32 %v2238_v58, %v1019_v59  ;;  %1393 = vrsqrt.f32 %v899_v39  ;;  %v837_v6 = vmul.f32 0.03125, %v689_v55  ;;  %v838_v15 = vmul.f32 0.03125, %v692_v3 }
 0x15b   : > { %v1382_v9 = vpop.eup %1381  ;;  %1224 = vst.msk [vmem:[%s2252_s25 + $0x50] sm:$0xff] %vm238_vm0, %v1160_v42  ;;  %v1091_v17 = vmul.f32 %v2238_v58, %v1020_v18  ;;  %1395 = vrsqrt.f32 %v900_v50 }
 0x15c   : > { %v1384_v38 = vpop.eup %1383  ;;  %v1161_v63 = vadd.f32 %v2244_v34, %v1090_v2  ;;  %v1021_v0 = vmul.f32 %v1382_v9, %v1925_v21  ;;  %v901_v51 = vadd.f32 1e-05, %v837_v6  ;;  %v902_v7 = vadd.f32 1e-05, %v838_v15 }
 0x15d   : > { %v1162_v47 = vadd.f32 %v2244_v34, %v1091_v17  ;;  %v1022_v1 = vmul.f32 %v1384_v38, %v1934_v46  ;;  %v695_v26 = vpop.xlane.xlu1 %694  ;;  %v698_v10 = vpop.xlane.xlu0 %697 }
 0x15e   : > { %1225 = vst.msk [vmem:[%s2252_s25 + $0x58] sm:$0xff] %vm238_vm0, %v1161_v63  ;;  %v1092_v31 = vmul.f32 %v2238_v58, %v1021_v0  ;;  %1397 = vrsqrt.f32 %v901_v51  ;;  %v839_v54 = vmul.f32 0.03125, %v695_v26  ;;  %v840_v5 = vmul.f32 0.03125, %v698_v10 }
 0x15f   : > { %v1386_v30 = vpop.eup %1385  ;;  %1226 = vst.msk [vmem:[%s2252_s25 + $0x60] sm:$0xff] %vm238_vm0, %v1162_v47  ;;  %v1093_v21 = vmul.f32 %v2238_v58, %v1022_v1  ;;  %1399 = vrsqrt.f32 %v902_v7 }
 0x160   : > { %v1388_v62 = vpop.eup %1387  ;;  %v1163_v46 = vadd.f32 %v2244_v34, %v1092_v31  ;;  %v1023_v13 = vmul.f32 %v1386_v30, %v1937_v25  ;;  %v903_v23 = vadd.f32 1e-05, %v839_v54  ;;  %v904_v22 = vadd.f32 1e-05, %v840_v5 }
 0x161   : > { %v1164_v59 = vadd.f32 %v2244_v34, %v1093_v21  ;;  %v1024_v39 = vmul.f32 %v1388_v62, %v1946_v14  ;;  %v701_v50 = vpop.xlane.xlu1 %700  ;;  %v704_v42 = vpop.xlane.xlu0 %703 }
 0x162   : > { %1227 = vst.msk [vmem:[%s2252_s25 + $0x68] sm:$0xff] %vm238_vm0, %v1163_v46  ;;  %v1094_v18 = vmul.f32 %v2238_v58, %v1023_v13  ;;  %1401 = vrsqrt.f32 %v903_v23  ;;  %v841_v55 = vmul.f32 0.03125, %v701_v50  ;;  %v842_v3 = vmul.f32 0.03125, %v704_v42 }
 0x163   : > { %v1390_v2 = vpop.eup %1389  ;;  %1228 = vst.msk [vmem:[%s2252_s25 + $0x70] sm:$0xff] %vm238_vm0, %v1164_v59  ;;  %v1095_v25 = vmul.f32 %v2238_v58, %v1024_v39  ;;  %1403 = vrsqrt.f32 %v904_v22 }
 0x164   : > { %v1392_v6 = vpop.eup %1391  ;;  %v1165_v14 = vadd.f32 %v2244_v34, %v1094_v18  ;;  %v1025_v15 = vmul.f32 %v1390_v2, %v1949_v29  ;;  %v905_v9 = vadd.f32 1e-05, %v841_v55  ;;  %v906_v17 = vadd.f32 1e-05, %v842_v3 }
 0x165   : > { %v1166_v38 = vadd.f32 %v2244_v34, %v1095_v25  ;;  %v1026_v63 = vmul.f32 %v1392_v6, %v1958_v8  ;;  %v707_v0 = vpop.xlane.xlu1 %706  ;;  %v710_v51 = vpop.xlane.xlu0 %709 }
 0x166   : > { %1229 = vst.msk [vmem:[%s2252_s25 + $0x78] sm:$0xff] %vm238_vm0, %v1165_v14  ;;  %v1096_v7 = vmul.f32 %v2238_v58, %v1025_v15  ;;  %1405 = vrsqrt.f32 %v905_v9  ;;  %v843_v47 = vmul.f32 0.03125, %v707_v0  ;;  %v844_v1 = vmul.f32 0.03125, %v710_v51 }
 0x167   : > { %v1394_v26 = vpop.eup %1393  ;;  %1230 = vst.msk [vmem:[%s2252_s25 + $0x80] sm:$0xff] %vm238_vm0, %v1166_v38  ;;  %v1097_v29 = vmul.f32 %v2238_v58, %v1026_v63  ;;  %1407 = vrsqrt.f32 %v906_v17 }
 0x168   : > { %v1396_v10 = vpop.eup %1395  ;;  %v1167_v8 = vadd.f32 %v2244_v34, %v1096_v7  ;;  %v1027_v31 = vmul.f32 %v1394_v26, %v1961_v33  ;;  %v907_v54 = vadd.f32 1e-05, %v843_v47  ;;  %v908_v5 = vadd.f32 1e-05, %v844_v1 }
 0x169   : > { %v1168_v30 = vadd.f32 %v2244_v34, %v1097_v29  ;;  %v1028_v21 = vmul.f32 %v1396_v10, %v1970_v12  ;;  %v713_v62 = vpop.xlane.xlu1 %712  ;;  %v716_v46 = vpop.xlane.xlu0 %715 }
 0x16a   : > { %1231 = vst.msk [vmem:[%s2252_s25 + $0x88] sm:$0xff] %vm238_vm0, %v1167_v8  ;;  %v1098_v13 = vmul.f32 %v2238_v58, %v1027_v31  ;;  %1409 = vrsqrt.f32 %v907_v54  ;;  %v845_v23 = vmul.f32 0.03125, %v713_v62  ;;  %v846_v22 = vmul.f32 0.03125, %v716_v46 }
 0x16b   : > { %v1398_v59 = vpop.eup %1397  ;;  %1232 = vst.msk [vmem:[%s2252_s25 + $0x90] sm:$0xff] %vm238_vm0, %v1168_v30  ;;  %v1099_v33 = vmul.f32 %v2238_v58, %v1028_v21  ;;  %1411 = vrsqrt.f32 %v908_v5 }
 0x16c   : > { %v1400_v39 = vpop.eup %1399  ;;  %v1169_v12 = vadd.f32 %v2244_v34, %v1098_v13  ;;  %v1029_v50 = vmul.f32 %v1398_v59, %v1973_v37  ;;  %v909_v42 = vadd.f32 1e-05, %v845_v23  ;;  %v910_v18 = vadd.f32 1e-05, %v846_v22 }
 0x16d   : > { %v1170_v55 = vadd.f32 %v2244_v34, %v1099_v33  ;;  %v1030_v3 = vmul.f32 %v1400_v39, %v1982_v16  ;;  %v719_v2 = vpop.xlane.xlu1 %718  ;;  %v722_v25 = vpop.xlane.xlu0 %721 }
 0x16e   : > { %1233 = vst.msk [vmem:[%s2252_s25 + $0x98] sm:$0xff] %vm238_vm0, %v1169_v12  ;;  %v1100_v6 = vmul.f32 %v2238_v58, %v1029_v50  ;;  %1413 = vrsqrt.f32 %v909_v42  ;;  %v847_v14 = vmul.f32 0.03125, %v719_v2  ;;  %v848_v15 = vmul.f32 0.03125, %v722_v25 }
 0x16f   : > { %v1402_v9 = vpop.eup %1401  ;;  %1234 = vst.msk [vmem:[%s2252_s25 + $0xa0] sm:$0xff] %vm238_vm0, %v1170_v55  ;;  %v1101_v37 = vmul.f32 %v2238_v58, %v1030_v3  ;;  %1415 = vrsqrt.f32 %v910_v18 }
 0x170   : > { %v1404_v17 = vpop.eup %1403  ;;  %v1171_v16 = vadd.f32 %v2244_v34, %v1100_v6  ;;  %v1031_v38 = vmul.f32 %v1402_v9, %v1985_v41  ;;  %v911_v63 = vadd.f32 1e-05, %v847_v14  ;;  %v912_v0 = vadd.f32 1e-05, %v848_v15 }
 0x171   : > { %v1172_v51 = vadd.f32 %v2244_v34, %v1101_v37  ;;  %v1032_v7 = vmul.f32 %v1404_v17, %v1994_v20  ;;  %v725_v47 = vpop.xlane.xlu1 %724  ;;  %v728_v1 = vpop.xlane.xlu0 %727 }
 0x172   : > { %1235 = vst.msk [vmem:[%s2252_s25 + $0xa8] sm:$0xff] %vm238_vm0, %v1171_v16  ;;  %v1102_v26 = vmul.f32 %v2238_v58, %v1031_v38  ;;  %1417 = vrsqrt.f32 %v911_v63  ;;  %v849_v29 = vmul.f32 0.03125, %v725_v47  ;;  %v850_v10 = vmul.f32 0.03125, %v728_v1 }
 0x173   : > { %v1406_v8 = vpop.eup %1405  ;;  %1236 = vst.msk [vmem:[%s2252_s25 + $0xb0] sm:$0xff] %vm238_vm0, %v1172_v51  ;;  %v1103_v41 = vmul.f32 %v2238_v58, %v1032_v7  ;;  %1419 = vrsqrt.f32 %v912_v0 }
 0x174   : > { %v1408_v31 = vpop.eup %1407  ;;  %v1173_v20 = vadd.f32 %v2244_v34, %v1102_v26  ;;  %v1033_v54 = vmul.f32 %v1406_v8, %v1997_v45  ;;  %v913_v5 = vadd.f32 1e-05, %v849_v29  ;;  %v914_v30 = vadd.f32 1e-05, %v850_v10 }
 0x175   : > { %v1174_v21 = vadd.f32 %v2244_v34, %v1103_v41  ;;  %v1034_v62 = vmul.f32 %v1408_v31, %v2006_v24  ;;  %v731_v46 = vpop.xlane.xlu1 %730  ;;  %v734_v13 = vpop.xlane.xlu0 %733 }
 0x176   : > { %1237 = vst.msk [vmem:[%s2252_s25 + $0xb8] sm:$0xff] %vm238_vm0, %v1173_v20  ;;  %v1104_v23 = vmul.f32 %v2238_v58, %v1033_v54  ;;  %1421 = vrsqrt.f32 %v913_v5  ;;  %v851_v22 = vmul.f32 0.03125, %v731_v46  ;;  %v852_v59 = vmul.f32 0.03125, %v734_v13 }
 0x177   : > { %v1410_v33 = vpop.eup %1409  ;;  %1238 = vst.msk [vmem:[%s2252_s25 + $0xc0] sm:$0xff] %vm238_vm0, %v1174_v21  ;;  %v1105_v45 = vmul.f32 %v2238_v58, %v1034_v62  ;;  %1423 = vrsqrt.f32 %v914_v30 }
 0x178   : > { %v1412_v39 = vpop.eup %1411  ;;  %v1175_v24 = vadd.f32 %v2244_v34, %v1104_v23  ;;  %v1035_v12 = vmul.f32 %v1410_v33, %v2009_v49  ;;  %v915_v50 = vadd.f32 1e-05, %v851_v22  ;;  %v916_v42 = vadd.f32 1e-05, %v852_v59 }
 0x179   : > { %v1176_v18 = vadd.f32 %v2244_v34, %v1105_v45  ;;  %v1036_v55 = vmul.f32 %v1412_v39, %v2018_v28  ;;  %v737_v3 = vpop.xlane.xlu1 %736  ;;  %v740_v2 = vpop.xlane.xlu0 %739 }
 0x17a   : > { %1239 = vst.msk [vmem:[%s2252_s25 + $0xc8] sm:$0xff] %vm238_vm0, %v1175_v24  ;;  %v1106_v25 = vmul.f32 %v2238_v58, %v1035_v12  ;;  %1425 = vrsqrt.f32 %v915_v50  ;;  %v853_v6 = vmul.f32 0.03125, %v737_v3  ;;  %v854_v14 = vmul.f32 0.03125, %v740_v2 }
 0x17b   : > { %v1414_v15 = vpop.eup %1413  ;;  %1240 = vst.msk [vmem:[%s2252_s25 + $0xd0] sm:$0xff] %vm238_vm0, %v1176_v18  ;;  %v1107_v49 = vmul.f32 %v2238_v58, %v1036_v55  ;;  %1427 = vrsqrt.f32 %v916_v42 }
 0x17c   : > { %v1416_v9 = vpop.eup %1415  ;;  %v1177_v28 = vadd.f32 %v2244_v34, %v1106_v25  ;;  %v1037_v37 = vmul.f32 %v1414_v15, %v2021_v53  ;;  %v917_v17 = vadd.f32 1e-05, %v853_v6  ;;  %v918_v16 = vadd.f32 1e-05, %v854_v14 }
 0x17d   : > { %v1178_v38 = vadd.f32 %v2244_v34, %v1107_v49  ;;  %v1038_v63 = vmul.f32 %v1416_v9, %v2030_v32  ;;  %v743_v0 = vpop.xlane.xlu1 %742  ;;  %v746_v51 = vpop.xlane.xlu0 %745 }
 0x17e   : > { %1241 = vst.msk [vmem:[%s2252_s25 + $0xd8] sm:$0xff] %vm238_vm0, %v1177_v28  ;;  %v1108_v7 = vmul.f32 %v2238_v58, %v1037_v37  ;;  %1429 = vrsqrt.f32 %v917_v17  ;;  %v855_v47 = vmul.f32 0.03125, %v743_v0  ;;  %v856_v1 = vmul.f32 0.03125, %v746_v51 }
 0x17f   : > { %v1418_v26 = vpop.eup %1417  ;;  %1242 = vst.msk [vmem:[%s2252_s25 + $0xe0] sm:$0xff] %vm238_vm0, %v1178_v38  ;;  %v1109_v53 = vmul.f32 %v2238_v58, %v1038_v63  ;;  %1431 = vrsqrt.f32 %v918_v16 }
 0x180   : > { %v1420_v29 = vpop.eup %1419  ;;  %v1179_v32 = vadd.f32 %v2244_v34, %v1108_v7  ;;  %v1039_v10 = vmul.f32 %v1418_v26, %v2033_v57  ;;  %v919_v8 = vadd.f32 1e-05, %v855_v47  ;;  %v920_v41 = vadd.f32 1e-05, %v856_v1 }
 0x181   : > { %v1180_v31 = vadd.f32 %v2244_v34, %v1109_v53  ;;  %v1040_v20 = vmul.f32 %v1420_v29, %v2042_v36  ;;  %v749_v54 = vpop.xlane.xlu1 %748  ;;  %v752_v5 = vpop.xlane.xlu0 %751 }
 0x182   : > { %1243 = vst.msk [vmem:[%s2252_s25 + $0xe8] sm:$0xff] %vm238_vm0, %v1179_v32  ;;  %v1110_v30 = vmul.f32 %v2238_v58, %v1039_v10  ;;  %1433 = vrsqrt.f32 %v919_v8  ;;  %v857_v21 = vmul.f32 0.03125, %v749_v54  ;;  %v858_v62 = vmul.f32 0.03125, %v752_v5 }
 0x183   : > { %v1422_v46 = vpop.eup %1421  ;;  %1244 = vst.msk [vmem:[%s2252_s25 + $0xf0] sm:$0xff] %vm238_vm0, %v1180_v31  ;;  %v1111_v57 = vmul.f32 %v2238_v58, %v1040_v20  ;;  %1435 = vrsqrt.f32 %v920_v41 }
 0x184   : > { %v1424_v13 = vpop.eup %1423  ;;  %v1181_v36 = vadd.f32 %v2244_v34, %v1110_v30  ;;  %v1041_v23 = vmul.f32 %v1422_v46, %v2045_v61  ;;  %v921_v22 = vadd.f32 1e-05, %v857_v21  ;;  %v922_v59 = vadd.f32 1e-05, %v858_v62 }
 0x185   : > { %v1182_v33 = vadd.f32 %v2244_v34, %v1111_v57  ;;  %v1042_v45 = vmul.f32 %v1424_v13, %v2054_v40  ;;  %v755_v39 = vpop.xlane.xlu1 %754  ;;  %v758_v24 = vpop.xlane.xlu0 %757 }
 0x186   : > { %1245 = vst.msk [vmem:[%s2252_s25 + $0xf8] sm:$0xff] %vm238_vm0, %v1181_v36  ;;  %v1112_v12 = vmul.f32 %v2238_v58, %v1041_v23  ;;  %1437 = vrsqrt.f32 %v921_v22  ;;  %v859_v50 = vmul.f32 0.03125, %v755_v39  ;;  %v860_v42 = vmul.f32 0.03125, %v758_v24 }
 0x187   : > { %v1426_v18 = vpop.eup %1425  ;;  %1246 = vst.msk [vmem:[%s2252_s25 + $0x100] sm:$0xff] %vm238_vm0, %v1182_v33  ;;  %v1113_v61 = vmul.f32 %v2238_v58, %v1042_v45  ;;  %1439 = vrsqrt.f32 %v922_v59 }
 0x188   : > { %v1428_v55 = vpop.eup %1427  ;;  %v1183_v40 = vadd.f32 %v2244_v34, %v1112_v12  ;;  %v1043_v3 = vmul.f32 %v1426_v18, %v2057_v4  ;;  %v923_v2 = vadd.f32 1e-05, %v859_v50  ;;  %v924_v25 = vadd.f32 1e-05, %v860_v42 }
 0x189   : > { %v1184_v6 = vadd.f32 %v2244_v34, %v1113_v61  ;;  %v1044_v14 = vmul.f32 %v1428_v55, %v2066_v44  ;;  %v761_v15 = vpop.xlane.xlu1 %760  ;;  %v764_v49 = vpop.xlane.xlu0 %763 }
 0x18a   : > { %1247 = vst.msk [vmem:[%s2252_s25 + $0x108] sm:$0xff] %vm238_vm0, %v1183_v40  ;;  %v1114_v9 = vmul.f32 %v2238_v58, %v1043_v3  ;;  %1441 = vrsqrt.f32 %v923_v2  ;;  %v861_v28 = vmul.f32 0.03125, %v761_v15  ;;  %v862_v37 = vmul.f32 0.03125, %v764_v49 }
 0x18b   : > { %v1430_v17 = vpop.eup %1429  ;;  %1248 = vst.msk [vmem:[%s2252_s25 + $0x110] sm:$0xff] %vm238_vm0, %v1184_v6  ;;  %v1115_v4 = vmul.f32 %v2238_v58, %v1044_v14  ;;  %1443 = vrsqrt.f32 %v924_v25 }
 0x18c   : > { %v1432_v16 = vpop.eup %1431  ;;  %v1185_v44 = vadd.f32 %v2244_v34, %v1114_v9  ;;  %v1045_v38 = vmul.f32 %v1430_v17, %v2069_v11  ;;  %v925_v63 = vadd.f32 1e-05, %v861_v28  ;;  %v926_v0 = vadd.f32 1e-05, %v862_v37 }
 0x18d   : > { %v1186_v51 = vadd.f32 %v2244_v34, %v1115_v4  ;;  %v1046_v7 = vmul.f32 %v1432_v16, %v2078_v48  ;;  %v767_v47 = vpop.xlane.xlu1 %766  ;;  %v770_v1 = vpop.xlane.xlu0 %769 }
 0x18e   : > { %1249 = vst.msk [vmem:[%s2252_s25 + $0x118] sm:$0xff] %vm238_vm0, %v1185_v44  ;;  %v1116_v26 = vmul.f32 %v2238_v58, %v1045_v38  ;;  %1445 = vrsqrt.f32 %v925_v63  ;;  %v863_v53 = vmul.f32 0.03125, %v767_v47  ;;  %v864_v29 = vmul.f32 0.03125, %v770_v1  ;;  %v2649_v44 = vld [vmem:[#allocation16_spill] sm:$0xff] }
 0x18f   : > { %v1434_v32 = vpop.eup %1433  ;;  %1250 = vst.msk [vmem:[%s2252_s25 + $0x120] sm:$0xff] %vm238_vm0, %v1186_v51  ;;  %v1117_v11 = vmul.f32 %v2238_v58, %v1046_v7  ;;  %1447 = vrsqrt.f32 %v926_v0 }
 0x190   : > { %v1436_v10 = vpop.eup %1435  ;;  %v1187_v48 = vadd.f32 %v2244_v34, %v1116_v26  ;;  %v1047_v8 = vmul.f32 %v1434_v32, %v2081_v19  ;;  %v927_v41 = vadd.f32 1e-05, %v863_v53  ;;  %v928_v31 = vadd.f32 1e-05, %v864_v29  ;;  %v2650_v29 = vld [vmem:[#allocation17_spill] sm:$0xff] }
 0x191   : > { %v1188_v20 = vadd.f32 %v2244_v34, %v1117_v11  ;;  %v1048_v54 = vmul.f32 %v1436_v10, %v2090_v52  ;;  %v773_v5 = vpop.xlane.xlu1 %772  ;;  %v776_v30 = vpop.xlane.xlu0 %775 }
 0x192   : > { %1251 = vst.msk [vmem:[%s2252_s25 + $0x128] sm:$0xff] %vm238_vm0, %v1187_v48  ;;  %v1118_v21 = vmul.f32 %v2238_v58, %v1047_v8  ;;  %1449 = vrsqrt.f32 %v927_v41  ;;  %v865_v62 = vmul.f32 0.03125, %v773_v5  ;;  %v866_v46 = vmul.f32 0.03125, %v776_v30  ;;  %v2651_v8 = vld [vmem:[#allocation18_spill] sm:$0xff] }
 0x193   : > { %v1438_v57 = vpop.eup %1437  ;;  %1252 = vst.msk [vmem:[%s2252_s25 + $0x130] sm:$0xff] %vm238_vm0, %v1188_v20  ;;  %v1119_v19 = vmul.f32 %v2238_v58, %v1048_v54  ;;  %1451 = vrsqrt.f32 %v928_v31 }
 0x194   : > { %v1440_v13 = vpop.eup %1439  ;;  %v1189_v52 = vadd.f32 %v2244_v34, %v1118_v21  ;;  %v1049_v36 = vmul.f32 %v1438_v57, %v2093_v27  ;;  %v929_v23 = vadd.f32 1e-05, %v865_v62  ;;  %v930_v22 = vadd.f32 1e-05, %v866_v46 }
 0x195   : > { %v1190_v59 = vadd.f32 %v2244_v34, %v1119_v19  ;;  %v1050_v33 = vmul.f32 %v1440_v13, %v2102_v56  ;;  %v779_v45 = vpop.xlane.xlu1 %778  ;;  %v782_v39 = vpop.xlane.xlu0 %781  ;;  %v2652_v19 = vld [vmem:[#allocation19_spill] sm:$0xff] }
 0x196   : > { %1253 = vst.msk [vmem:[%s2252_s25 + $0x138] sm:$0xff] %vm238_vm0, %v1189_v52  ;;  %v1120_v24 = vmul.f32 %v2238_v58, %v1049_v36  ;;  %1453 = vrsqrt.f32 %v929_v23  ;;  %v867_v12 = vmul.f32 0.03125, %v779_v45  ;;  %v868_v50 = vmul.f32 0.03125, %v782_v39 }
 0x197   : > { %v1442_v42 = vpop.eup %1441  ;;  %1254 = vst.msk [vmem:[%s2252_s25 + $0x140] sm:$0xff] %vm238_vm0, %v1190_v59  ;;  %v1121_v27 = vmul.f32 %v2238_v58, %v1050_v33  ;;  %1455 = vrsqrt.f32 %v930_v22  ;;  %v2653_v22 = vld [vmem:[#allocation2_spill] sm:$0xff] }
 0x198   : > { %v1444_v18 = vpop.eup %1443  ;;  %v1191_v56 = vadd.f32 %v2244_v34, %v1120_v24  ;;  %v1051_v61 = vmul.f32 %v1442_v42, %v2105_v35  ;;  %v931_v55 = vadd.f32 1e-05, %v867_v12  ;;  %v932_v40 = vadd.f32 1e-05, %v868_v50 }
 0x199   : > { %v1192_v3 = vadd.f32 %v2244_v34, %v1121_v27  ;;  %v1052_v2 = vmul.f32 %v1444_v18, %v2114_v60  ;;  %v785_v25 = vpop.xlane.xlu1 %784  ;;  %v788_v6 = vpop.xlane.xlu0 %787 }
 0x19a   : > { %1255 = vst.msk [vmem:[%s2252_s25 + $0x148] sm:$0xff] %vm238_vm0, %v1191_v56  ;;  %v1122_v14 = vmul.f32 %v2238_v58, %v1051_v61  ;;  %1457 = vrsqrt.f32 %v931_v55  ;;  %v869_v15 = vmul.f32 0.03125, %v785_v25  ;;  %v870_v49 = vmul.f32 0.03125, %v788_v6  ;;  %v2654_v56 = vld [vmem:[#allocation3_spill] sm:$0xff] }
 0x19b   : > { %v1446_v9 = vpop.eup %1445  ;;  %1256 = vst.msk [vmem:[%s2252_s25 + $0x150] sm:$0xff] %vm238_vm0, %v1192_v3  ;;  %v1123_v35 = vmul.f32 %v2238_v58, %v1052_v2  ;;  %1459 = vrsqrt.f32 %v932_v40  ;;  %v2655_v2 = vld [vmem:[#allocation4_spill] sm:$0xff] }
 0x19c   : > { %v1448_v28 = vpop.eup %1447  ;;  %v1193_v60 = vadd.f32 %v2244_v34, %v1122_v14  ;;  %v1053_v37 = vmul.f32 %v1446_v9, %v2117_v43  ;;  %v933_v17 = vadd.f32 1e-05, %v869_v15  ;;  %v934_v4 = vadd.f32 1e-05, %v870_v49 }
 0x19d   : > { %v1194_v16 = vadd.f32 %v2244_v34, %v1123_v35  ;;  %v1054_v38 = vmul.f32 %v1448_v28, %v2649_v44  ;;  %v791_v63 = vpop.xlane.xlu1 %790  ;;  %v794_v0 = vpop.xlane.xlu0 %793 }
 0x19e   : > { %1257 = vst.msk [vmem:[%s2252_s25 + $0x158] sm:$0xff] %vm238_vm0, %v1193_v60  ;;  %v1124_v51 = vmul.f32 %v2238_v58, %v1053_v37  ;;  %1461 = vrsqrt.f32 %v933_v17  ;;  %v871_v7 = vmul.f32 0.03125, %v791_v63  ;;  %v872_v47 = vmul.f32 0.03125, %v794_v0  ;;  %v2656_v17 = vld [vmem:[#allocation5_spill] sm:$0xff]  ;;  %v2657_v63 = vld [vmem:[#allocation6_spill] sm:$0xff] }
 0x19f   : > { %v1450_v1 = vpop.eup %1449  ;;  %1258 = vst.msk [vmem:[%s2252_s25 + $0x160] sm:$0xff] %vm238_vm0, %v1194_v16  ;;  %v1125_v43 = vmul.f32 %v2238_v58, %v1054_v38  ;;  %1463 = vrsqrt.f32 %v934_v4 }
 0x1a0   : > { %v1452_v26 = vpop.eup %1451  ;;  %v1195_v53 = vadd.f32 %v2244_v34, %v1124_v51  ;;  %v1055_v32 = vmul.f32 %v1450_v1, %v2650_v29  ;;  %v935_v11 = vadd.f32 1e-05, %v871_v7  ;;  %v936_v10 = vadd.f32 1e-05, %v872_v47  ;;  %v2658_v29 = vld [vmem:[#allocation7_spill] sm:$0xff] }
 0x1a1   : > { %v1196_v48 = vadd.f32 %v2244_v34, %v1125_v43  ;;  %v1056_v41 = vmul.f32 %v1452_v26, %v2651_v8  ;;  %v797_v31 = vpop.xlane.xlu1 %796  ;;  %v800_v20 = vpop.xlane.xlu0 %799 }
 0x1a2   : > { %1259 = vst.msk [vmem:[%s2252_s25 + $0x168] sm:$0xff] %vm238_vm0, %v1195_v53  ;;  %v1126_v54 = vmul.f32 %v2238_v58, %v1055_v32  ;;  %1465 = vrsqrt.f32 %v935_v11  ;;  %v873_v5 = vmul.f32 0.03125, %v797_v31  ;;  %v874_v30 = vmul.f32 0.03125, %v800_v20 }
 0x1a3   : > { %v1454_v21 = vpop.eup %1453  ;;  %1260 = vst.msk [vmem:[%s2252_s25 + $0x170] sm:$0xff] %vm238_vm0, %v1196_v48  ;;  %v1127_v62 = vmul.f32 %v2238_v58, %v1056_v41  ;;  %1467 = vrsqrt.f32 %v936_v10  ;;  %v2659_v48 = vld [vmem:[#allocation8_spill] sm:$0xff] }
 0x1a4   : > { %v1456_v46 = vpop.eup %1455  ;;  %v1197_v57 = vadd.f32 %v2244_v34, %v1126_v54  ;;  %v1057_v13 = vmul.f32 %v1454_v21, %v2652_v19  ;;  %v937_v52 = vadd.f32 1e-05, %v873_v5  ;;  %v938_v36 = vadd.f32 1e-05, %v874_v30  ;;  %v2660_v30 = vld [vmem:[#allocation9_spill] sm:$0xff] }
 0x1a5   : > { %v1198_v23 = vadd.f32 %v2244_v34, %v1127_v62  ;;  %v1058_v59 = vmul.f32 %v1456_v46, %v2653_v22  ;;  %v803_v33 = vpop.xlane.xlu1 %802  ;;  %v806_v45 = vpop.xlane.xlu0 %805  ;;  %v2661_v46 = vld [vmem:[#allocation10_spill] sm:$0xff]  ;;  %v2662_v22 = vld [vmem:[#allocation11_spill] sm:$0xff] }
 0x1a6   : > { %1261 = vst.msk [vmem:[%s2252_s25 + $0x178] sm:$0xff] %vm238_vm0, %v1197_v57  ;;  %v1128_v39 = vmul.f32 %v2238_v58, %v1057_v13  ;;  %1469 = vrsqrt.f32 %v937_v52  ;;  %v875_v24 = vmul.f32 0.03125, %v803_v33  ;;  %v876_v12 = vmul.f32 0.03125, %v806_v45  ;;  %v1483_v19 = vld [vmem:[%s2568_s1] ss:$0 sm:$0xff]  ;;  %v2663_v45 = vld [vmem:[#allocation12_spill] sm:$0xff] }
 0x1a7   : > { %v1458_v50 = vpop.eup %1457  ;;  %1262 = vst.msk [vmem:[%s2252_s25 + $0x180] sm:$0xff] %vm238_vm0, %v1198_v23  ;;  %v1129_v42 = vmul.f32 %v2238_v58, %v1058_v59  ;;  %1471 = vrsqrt.f32 %v938_v36 }
 0x1a8   : > { %v1460_v27 = vpop.eup %1459  ;;  %v1199_v18 = vadd.f32 %v2244_v34, %v1128_v39  ;;  %v1059_v61 = vmul.f32 %v1458_v50, %v2654_v56  ;;  %v939_v55 = vadd.f32 1e-05, %v875_v24  ;;  %v940_v40 = vadd.f32 1e-05, %v876_v12 }
 0x1a9   : > { %v1200_v3 = vadd.f32 %v2244_v34, %v1129_v42  ;;  %v1060_v25 = vmul.f32 %v1460_v27, %v2655_v2  ;;  %v809_v6 = vpop.xlane.xlu1 %808  ;;  %v812_v14 = vpop.xlane.xlu0 %811 }
 0x1aa   : > { %1263 = vst.msk [vmem:[%s2252_s25 + $0x188] sm:$0xff] %vm238_vm0, %v1199_v18  ;;  %v1130_v15 = vmul.f32 %v2238_v58, %v1059_v61  ;;  %1473 = vrsqrt.f32 %v939_v55  ;;  %v877_v49 = vmul.f32 0.03125, %v809_v6  ;;  %v878_v9 = vmul.f32 0.03125, %v812_v14  ;;  %v2664_v18 = vld [vmem:[#allocation13_spill] sm:$0xff]  ;;  %v2665_v55 = vld [vmem:[#allocation14_spill] sm:$0xff]  ;;  %v2666_v14 = vld [vmem:[#allocation20_spill] sm:$0xff] }
 0x1ab   : > { %v1462_v35 = vpop.eup %1461  ;;  %1264 = vst.msk [vmem:[%s2252_s25 + $0x190] sm:$0xff] %vm238_vm0, %v1200_v3  ;;  %v1131_v28 = vmul.f32 %v2238_v58, %v1060_v25  ;;  %1475 = vrsqrt.f32 %v940_v40 }
 0x1ac   : > { %v1464_v60 = vpop.eup %1463  ;;  %v1201_v37 = vadd.f32 %v2244_v34, %v1130_v15  ;;  %v1061_v4 = vmul.f32 %v1462_v35, %v2656_v17  ;;  %v941_v16 = vadd.f32 1e-05, %v877_v49  ;;  %v942_v44 = vadd.f32 1e-05, %v878_v9 }
 0x1ad   : > { %v1202_v38 = vadd.f32 %v2244_v34, %v1131_v28  ;;  %v1062_v0 = vmul.f32 %v1464_v60, %v2657_v63  ;;  %v815_v51 = vpop.xlane.xlu1 %814 }
 0x1ae   : > { %1265 = vst.msk [vmem:[%s2252_s25 + $0x198] sm:$0xff] %vm238_vm0, %v1201_v37  ;;  %v1132_v7 = vmul.f32 %v2238_v58, %v1061_v4  ;;  %1477 = vrsqrt.f32 %v941_v16  ;;  %v879_v47 = vmul.f32 0.03125, %v815_v51 }
 0x1af   : > { %v1466_v1 = vpop.eup %1465  ;;  %1266 = vst.msk [vmem:[%s2252_s25 + $0x1a0] sm:$0xff] %vm238_vm0, %v1202_v38  ;;  %v1133_v43 = vmul.f32 %v2238_v58, %v1062_v0  ;;  %1479 = vrsqrt.f32 %v942_v44 }
 0x1b0   : > { %v1468_v26 = vpop.eup %1467  ;;  %v1203_v53 = vadd.f32 %v2244_v34, %v1132_v7  ;;  %v1063_v32 = vmul.f32 %v1466_v1, %v2658_v29  ;;  %v943_v11 = vadd.f32 1e-05, %v879_v47 }
 0x1b1   : > { %v1204_v10 = vadd.f32 %v2244_v34, %v1133_v43  ;;  %v1064_v8 = vmul.f32 %v1468_v26, %v2659_v48 }
 0x1b2   : > { %1267 = vst.msk [vmem:[%s2252_s25 + $0x1a8] sm:$0xff] %vm238_vm0, %v1203_v53  ;;  %v1134_v41 = vmul.f32 %v2238_v58, %v1063_v32  ;;  %1481 = vrsqrt.f32 %v943_v11 }
 0x1b3   : > { %v1470_v31 = vpop.eup %1469  ;;  %1268 = vst.msk [vmem:[%s2252_s25 + $0x1b0] sm:$0xff] %vm238_vm0, %v1204_v10  ;;  %v1135_v20 = vmul.f32 %v2238_v58, %v1064_v8 }
 0x1b4   : > { %v1472_v54 = vpop.eup %1471  ;;  %v1205_v5 = vadd.f32 %v2244_v34, %v1134_v41  ;;  %v1065_v21 = vmul.f32 %v1470_v31, %v2660_v30 }
 0x1b5   : > { %v1206_v62 = vadd.f32 %v2244_v34, %v1135_v20  ;;  %v1066_v57 = vmul.f32 %v1472_v54, %v2661_v46  ;;  %v1484_v34 = vld [vmem:[%s2569_s2] ss:$0 sm:$0xff] }
 0x1b6   : > { %1269 = vst.msk [vmem:[%s2252_s25 + $0x1b8] sm:$0xff] %vm238_vm0, %v1205_v5  ;;  %v1136_v13 = vmul.f32 %v1483_v19, %v1065_v21 }
 0x1b7   : > { %v1474_v52 = vpop.eup %1473  ;;  %1270 = vst.msk [vmem:[%s2252_s25 + $0x1c0] sm:$0xff] %vm238_vm0, %v1206_v62  ;;  %v1137_v58 = vmul.f32 %v1483_v19, %v1066_v57 }
 0x1b8   : > { %v1476_v36 = vpop.eup %1475  ;;  %v1207_v23 = vadd.f32 %v1484_v34, %v1136_v13  ;;  %v1067_v59 = vmul.f32 %v1474_v52, %v2662_v22 }
 0x1b9   : > { %v1208_v33 = vadd.f32 %v1484_v34, %v1137_v58  ;;  %v1068_v39 = vmul.f32 %v1476_v36, %v2663_v45 }
 0x1ba   : > { %1271 = vst.msk [vmem:[%s2252_s25 + $0x1c8] sm:$0xff] %vm238_vm0, %v1207_v23  ;;  %v1138_v24 = vmul.f32 %v1483_v19, %v1067_v59 }
 0x1bb   : > { %v1478_v12 = vpop.eup %1477  ;;  %1272 = vst.msk [vmem:[%s2252_s25 + $0x1d0] sm:$0xff] %vm238_vm0, %v1208_v33  ;;  %v1139_v50 = vmul.f32 %v1483_v19, %v1068_v39 }
 0x1bc   : > { %v1480_v42 = vpop.eup %1479  ;;  %v1209_v27 = vadd.f32 %v1484_v34, %v1138_v24  ;;  %v1069_v56 = vmul.f32 %v1478_v12, %v2664_v18 }
 0x1bd   : > { %v1210_v61 = vadd.f32 %v1484_v34, %v1139_v50  ;;  %v1070_v40 = vmul.f32 %v1480_v42, %v2665_v55 }
 0x1be   : > { %1273 = vst.msk [vmem:[%s2252_s25 + $0x1d8] sm:$0xff] %vm238_vm0, %v1209_v27  ;;  %v1140_v3 = vmul.f32 %v1483_v19, %v1069_v56 }
 0x1bf   : > { %v1482_v2 = vpop.eup %1481  ;;  %1274 = vst.msk [vmem:[%s2252_s25 + $0x1e0] sm:$0xff] %vm238_vm0, %v1210_v61  ;;  %v1141_v25 = vmul.f32 %v1483_v19, %v1070_v40 }
 0x1c0   : > { %v1211_v6 = vadd.f32 %v1484_v34, %v1140_v3  ;;  %v1071_v15 = vmul.f32 %v1482_v2, %v2666_v14 }
 0x1c1   : > { %v1212_v49 = vadd.f32 %v1484_v34, %v1141_v25 }
 0x1c2   : > { %1275 = vst.msk [vmem:[%s2252_s25 + $0x1e8] sm:$0xff] %vm238_vm0, %v1211_v6  ;;  %v1142_v9 = vmul.f32 %v1483_v19, %v1071_v15 }
 0x1c3   : > { %1276 = vst.msk [vmem:[%s2252_s25 + $0x1f0] sm:$0xff] %vm238_vm0, %v1212_v49 }
 0x1c4   : > { %v1213_v35 = vadd.f32 %v1484_v34, %v1142_v9 }
 0x1c6   : > { %1277 = vst.msk [vmem:[%s2252_s25 + $0x1f8] sm:$0xff] %vm238_vm0, %v1213_v35 }
 0x1c7 PF: > { %s13_s12 = sadd.s32 1, %s1491_s12  }
 0x1c8   : > { %p10_p4 = scmp.ge.s32.totalorder %s13_s12, 4  }
 0x1ca   :  { %12 = sbr.rel (!%p10_p4) target bundleno = 1 (0x1), region = 62 }

// kernel: mixer_model_forward.17
= control target key start
LH: loop header
LB: loop body
LE: loop exit
PB: predicated region body
PF: predicated region fallthrough
CT: control target
= control target key end

     0   :  { %vm89_vm0 = vcmask 1040384   ;;  %v433_v1 = vmov 0   ;;  %vm76_vm1 = vcmask 269312   ;;  %vm259_vm2 = vcmask 261120   ;;  %s568_s1 = inlined_call_operand.vmem [shape: bf16[33,32], index: 1, kind: input, shape index: {}]   ;;  %s569_s0 = inlined_call_operand.vmem [shape: bf16[64,33], index: 0, kind: input, shape index: {}]   ;;  %s570_s3 = inlined_call_operand.vmem [shape: bf16[32,32], index: 3, kind: input, shape index: {}]   ;;  %s571_s2 = inlined_call_operand.vmem [shape: f32[1,32], index: 2, kind: input, shape index: {}]   ;;  %s572_s4 = inlined_call_operand.vmem [shape: f32[1,32], index: 4, kind: input, shape index: {}]   ;;  %s573_s5 = inlined_call_operand.vmem [shape: f32[64,32], index: 5, kind: output, shape index: {}]  }
   0x1   :  { %v408_v0 = vld [vmem:[%s568_s1 + $0x10] ss:$0 sps:$4 sm:$0x11]   ;;  %v91_v2 = vsel %vm89_vm0, 65535, %v433_v1  ;;  %v409_v4 = vld [vmem:[%s568_s1 + $0x8] sm:$0xff]   ;;  %v411_v5 = vld [vmem:[%s569_s0] sm:$0xff]  }
   0x2   :  { %v93_v3 = vand.u32 %v408_v0, %v91_v2  ;;  %387 = vmatprep.mubr.msk.bf16.mxu0 %vm76_vm1, %v411_v5  ;;  %v410_v6 = vld [vmem:[%s568_s1] sm:$0xff]   ;;  %v412_v7 = vld [vmem:[%s569_s0 + $0x8] sm:$0xff]   ;;  %v413_v8 = vld [vmem:[%s569_s0 + $0x10] sm:$0xff]  }
   0x3   :  { %v414_v9 = vld [vmem:[%s569_s0 + $0x18] sm:$0xff]   ;;  %v415_v10 = vld [vmem:[%s570_s3 + $0x8] sm:$0xff]   ;;  %v416_v11 = vld [vmem:[%s570_s3] sm:$0xff]  }
   0x4   :  { %381 = vmatprep.subr.bf16.mxu0 %v93_v3  ;;  %395 = vmatprep.subr.bf16.mxu1 %v415_v10  ;;  %v349_v12 = vld [vmem:[%s571_s2] ss:$0 sm:$0xff] }
   0x5   :  { %382 = vmatpush3.bf16.msra.mxu0 %v93_v3  ;;  %396 = vmatpush3.bf16.msra.mxu1 %v415_v10 }
   0x6   :  { %383 = vmatprep.subr.bf16.mxu0 %v409_v4  ;;  %397 = vmatprep.subr.bf16.mxu1 %v416_v11 }
   0x9   :  { %384 = vmatpush3.bf16.msra.mxu0 %v409_v4  ;;  %398 = vmatpush3.bf16.msra.mxu1 %v416_v11 }
   0xa   :  { %385 = vmatprep.subr.bf16.mxu0 %v410_v6 }
   0xd   :  { %386 = vmatpush3.bf16.msra.mxu0 %v410_v6 }
  0x10   :  { %388 = vmatmul.mubr.msk.bf16.vlgmr.msra.gmra.mxu0 %vm76_vm1, %v412_v7 }
  0x11   :  { %391 = vmatprep.mubr.msk.bf16.mxu0 %vm76_vm1, %v413_v8 }
  0x18   :  { %392 = vmatmul.mubr.msk.bf16.gmra.mxu0 %vm76_vm1, %v414_v9 }
  0xd0   :  { %v389_v13 = vpop.f32.mrf.mxu0 }
  0xd1   :  { %v494_v14 = vadd.f32 %v389_v13, %v349_v12 }
  0xd2   :  { %v129_v15 = vpop.f32.mrf.mxu0 }
  0xd3   :  { %v170_v16 = vmul.f32 0.044715, %v494_v14  ;;  %v497_v17 = vadd.f32 %v349_v12, %v129_v15 }
  0xd4   :  { %v390_v18 = vpop.f32.mrf.mxu0 }
  0xd5   :  { %v178_v19 = vmul.f32 %v170_v16, %v494_v14  ;;  %v168_v20 = vmul.f32 0.044715, %v497_v17  ;;  %v141_v21 = vadd.f32 %v390_v18, %v349_v12  ;;  %v160_v13 = vmul.f32 0.5, %v497_v17 }
  0xd6   :  { %v132_v22 = vpop.f32.mrf.mxu0  ;;  %v162_v18 = vmul.f32 0.5, %v494_v14 }
  0xd7   :  { %v186_v23 = vmul.f32 %v178_v19, %v494_v14  ;;  %v176_v24 = vmul.f32 %v168_v20, %v497_v17  ;;  %v171_v25 = vmul.f32 0.044715, %v141_v21  ;;  %v133_v26 = vadd.f32 %v349_v12, %v132_v22 }
  0xd8   :  { %v393_v27 = vpop.f32.mrf.mxu0  ;;  %v163_v11 = vmul.f32 0.5, %v141_v21 }
  0xd9   :  { %v194_v28 = vadd.f32 %v186_v23, %v494_v14  ;;  %v179_v29 = vmul.f32 %v171_v25, %v141_v21  ;;  %v169_v30 = vmul.f32 0.044715, %v133_v26  ;;  %v504_v31 = vadd.f32 %v393_v27, %v349_v12 }
  0xda   :  { %v145_v32 = vpop.f32.mrf.mxu0  ;;  %v184_v33 = vmul.f32 %v176_v24, %v497_v17  ;;  %v161_v15 = vmul.f32 0.5, %v133_v26 }
  0xdb   :  { %v202_v34 = vmul.f32 0.7978846, %v194_v28  ;;  %v187_v35 = vmul.f32 %v179_v29, %v141_v21  ;;  %v177_v36 = vmul.f32 %v169_v30, %v133_v26  ;;  %v174_v37 = vmul.f32 0.044715, %v504_v31 }
  0xdc   :  { %v508_v38 = vadd.f32 %v349_v12, %v145_v32  ;;  %v394_v39 = vpop.f32.mrf.mxu0  ;;  %v192_v40 = vadd.f32 %v184_v33, %v497_v17 }
  0xdd   :  { %v195_v41 = vadd.f32 %v187_v35, %v141_v21  ;;  %v182_v42 = vmul.f32 %v174_v37, %v504_v31  ;;  %v512_v43 = vadd.f32 %v394_v39, %v349_v12  ;;  %417 = vtanh.f32 %v202_v34 }
  0xde   :  { %v172_v44 = vmul.f32 0.044715, %v508_v38  ;;  %v148_v45 = vpop.f32.mrf.mxu0  ;;  %v185_v46 = vmul.f32 %v177_v36, %v133_v26  ;;  %v200_v47 = vmul.f32 0.7978846, %v192_v40  ;;  %v164_v17 = vmul.f32 0.5, %v508_v38 }
  0xdf   :  { %v203_v48 = vmul.f32 0.7978846, %v195_v41  ;;  %v190_v49 = vmul.f32 %v182_v42, %v504_v31  ;;  %v175_v50 = vmul.f32 0.044715, %v512_v43  ;;  %v149_v51 = vadd.f32 %v349_v12, %v148_v45 }
  0xe0   :  { %v180_v52 = vmul.f32 %v172_v44, %v508_v38  ;;  %v193_v53 = vadd.f32 %v185_v46, %v133_v26  ;;  %419 = vtanh.f32 %v200_v47  ;;  %v167_v33 = vmul.f32 0.5, %v512_v43 }
  0xe1   :  { %421 = vtanh.f32 %v203_v48  ;;  %v198_v54 = vadd.f32 %v190_v49, %v504_v31  ;;  %v183_v55 = vmul.f32 %v175_v50, %v512_v43  ;;  %v173_v56 = vmul.f32 0.044715, %v149_v51 }
  0xe2   :  { %v188_v57 = vmul.f32 %v180_v52, %v508_v38  ;;  %v201_v58 = vmul.f32 0.7978846, %v193_v53  ;;  %v165_v14 = vmul.f32 0.5, %v149_v51  ;;  %v166_v37 = vmul.f32 0.5, %v504_v31 }
  0xe3   :  { %v206_v59 = vmul.f32 0.7978846, %v198_v54  ;;  %v191_v60 = vmul.f32 %v183_v55, %v512_v43  ;;  %v181_v61 = vmul.f32 %v173_v56, %v149_v51 }
  0xe4   :  { %v196_v62 = vadd.f32 %v188_v57, %v508_v38  ;;  %423 = vtanh.f32 %v201_v58  ;;  %v361_v38 = vld [vmem:[%s572_s4] ss:$0 sm:$0xff] }
  0xe5   :  { %v199_v63 = vadd.f32 %v191_v60, %v512_v43  ;;  %v189_v0 = vmul.f32 %v181_v61, %v149_v51  ;;  %425 = vtanh.f32 %v206_v59 }
  0xe6   :  { %v204_v1 = vmul.f32 0.7978846, %v196_v62 }
  0xe7   :  { %v207_v2 = vmul.f32 0.7978846, %v199_v63  ;;  %v197_v3 = vadd.f32 %v189_v0, %v149_v51 }
  0xe8   :  { %427 = vtanh.f32 %v204_v1 }
  0xe9   :  { %429 = vtanh.f32 %v207_v2  ;;  %v205_v4 = vmul.f32 0.7978846, %v197_v3 }
  0xea   :  { %v418_v5 = vpop.eup %417 }
  0xeb   :  { %431 = vtanh.f32 %v205_v4  ;;  %v218_v12 = vadd.f32 1.0, %v418_v5 }
  0xed   :  { %v420_v6 = vpop.eup %419  ;;  %v226_v25 = vmul.f32 %v218_v12, %v162_v18 }
  0xee   :  { %v422_v7 = vpop.eup %421  ;;  %v216_v9 = vadd.f32 1.0, %v420_v6 }
  0xef   :  { %v219_v8 = vadd.f32 1.0, %v422_v7 }
  0xf0   :  { %v224_v22 = vmul.f32 %v216_v9, %v160_v13 }
  0xf1   :  { %v424_v10 = vpop.eup %423  ;;  %v227_v19 = vmul.f32 %v219_v8, %v163_v11 }
  0xf2   :  { %v217_v16 = vadd.f32 1.0, %v424_v10  ;;  %v426_v20 = vpop.eup %425 }
  0xf3   :  { %v233_v29 = vpack.c.bf16 %v227_v19, %v226_v25  ;;  %v222_v34 = vadd.f32 1.0, %v426_v20 }
  0xf4   :  { %v225_v23 = vmul.f32 %v217_v16, %v161_v15 }
  0xf5   :  { %v428_v24 = vpop.eup %427  ;;  %v230_v41 = vmul.f32 %v222_v34, %v166_v37 }
  0xf6   :  { %v430_v27 = vpop.eup %429  ;;  %v232_v28 = vpack.c.bf16 %v225_v23, %v224_v22  ;;  %v220_v30 = vadd.f32 1.0, %v428_v24 }
  0xf7   :  { %v223_v32 = vadd.f32 1.0, %v430_v27 }
  0xf8   :  { %v432_v21 = vpop.eup %431  ;;  %399 = vmatprep.mubr.msk.bf16.mxu1 %vm259_vm2, %v232_v28  ;;  %v228_v35 = vmul.f32 %v220_v30, %v164_v17 }
  0xf9   :  { %400 = vmatmul.mubr.msk.bf16.vlgmr.msra.gmra.mxu1 %vm259_vm2, %v233_v29  ;;  %v221_v26 = vadd.f32 1.0, %v432_v21  ;;  %v231_v39 = vmul.f32 %v223_v32, %v167_v33 }
  0xfb   :  { %v229_v36 = vmul.f32 %v221_v26, %v165_v14  ;;  %v235_v42 = vpack.c.bf16 %v231_v39, %v230_v41 }
  0xfd   :  { %v234_v40 = vpack.c.bf16 %v229_v36, %v228_v35 }
  0xff   :  { %403 = vmatprep.mubr.msk.bf16.mxu1 %vm259_vm2, %v234_v40 }
 0x101   :  { %404 = vmatmul.mubr.msk.bf16.gmra.mxu1 %vm259_vm2, %v235_v42 }
 0x1b9   :  { %v401_v44 = vpop.f32.mrf.mxu1 }
 0x1ba   :  { %v315_v45 = vadd.f32 %v401_v44, %v361_v38 }
 0x1bb   :  { %v306_v43 = vpop.f32.mrf.mxu1 }
 0x1bc   :  { %339 = vst.msk [vmem:[%s573_s5 + $0x10] sm:$0xff] %vm259_vm2, %v315_v45  ;;  %v307_v31 = vadd.f32 %v361_v38, %v306_v43 }
 0x1bd   :  { %v402_v46 = vpop.f32.mrf.mxu1 }
 0x1be   :  { %337 = vst.msk [vmem:[%s573_s5] sm:$0xff] %vm259_vm2, %v307_v31  ;;  %v318_v47 = vadd.f32 %v402_v46, %v361_v38 }
 0x1bf   :  { %v309_v48 = vpop.f32.mrf.mxu1 }
 0x1c0   :  { %340 = vst.msk [vmem:[%s573_s5 + $0x18] sm:$0xff] %vm259_vm2, %v318_v47  ;;  %v310_v49 = vadd.f32 %v361_v38, %v309_v48 }
 0x1c1   :  { %v405_v50 = vpop.f32.mrf.mxu1 }
 0x1c2   :  { %338 = vst.msk [vmem:[%s573_s5 + $0x8] sm:$0xff] %vm259_vm2, %v310_v49  ;;  %v331_v51 = vadd.f32 %v405_v50, %v361_v38 }
 0x1c3   :  { %v322_v52 = vpop.f32.mrf.mxu1 }
 0x1c4   :  { %343 = vst.msk [vmem:[%s573_s5 + $0x30] sm:$0xff] %vm259_vm2, %v331_v51  ;;  %v323_v53 = vadd.f32 %v361_v38, %v322_v52 }
 0x1c5   :  { %v406_v54 = vpop.f32.mrf.mxu1 }
 0x1c6   :  { %341 = vst.msk [vmem:[%s573_s5 + $0x20] sm:$0xff] %vm259_vm2, %v323_v53  ;;  %v334_v55 = vadd.f32 %v406_v54, %v361_v38 }
 0x1c7   :  { %v325_v56 = vpop.f32.mrf.mxu1 }
 0x1c8   :  { %344 = vst.msk [vmem:[%s573_s5 + $0x38] sm:$0xff] %vm259_vm2, %v334_v55  ;;  %v326_v57 = vadd.f32 %v361_v38, %v325_v56 }
 0x1ca   :  { %342 = vst.msk [vmem:[%s573_s5 + $0x28] sm:$0xff] %vm259_vm2, %v326_v57 }

// kernel: mixer_model_forward.18
= control target key start
LH: loop header
LB: loop body
LE: loop exit
PB: predicated region body
PF: predicated region fallthrough
CT: control target
= control target key end

     0   :  { %vm66_vm0 = vcmask 261120   ;;  %s260_s1 = inlined_call_operand.vmem [shape: bf16[32,128], index: 1, kind: input, shape index: {}]   ;;  %s261_s0 = inlined_call_operand.vmem [shape: bf16[64,32], index: 0, kind: input, shape index: {}]   ;;  %s262_s2 = inlined_call_operand.vmem [shape: f32[1,128], index: 2, kind: input, shape index: {}]   ;;  %s263_s3 = inlined_call_operand.vmem [shape: f32[64,128], index: 3, kind: output, shape index: {}]  }
   0x1   :  { %v189_v0 = vld [vmem:[%s260_s1 + $0x8] sm:$0xff]   ;;  %v190_v1 = vld [vmem:[%s260_s1] sm:$0xff]   ;;  %v192_v3 = vld [vmem:[%s261_s0 + $0x10] sm:$0xff]  }
   0x2   :  { %173 = vmatprep.subr.bf16.mxu0 %v189_v0  ;;  %185 = vmatprep.subr.bf16.mxu1 %v189_v0  ;;  %v191_v2 = vld [vmem:[%s261_s0] sm:$0xff]   ;;  %v193_v4 = vld [vmem:[%s261_s0 + $0x8] sm:$0xff]   ;;  %v194_v5 = vld [vmem:[%s261_s0 + $0x18] sm:$0xff]  }
   0x3   :  { %174 = vmatpush3.bf16.msra.mxu0 %v189_v0  ;;  %187 = vmatpush3.bf16.msra.mxu1 %v189_v0  ;;  %v156_v6 = vld [vmem:[%s262_s2] ss:$0 sm:$0xff] }
   0x4   :  { %175 = vmatprep.subr.bf16.mxu0 %v190_v1  ;;  %186 = vmatprep.subr.bf16.mxu1 %v190_v1 }
   0x5   :  { %177 = vmatprep.mubr.msk.bf16.mxu0 %vm66_vm0, %v191_v2  ;;  %181 = vmatprep.mubr.msk.bf16.mxu1 %vm66_vm0, %v192_v3 }
   0x7   :  { %176 = vmatpush3.bf16.msra.mxu0 %v190_v1  ;;  %188 = vmatpush3.bf16.msra.mxu1 %v190_v1 }
   0xa   :  { %178 = vmatmul.mubr.msk.bf16.vlgmr.msra.gmra.mxu0 %vm66_vm0, %v193_v4  ;;  %182 = vmatmul.mubr.msk.bf16.vlgmr.msra.gmra.mxu1 %vm66_vm0, %v194_v5 }
  0xca   :  { %v179_v7 = vpop.f32.mrf.mxu0  ;;  %v183_v8 = vpop.f32.mrf.mxu1 }
  0xcb   :  { %v122_v9 = vadd.f32 %v179_v7, %v156_v6  ;;  %v138_v10 = vadd.f32 %v183_v8, %v156_v6 }
  0xcc   :  { %v113_v11 = vpop.f32.mrf.mxu0  ;;  %v129_v12 = vpop.f32.mrf.mxu1 }
  0xcd   :  { %146 = vst [vmem:[%s263_s3 + $0x10] sm:$0xff] %v122_v9  ;;  %150 = vst [vmem:[%s263_s3 + $0x30] sm:$0xff] %v138_v10  ;;  %v114_v13 = vadd.f32 %v156_v6, %v113_v11  ;;  %v130_v14 = vadd.f32 %v156_v6, %v129_v12 }
  0xce   :  { %v180_v15 = vpop.f32.mrf.mxu0  ;;  %v184_v16 = vpop.f32.mrf.mxu1 }
  0xcf   :  { %144 = vst [vmem:[%s263_s3] sm:$0xff] %v114_v13  ;;  %148 = vst [vmem:[%s263_s3 + $0x20] sm:$0xff] %v130_v14  ;;  %v125_v17 = vadd.f32 %v180_v15, %v156_v6  ;;  %v141_v18 = vadd.f32 %v184_v16, %v156_v6 }
  0xd0   :  { %v116_v19 = vpop.f32.mrf.mxu0  ;;  %v132_v20 = vpop.f32.mrf.mxu1 }
  0xd1   :  { %147 = vst [vmem:[%s263_s3 + $0x18] sm:$0xff] %v125_v17  ;;  %151 = vst [vmem:[%s263_s3 + $0x38] sm:$0xff] %v141_v18  ;;  %v117_v21 = vadd.f32 %v156_v6, %v116_v19  ;;  %v133_v22 = vadd.f32 %v156_v6, %v132_v20 }
  0xd3   :  { %145 = vst [vmem:[%s263_s3 + $0x8] sm:$0xff] %v117_v21  ;;  %149 = vst [vmem:[%s263_s3 + $0x28] sm:$0xff] %v133_v22 }

// kernel: mixer_model_forward.20
= control target key start
LH: loop header
LB: loop body
LE: loop exit
PB: predicated region body
PF: predicated region fallthrough
CT: control target
= control target key end

     0   :  { %vm110_vm0 = vcmask 523264   ;;  %vm232_vm1 = vcmask 261120   ;;  %s461_s1 = inlined_call_operand.vmem [shape: bf16[64,32], index: 1, kind: input, shape index: {}]   ;;  %s462_s0 = inlined_call_operand.vmem [shape: bf16[128,64], index: 0, kind: input, shape index: {}]   ;;  %s463_s2 = inlined_call_operand.vmem [shape: f32[1,32], index: 2, kind: input, shape index: {}]   ;;  %s464_s3 = inlined_call_operand.vmem [shape: f32[128,32], index: 3, kind: output, shape index: {}]  }
   0x1   :  { %v318_v0 = vld [vmem:[%s461_s1 + $0x18] sm:$0xff]   ;;  %v319_v1 = vld [vmem:[%s461_s1 + $0x10] sm:$0xff]   ;;  %v320_v2 = vld [vmem:[%s461_s1 + $0x8] sm:$0xff]  }
   0x2   :  { %286 = vmatprep.subr.bf16.mxu0 %v318_v0  ;;  %310 = vmatprep.subr.bf16.mxu1 %v318_v0  ;;  %v322_v3 = vld [vmem:[%s462_s0] sm:$0xff]   ;;  %v324_v6 = vld [vmem:[%s462_s0 + $0x8] sm:$0xff]   ;;  %v326_v8 = vld [vmem:[%s462_s0 + $0x10] sm:$0xff]  }
   0x3   :  { %287 = vmatpush3.bf16.msra.mxu0 %v318_v0  ;;  %314 = vmatpush3.bf16.msra.mxu1 %v318_v0  ;;  %v323_v4 = vld [vmem:[%s462_s0 + $0x20] sm:$0xff]   ;;  %v325_v7 = vld [vmem:[%s462_s0 + $0x28] sm:$0xff]   ;;  %v327_v9 = vld [vmem:[%s462_s0 + $0x30] sm:$0xff]  }
   0x4   :  { %288 = vmatprep.subr.bf16.mxu0 %v319_v1  ;;  %311 = vmatprep.subr.bf16.mxu1 %v319_v1  ;;  %v321_v5 = vld [vmem:[%s461_s1] sm:$0xff]   ;;  %v328_v10 = vld [vmem:[%s462_s0 + $0x18] sm:$0xff]  }
   0x5   :  { %294 = vmatprep.mubr.msk.bf16.mxu0 %vm110_vm0, %v322_v3  ;;  %302 = vmatprep.mubr.msk.bf16.mxu1 %vm110_vm0, %v323_v4  ;;  %v329_v11 = vld [vmem:[%s462_s0 + $0x38] sm:$0xff]   ;;  %v253_v12 = vld [vmem:[%s463_s2] ss:$0 sm:$0xff] }
   0x7   :  { %289 = vmatpush3.bf16.msra.mxu0 %v319_v1  ;;  %315 = vmatpush3.bf16.msra.mxu1 %v319_v1 }
   0x8   :  { %290 = vmatprep.subr.bf16.mxu0 %v320_v2  ;;  %312 = vmatprep.subr.bf16.mxu1 %v320_v2 }
   0xb   :  { %291 = vmatpush3.bf16.msra.mxu0 %v320_v2  ;;  %316 = vmatpush3.bf16.msra.mxu1 %v320_v2 }
   0xc   :  { %292 = vmatprep.subr.bf16.mxu0 %v321_v5  ;;  %313 = vmatprep.subr.bf16.mxu1 %v321_v5 }
   0xf   :  { %293 = vmatpush3.bf16.msra.mxu0 %v321_v5  ;;  %317 = vmatpush3.bf16.msra.mxu1 %v321_v5 }
  0x12   :  { %295 = vmatmul.mubr.msk.bf16.vlgmr.msra.gmra.mxu0 %vm110_vm0, %v324_v6  ;;  %303 = vmatmul.mubr.msk.bf16.vlgmr.msra.gmra.mxu1 %vm110_vm0, %v325_v7 }
  0x13   :  { %298 = vmatprep.mubr.msk.bf16.mxu0 %vm110_vm0, %v326_v8  ;;  %306 = vmatprep.mubr.msk.bf16.mxu1 %vm110_vm0, %v327_v9 }
  0x1a   :  { %299 = vmatmul.mubr.msk.bf16.gmra.mxu0 %vm110_vm0, %v328_v10  ;;  %307 = vmatmul.mubr.msk.bf16.gmra.mxu1 %vm110_vm0, %v329_v11 }
  0xd2   :  { %v296_v13 = vpop.f32.mrf.mxu0  ;;  %v304_v14 = vpop.f32.mrf.mxu1 }
  0xd3   :  { %v178_v15 = vadd.f32 %v296_v13, %v253_v12  ;;  %v210_v16 = vadd.f32 %v304_v14, %v253_v12 }
  0xd4   :  { %v169_v17 = vpop.f32.mrf.mxu0  ;;  %v201_v18 = vpop.f32.mrf.mxu1 }
  0xd5   :  { %235 = vst.msk [vmem:[%s464_s3 + $0x10] sm:$0xff] %vm232_vm1, %v178_v15  ;;  %243 = vst.msk [vmem:[%s464_s3 + $0x50] sm:$0xff] %vm232_vm1, %v210_v16  ;;  %v170_v19 = vadd.f32 %v253_v12, %v169_v17  ;;  %v202_v20 = vadd.f32 %v253_v12, %v201_v18 }
  0xd6   :  { %v297_v21 = vpop.f32.mrf.mxu0  ;;  %v305_v22 = vpop.f32.mrf.mxu1 }
  0xd7   :  { %233 = vst.msk [vmem:[%s464_s3] sm:$0xff] %vm232_vm1, %v170_v19  ;;  %241 = vst.msk [vmem:[%s464_s3 + $0x40] sm:$0xff] %vm232_vm1, %v202_v20  ;;  %v181_v23 = vadd.f32 %v297_v21, %v253_v12  ;;  %v213_v24 = vadd.f32 %v305_v22, %v253_v12 }
  0xd8   :  { %v172_v25 = vpop.f32.mrf.mxu0  ;;  %v204_v26 = vpop.f32.mrf.mxu1 }
  0xd9   :  { %236 = vst.msk [vmem:[%s464_s3 + $0x18] sm:$0xff] %vm232_vm1, %v181_v23  ;;  %244 = vst.msk [vmem:[%s464_s3 + $0x58] sm:$0xff] %vm232_vm1, %v213_v24  ;;  %v173_v27 = vadd.f32 %v253_v12, %v172_v25  ;;  %v205_v28 = vadd.f32 %v253_v12, %v204_v26 }
  0xda   :  { %v300_v29 = vpop.f32.mrf.mxu0  ;;  %v308_v30 = vpop.f32.mrf.mxu1 }
  0xdb   :  { %234 = vst.msk [vmem:[%s464_s3 + $0x8] sm:$0xff] %vm232_vm1, %v173_v27  ;;  %242 = vst.msk [vmem:[%s464_s3 + $0x48] sm:$0xff] %vm232_vm1, %v205_v28  ;;  %v194_v31 = vadd.f32 %v300_v29, %v253_v12  ;;  %v226_v32 = vadd.f32 %v308_v30, %v253_v12 }
  0xdc   :  { %v185_v33 = vpop.f32.mrf.mxu0  ;;  %v217_v34 = vpop.f32.mrf.mxu1 }
  0xdd   :  { %239 = vst.msk [vmem:[%s464_s3 + $0x30] sm:$0xff] %vm232_vm1, %v194_v31  ;;  %247 = vst.msk [vmem:[%s464_s3 + $0x70] sm:$0xff] %vm232_vm1, %v226_v32  ;;  %v186_v35 = vadd.f32 %v253_v12, %v185_v33  ;;  %v218_v36 = vadd.f32 %v253_v12, %v217_v34 }
  0xde   :  { %v301_v37 = vpop.f32.mrf.mxu0  ;;  %v309_v38 = vpop.f32.mrf.mxu1 }
  0xdf   :  { %237 = vst.msk [vmem:[%s464_s3 + $0x20] sm:$0xff] %vm232_vm1, %v186_v35  ;;  %245 = vst.msk [vmem:[%s464_s3 + $0x60] sm:$0xff] %vm232_vm1, %v218_v36  ;;  %v197_v39 = vadd.f32 %v301_v37, %v253_v12  ;;  %v229_v40 = vadd.f32 %v309_v38, %v253_v12 }
  0xe0   :  { %v188_v41 = vpop.f32.mrf.mxu0  ;;  %v220_v42 = vpop.f32.mrf.mxu1 }
  0xe1   :  { %240 = vst.msk [vmem:[%s464_s3 + $0x38] sm:$0xff] %vm232_vm1, %v197_v39  ;;  %248 = vst.msk [vmem:[%s464_s3 + $0x78] sm:$0xff] %vm232_vm1, %v229_v40  ;;  %v189_v43 = vadd.f32 %v253_v12, %v188_v41  ;;  %v221_v44 = vadd.f32 %v253_v12, %v220_v42 }
  0xe3   :  { %238 = vst.msk [vmem:[%s464_s3 + $0x28] sm:$0xff] %vm232_vm1, %v189_v43  ;;  %246 = vst.msk [vmem:[%s464_s3 + $0x68] sm:$0xff] %vm232_vm1, %v221_v44 }

// kernel: mixer_model_forward.19
= control target key start
LH: loop header
LB: loop body
LE: loop exit
PB: predicated region body
PF: predicated region fallthrough
CT: control target
= control target key end

     0   :  { %s1503_s13 = smov 0   ;;  %s1708_s0 = inlined_call_operand.vmem [shape: f32[4,32,64], index: 0, kind: input, shape index: {}]   ;;  %s1709_s1 = inlined_call_operand.vmem [shape: f32[4,32,64], index: 1, kind: input, shape index: {}]   ;;  %s1710_s2 = inlined_call_operand.vmem [shape: f32[4,64], index: 2, kind: input, shape index: {}]   ;;  %s1711_s3 = inlined_call_operand.vmem [shape: f32[1,64], index: 3, kind: input, shape index: {}]   ;;  %s1712_s4 = inlined_call_operand.vmem [shape: bf16[64,64], index: 4, kind: input, shape index: {}]   ;;  %s1713_s5 = inlined_call_operand.vmem [shape: bf16[64,16], index: 5, kind: input, shape index: {}]   ;;  %s1714_s6 = inlined_call_operand.vmem [shape: bf16[64,16], index: 6, kind: input, shape index: {}]   ;;  %s1715_s7 = inlined_call_operand.vmem [shape: f32[16,64], index: 7, kind: input, shape index: {}]   ;;  %s1716_s8 = inlined_call_operand.vmem [shape: f32[1,64], index: 8, kind: input, shape index: {}]   ;;  %s1717_s9 = inlined_call_operand.vmem [shape: f32[1,64], index: 9, kind: input, shape index: {}]   ;;  %s1718_s10 = inlined_call_operand.vmem [shape: f32[4,32,64], index: 10, kind: output, shape index: {}]  }
   0x1 LB: > { %s1184_s14 = sadd.s32 4294967295, %s1431_s13   ;;  %p1188_p0 = scmp.ge.s32.totalorder %s1431_s13, 1  ;;  %s1431_s13 = sphi %s1503_s13, %s20_s13  }
   0x2   : > { %p322_p1 = scmp.lt.s32.totalorder %s1431_s13, 5 }
   0x4   : > { %p323_p2 = pnand %p1188_p0, %p322_p1 }
   0x5   : > { %p365_p3 = scmp.lt.s32.totalorder (!%p323_p2), %s1184_s14, 3  ;;  %s1664_s30 = smov (!%p323_p2), 0  }
   0x6   : > { %326 = sbr.rel (%p323_p2) target bundleno = 731 (0x2db), region = 60 }
   0xb   : > { %v1349_v0 = vld [vmem:[%s1712_s4 + $0x18] sm:$0xff]   ;;  %v1350_v1 = vld [vmem:[%s1712_s4 + $0x10] sm:$0xff]   ;;  %s1720_s14 = smov (!%p365_p3, %s1184_s14), 3  ;;  %v1351_v2 = vld [vmem:[%s1712_s4 + $0x8] sm:$0xff]   ;;  %vm397_vm0 = vcmask 1042432   ;;  %vm423_vm1 = vcmask 1041408  }
   0xc   : > { %1264 = vmatprep.subr.bf16.mxu0 %v1349_v0  ;;  %s1236_s21 = sshll.u32 %s1720_s14, 5  ;;  %v1196_v3 = vld [vmem:[%s1710_s2] ss:$0 sm:$0xff]  ;;  %v1534_v4 = vld [vmem:[%s1710_s2 + $0x1] ss:$0 sm:$0xff]  ;;  %vm449_vm2 = vcmask 1040384  }
   0xd   : > { %1265 = vmatpush3.bf16.msra.mxu0 %v1349_v0  ;;  %s369_s24 = scalar_lea.vmem %s1708_s0, %s1236_s21  ;;  %s1526_s27 = scalar_lea.vmem %s1709_s1, %s1236_s21  ;;  %v1539_v5 = vld [vmem:[%s1710_s2 + $0x3] ss:$0 sm:$0xff]  ;;  %v1195_v10 = vld [vmem:[%s1711_s3] ss:$0 sm:$0xff]  ;;  %v1198_v15 = vld [vmem:[%s1710_s2 + $0x2] ss:$0 sm:$0xff] }
   0xe   : > { %1266 = vmatprep.subr.bf16.mxu0 %v1350_v1  ;;  %v1352_v6 = vld [vmem:[%s1712_s4] sm:$0xff]   ;;  %s1547_s19 = scalar_lea.vmem %s1718_s10, %s1236_s21  ;;  %v1549_v8 = vld [vmem:[%s369_s24 + $0x8] sm:$0xff]  ;;  %v1551_v9 = vld [vmem:[%s369_s24 + $0x10] sm:$0xff]  ;;  %vm515_vm3 = vcmask 523264   ;;  %vm737_vm6 = vcmask 130048  }
   0xf   : > { %v381_v7 = vld [vmem:[%s369_s24] sm:$0xff]  ;;  %v399_v12 = vrot.slane %v1549_v8, 5  ;;  %v425_v14 = vrot.slane %v1549_v8, 6  ;;  %v1561_v16 = vld [vmem:[%s369_s24 + $0x18] sm:$0xff]  ;;  %v451_v19 = vrot.slane %v1549_v8, 7  ;;  %v480_v21 = vmul.f32 %v1539_v5, %v1549_v8  ;;  %v1355_v34 = vld [vmem:[%s1713_s5 + $0x10] sm:$0xff]  }
  0x10   : > { %v398_v11 = vrot.slane %v381_v7, 5  ;;  %v424_v13 = vrot.slane %v381_v7, 6  ;;  %v1353_v17 = vld [vmem:[%s1713_s5 + $0x18] sm:$0xff]   ;;  %v450_v18 = vrot.slane %v381_v7, 7  ;;  %v479_v20 = vmul.f32 %v1539_v5, %v381_v7  ;;  %v1357_v44 = vld [vmem:[%s1713_s5 + $0x8] sm:$0xff]   ;;  %v1359_v53 = vld [vmem:[%s1713_s5] sm:$0xff]  }
  0x11   : > { %1267 = vmatpush3.bf16.msra.mxu0 %v1350_v1  ;;  %1276 = vmatprep.subr.bf16.mxu1 %v1353_v17  ;;  %v401_v32 = vrot.slane %v1551_v9, 5  ;;  %v403_v33 = vrot.slane %v1561_v16, 5  ;;  %v1586_v39 = vld [vmem:[%s1714_s6 + $0x18] sm:$0xff]   ;;  %v427_v42 = vrot.slane %v1551_v9, 6  ;;  %v429_v43 = vrot.slane %v1561_v16, 6 }
  0x12   : > { %1268 = vmatprep.subr.bf16.mxu0 %v1351_v2  ;;  %v400_v22 = vsel %vm397_vm0, %v398_v11, %v399_v12  ;;  %v409_v23 = vsel %vm397_vm0, 0.0, %v398_v11  ;;  %v426_v24 = vsel %vm423_vm1, %v424_v13, %v425_v14  ;;  %v435_v25 = vsel %vm423_vm1, 0.0, %v424_v13  ;;  %1277 = vmatpush3.bf16.msra.mxu1 %v1353_v17 }
  0x13   : > { %v414_v26 = vmul.f32 %v1196_v3, %v409_v23  ;;  %v415_v27 = vmul.f32 %v1196_v3, %v400_v22  ;;  %v440_v28 = vmul.f32 %v1534_v4, %v435_v25  ;;  %v441_v29 = vmul.f32 %v1534_v4, %v426_v24  ;;  %1278 = vmatprep.subr.bf16.mxu1 %v1355_v34 }
  0x14   : > { %v452_v30 = vsel %vm449_vm2, %v450_v18, %v451_v19  ;;  %v461_v31 = vsel %vm449_vm2, 0.0, %v450_v18  ;;  %v402_v40 = vsel %vm397_vm0, %v399_v12, %v401_v32  ;;  %v404_v41 = vsel %vm397_vm0, %v401_v32, %v403_v33  ;;  %v1356_v32 = vld [vmem:[%s1714_s6 + $0x10] sm:$0xff]   ;;  %v1358_v33 = vld [vmem:[%s1714_s6 + $0x8] sm:$0xff]  }
  0x15   : > { %1269 = vmatpush3.bf16.msra.mxu0 %v1351_v2  ;;  %v418_v35 = vadd.f32 %v1195_v10, %v414_v26  ;;  %v419_v36 = vadd.f32 %v1195_v10, %v415_v27  ;;  %v466_v37 = vmul.f32 %v1198_v15, %v461_v31  ;;  %v467_v38 = vmul.f32 %v1198_v15, %v452_v30 }
  0x16   : > { %1270 = vmatprep.subr.bf16.mxu0 %v1352_v6  ;;  %v416_v47 = vmul.f32 %v1196_v3, %v402_v40  ;;  %v417_v48 = vmul.f32 %v1196_v3, %v404_v41  ;;  %1279 = vmatpush3.bf16.msra.mxu1 %v1355_v34  ;;  %v428_v49 = vsel %vm423_vm1, %v425_v14, %v427_v42  ;;  %v453_v51 = vrot.slane %v1551_v9, 7  ;;  %v1360_v34 = vld [vmem:[%s1714_s6] sm:$0xff]   ;;  %v1643_v40 = vld [vmem:[%s1715_s7 + $0x8] sm:$0xff] }
  0x17   : > { %v444_v45 = vadd.f32 %v440_v28, %v418_v35  ;;  %v445_v46 = vadd.f32 %v441_v29, %v419_v36  ;;  %v430_v50 = vsel %vm423_vm1, %v427_v42, %v429_v43  ;;  %v455_v52 = vrot.slane %v1561_v16, 7  ;;  %1280 = vmatprep.subr.bf16.mxu1 %v1357_v44 }
  0x18   : > { %v420_v56 = vadd.f32 %v1195_v10, %v416_v47  ;;  %v421_v57 = vadd.f32 %v1195_v10, %v417_v48  ;;  %v442_v58 = vmul.f32 %v1534_v4, %v428_v49  ;;  %v443_v59 = vmul.f32 %v1534_v4, %v430_v50 }
  0x19   : > { %1271 = vmatpush3.bf16.msra.mxu0 %v1352_v6  ;;  %v470_v54 = vadd.f32 %v466_v37, %v444_v45  ;;  %v471_v55 = vadd.f32 %v467_v38, %v445_v46  ;;  %v454_v60 = vsel %vm449_vm2, %v451_v19, %v453_v51  ;;  %v456_v61 = vsel %vm449_vm2, %v453_v51, %v455_v52 }
  0x1a   : > { %1288 = vmatprep.subr.bf16.mxu0 %v1586_v39  ;;  %v468_v0 = vmul.f32 %v1198_v15, %v454_v60  ;;  %v469_v1 = vmul.f32 %v1198_v15, %v456_v61  ;;  %1281 = vmatpush3.bf16.msra.mxu1 %v1357_v44  ;;  %v446_v2 = vadd.f32 %v442_v58, %v420_v56  ;;  %v829_v35 = vlaneseq  ;;  %v1204_v44 = vld [vmem:[%s1717_s9] ss:$0 sm:$0xff] }
  0x1b   : > { %v483_v62 = vadd.f32 %v479_v20, %v470_v54  ;;  %v484_v63 = vadd.f32 %v480_v21, %v471_v55  ;;  %v447_v3 = vadd.f32 %v443_v59, %v421_v57  ;;  %v481_v6 = vmul.f32 %v1539_v5, %v1551_v9  ;;  %1282 = vmatprep.subr.bf16.mxu1 %v1359_v53 }
  0x1c   : > { %v482_v7 = vmul.f32 %v1539_v5, %v1561_v16  ;;  %v472_v10 = vadd.f32 %v468_v0, %v446_v2  ;;  %v1631_v36 = vshrl.u32 %v829_v35, 7  ;;  %v833_v38 = vand.u32 127, %v829_v35 }
  0x1d   : > { %v1200_v8 = vmul.f32 -1.442695, %v483_v62  ;;  %v1201_v4 = vmul.f32 -1.442695, %v484_v63  ;;  %v473_v11 = vadd.f32 %v469_v1, %v447_v3  ;;  %v1445_v41 = vmov 0.0  }
  0x1e   : > { %1283 = vmatpush3.bf16.msra.mxu1 %v1359_v53  ;;  %v485_v12 = vadd.f32 %v481_v6, %v472_v10  ;;  %v831_v37 = vadd.s32 8, %v1631_v36  ;;  %vm834_vm4 = vcmp.eq.s32.totalorder %v1631_v36, %v833_v38 }
  0x1f   : > { %1361 = vpow2.f32 %v1200_v8  ;;  %v486_v13 = vadd.f32 %v482_v7, %v473_v11  ;;  %v1645_v42 = vsel %vm834_vm4, 1.0, %v1445_v41 }
  0x20   : > { %1363 = vpow2.f32 %v1201_v4  ;;  %v1202_v14 = vmul.f32 -1.442695, %v485_v12  ;;  %vm835_vm5 = vcmp.eq.s32.totalorder %v831_v37, %v833_v38 }
  0x21   : > { %v1203_v15 = vmul.f32 -1.442695, %v486_v13  ;;  %v1647_v43 = vsel %vm835_vm5, 1.0, %v1445_v41 }
  0x22   : > { %1365 = vpow2.f32 %v1202_v14 }
  0x23   : > { %1367 = vpow2.f32 %v1203_v15 }
  0x2c   : > { %v1362_v17 = vpop.eup %1361 }
  0x2d   : > { %v1364_v18 = vpop.eup %1363  ;;  %v499_v9 = vadd.f32 1.0, %v1362_v17 }
  0x2e   : > { %v500_v19 = vadd.f32 1.0, %v1364_v18 }
  0x2f   : > { %1369 = vrcp.f32 %v499_v9  ;;  %v1366_v5 = vpop.eup %1365 }
  0x30   : > { %1371 = vrcp.f32 %v500_v19  ;;  %v1368_v16 = vpop.eup %1367  ;;  %v501_v20 = vadd.f32 1.0, %v1366_v5 }
  0x31   : > { %v502_v21 = vadd.f32 1.0, %v1368_v16 }
  0x32   : > { %1373 = vrcp.f32 %v501_v20 }
  0x33   : > { %1375 = vrcp.f32 %v502_v21 }
  0x3c   : > { %v1370_v22 = vpop.eup %1369 }
  0x3d   : > { %v1372_v23 = vpop.eup %1371  ;;  %v511_v24 = vmul.f32 %v1370_v22, %v483_v62 }
  0x3e   : > { %v512_v25 = vmul.f32 %v1372_v23, %v484_v63 }
  0x3f   : > { %516 = vst.msk [vmem:[#allocation2] sm:$0xff] %vm515_vm3, %v511_v24  ;;  %v1374_v27 = vpop.eup %1373 }
  0x40   : > { %517 = vst.msk [vmem:[#allocation2 + $0x8] sm:$0xff] %vm515_vm3, %v512_v25  ;;  %v520_v26 = vpack.c.bf16 %v512_v25, %v511_v24  ;;  %v1376_v28 = vpop.eup %1375  ;;  %v513_v29 = vmul.f32 %v1374_v27, %v485_v12 }
  0x41   : > { %v514_v30 = vmul.f32 %v1376_v28, %v486_v13 }
  0x42   : > { %1272 = vmatprep.mubr.msk.bf16.mxu0 %vm515_vm3, %v520_v26  ;;  %1284 = vmatprep.mubr.msk.bf16.mxu1 %vm515_vm3, %v520_v26  ;;  %518 = vst.msk [vmem:[#allocation2 + $0x10] sm:$0xff] %vm515_vm3, %v513_v29 }
  0x43   : > { %519 = vst.msk [vmem:[#allocation2 + $0x18] sm:$0xff] %vm515_vm3, %v514_v30  ;;  %v521_v31 = vpack.c.bf16 %v514_v30, %v513_v29 }
  0x45   : > { %1273 = vmatmul.mubr.msk.bf16.vlgmr.msra.gmra.mxu0 %vm515_vm3, %v521_v31  ;;  %1285 = vmatmul.mubr.msk.bf16.vlgmr.msra.gmra.mxu1 %vm515_vm3, %v521_v31 }
  0x46   : > { %1289 = vmatpush3.bf16.msra.mxu0 %v1586_v39  ;;  %1296 = vmatprep.mubr.msk.bf16.mxu0 %vm515_vm3, %v520_v26  ;;  %v1638_v39 = vld [vmem:[%s1715_s7] sm:$0xff] }
  0x47   : > { %1290 = vmatprep.subr.bf16.mxu0 %v1356_v32 }
  0x4a   : > { %1291 = vmatpush3.bf16.msra.mxu0 %v1356_v32 }
  0x4b   : > { %1292 = vmatprep.subr.bf16.mxu0 %v1358_v33 }
  0x4e   : > { %1293 = vmatpush3.bf16.msra.mxu0 %v1358_v33  ;;  %v1433_v33 = vmov 0.0  }
  0x4f   : > { %1294 = vmatprep.subr.bf16.mxu0 %v1360_v34 }
  0x52   : > { %1295 = vmatpush3.bf16.msra.mxu0 %v1360_v34  ;;  %v1437_v34 = vmov 0.0  }
  0x55   : > { %1297 = vmatmul.mubr.msk.bf16.vlgmr.msra.gmra.mxu0 %vm515_vm3, %v521_v31 }
 0x105   : > { %v1274_v45 = vpop.f32.mrf.mxu0  ;;  %v1286_v46 = vpop.f32.mrf.mxu1 }
 0x106   : > { %v610_v47 = vadd.f32 %v1274_v45, %v1204_v44  ;;  %740 = vst.msk [vmem:[#allocation4 + $0x10] sm:$0xff] %vm737_vm6, %v1286_v46 }
 0x107   : > { %v601_v48 = vpop.f32.mrf.mxu0  ;;  %v722_v49 = vpop.f32.mrf.mxu1 }
 0x108   : > { %v622_v50 = vand.u32 2147483647, %v610_v47  ;;  %v602_v51 = vadd.f32 %v1204_v44, %v601_v48  ;;  %738 = vst.msk [vmem:[#allocation4] sm:$0xff] %vm737_vm6, %v722_v49  ;;  %v618_v5 = vmax.f32 %v610_v47, 0.0 }
 0x109   : > { %v1275_v52 = vpop.f32.mrf.mxu0  ;;  %v1287_v53 = vpop.f32.mrf.mxu1 }
 0x10a   : > { %v626_v54 = vsub.f32 0.0, %v622_v50  ;;  %v620_v55 = vand.u32 2147483647, %v602_v51  ;;  %v613_v56 = vadd.f32 %v1275_v52, %v1204_v44  ;;  %741 = vst.msk [vmem:[#allocation4 + $0x18] sm:$0xff] %vm737_vm6, %v1287_v53  ;;  %v616_v22 = vmax.f32 %v602_v51, 0.0 }
 0x10b   : > { %v604_v57 = vpop.f32.mrf.mxu0  ;;  %v725_v58 = vpop.f32.mrf.mxu1 }
 0x10c   : > { %v632_v59 = vmul.f32 1.442695, %v626_v54  ;;  %v624_v60 = vsub.f32 0.0, %v620_v55  ;;  %v623_v61 = vand.u32 2147483647, %v613_v56  ;;  %739 = vst.msk [vmem:[#allocation4 + $0x8] sm:$0xff] %vm737_vm6, %v725_v58  ;;  %v605_v62 = vadd.f32 %v1204_v44, %v604_v57 }
 0x10d   : > { %v619_v26 = vmax.f32 %v613_v56, 0.0 }
 0x10e   : > { %1377 = vpow2.f32 %v632_v59  ;;  %v628_v63 = vmul.f32 1.442695, %v624_v60  ;;  %v627_v0 = vsub.f32 0.0, %v623_v61  ;;  %v621_v1 = vand.u32 2147483647, %v605_v62 }
 0x10f   : > { %v617_v30 = vmax.f32 %v605_v62, 0.0 }
 0x110   : > { %1379 = vpow2.f32 %v628_v63  ;;  %v634_v2 = vmul.f32 1.442695, %v627_v0  ;;  %v625_v3 = vsub.f32 0.0, %v621_v1 }
 0x112   : > { %1381 = vpow2.f32 %v634_v2  ;;  %v630_v6 = vmul.f32 1.442695, %v625_v3 }
 0x114   : > { %1383 = vpow2.f32 %v630_v6 }
 0x115   : > { %v1298_v7 = vpop.f32.mrf.mxu0 }
 0x116   : > { %825 = vst.msk [vmem:[#allocation5 + $0x10] sm:$0xff] %vm737_vm6, %v1298_v7 }
 0x117   : > { %v808_v8 = vpop.f32.mrf.mxu0 }
 0x118   : > { %823 = vst.msk [vmem:[#allocation5] sm:$0xff] %vm737_vm6, %v808_v8 }
 0x119   : > { %v1299_v4 = vpop.f32.mrf.mxu0 }
 0x11a   : > { %826 = vst.msk [vmem:[#allocation5 + $0x18] sm:$0xff] %vm737_vm6, %v1299_v4 }
 0x11b   : > { %v1378_v10 = vpop.eup %1377  ;;  %v811_v11 = vpop.f32.mrf.mxu0 }
 0x11c   : > { %v638_v12 = vadd.f32 1.0, %v1378_v10  ;;  %824 = vst.msk [vmem:[#allocation5 + $0x8] sm:$0xff] %vm737_vm6, %v811_v11 }
 0x11d   : > { %v1380_v13 = vpop.eup %1379 }
 0x11e   : > { %1385 = vlog2.f32 %v638_v12  ;;  %v636_v14 = vadd.f32 1.0, %v1380_v13 }
 0x11f   : > { %v1382_v15 = vpop.eup %1381 }
 0x120   : > { %1387 = vlog2.f32 %v636_v14  ;;  %v639_v17 = vadd.f32 1.0, %v1382_v15 }
 0x121   : > { %v1384_v18 = vpop.eup %1383 }
 0x122   : > { %1389 = vlog2.f32 %v639_v17  ;;  %v637_v9 = vadd.f32 1.0, %v1384_v18 }
 0x124   : > { %1391 = vlog2.f32 %v637_v9 }
 0x12b   : > { %v1386_v19 = vpop.eup %1385 }
 0x12c   : > { %v645_v16 = vmul.f32 0.6931472, %v1386_v19 }
 0x12d   : > { %v1388_v20 = vpop.eup %1387 }
 0x12e   : > { %v650_v21 = vadd.f32 %v645_v16, %v618_v5  ;;  %v641_v23 = vmul.f32 0.6931472, %v1388_v20 }
 0x12f   : > { %v1390_v24 = vpop.eup %1389 }
 0x130   : > { %654 = vst.msk [vmem:[#allocation3 + $0x10] sm:$0xff] %vm515_vm3, %v650_v21  ;;  %v648_v25 = vadd.f32 %v641_v23, %v616_v22  ;;  %v647_v27 = vmul.f32 0.6931472, %v1390_v24 }
 0x131   : > { %v1392_v28 = vpop.eup %1391 }
 0x132   : > { %652 = vst.msk [vmem:[#allocation3] sm:$0xff] %vm515_vm3, %v648_v25  ;;  %v651_v29 = vadd.f32 %v647_v27, %v619_v26  ;;  %v643_v31 = vmul.f32 0.6931472, %v1392_v28 }
 0x134   : > { %655 = vst.msk [vmem:[#allocation3 + $0x18] sm:$0xff] %vm515_vm3, %v651_v29  ;;  %v649_v32 = vadd.f32 %v643_v31, %v617_v30 }
 0x136   : > { %653 = vst.msk [vmem:[#allocation3 + $0x8] sm:$0xff] %vm515_vm3, %v649_v32 }
 0x137 LB: >> { %v858_v35 = vsub.s32 0, %v1631_v36  ;;  %s848_s11 = scalar_lea.vmem [#allocation3], %s1443_s30  ;;  %s850_s12 = scalar_lea.vmem [#allocation2], %s1443_s30  ;;  %v1446_v49 = vmov 0.0   ;;  %vm1447_vm7 = vmmov 0   ;;  %vm1036_vm8 = vcmask 516096   ;;  %s1443_s30 = sphi %s1664_s30, %s845_s30   ;;  %v1439_v34 = vphi %v1437_v34, %v960_v34   ;;  %v1435_v33 = vphi %v1433_v33, %v961_v33  }
 0x138   : >> { %v851_v38 = vld [vmem:[%s850_s12] sm:$0x1]  ;;  %s852_s14 = scalar_lea.vmem [#allocation4], %s1443_s30  ;;  %1307 = vmatprep.subr.mxu1 %v1446_v49  ;;  %1311 = vmatprep.mubr.msk.f32.mxu1 %vm1447_vm7, %v1446_v49  ;;  %s854_s15 = scalar_lea.vmem [#allocation5], %s1443_s30 }
 0x139   : >> { %v1225_v45 = vld [vmem:[%s852_s14] ss:$0 sm:$0xff]  ;;  %s1035_s16 = scalar_lea.vmem %s1547_s19, %s1443_s30  ;;  %s845_s30 = sadd.s32 1, %s1443_s30  }
 0x13a   : >> { %v875_v46 = vmul.f32 %v1225_v45, %v1645_v42  ;;  %v876_v48 = vmul.f32 %v1225_v45, %v1647_v43  ;;  %v855_v60 = vld [vmem:[%s854_s15] sm:$0x1]  ;;  %p842_p4 = scmp.ge.s32.totalorder %s845_s30, 32  }
 0x13b   : > { %v1061_v63 = vld [vmem:[%s1526_s27] sm:$0xff] (%p842_p4)  ;;  %v1062_v1 = vld [vmem:[%s1526_s27 + $0x8] sm:$0xff] (%p842_p4)  ;;  %v1063_v3 = vld [vmem:[%s1526_s27 + $0x10] sm:$0xff] (%p842_p4) }
 0x13c   : >> { %1304 = vmatprep.mubr.msk.f32.mxu0 %vm737_vm6, %v875_v46  ;;  %v1230_v0 = vmul.f32 (%p842_p4), -1.442695, %v1061_v63  ;;  %v1231_v2 = vmul.f32 (%p842_p4), -1.442695, %v1062_v1  ;;  %v1232_v6 = vmul.f32 (%p842_p4), -1.442695, %v1063_v3 }
 0x13d   : >> { %v849_v37 = vld [vmem:[%s848_s11] sm:$0x1]  ;;  %v1064_v7 = vld [vmem:[%s1526_s27 + $0x18] sm:$0xff] (%p842_p4)  ;;  %v1044_v14 = vld [vmem:[#allocation2 + $0x8] sm:$0xff] (%p842_p4) }
 0x13e   : >> { %v859_v41 = vrot.slane %v849_v37, %v858_v35  ;;  %v866_v44 = vmul.f32 %v851_v38, %v849_v37  ;;  %v1233_v8 = vmul.f32 (%p842_p4), -1.442695, %v1064_v7  ;;  %v1229_v12 = vld [vmem:[%s1716_s8] ss:$0 sm:$0xff] (%p842_p4)  ;;  %v1045_v15 = vld [vmem:[#allocation2 + $0x10] sm:$0xff] (%p842_p4)  ;;  %v1046_v18 = vld [vmem:[#allocation2 + $0x18] sm:$0xff] (%p842_p4) }
 0x13f   : > { %v1043_v13 = vld [vmem:[#allocation2] sm:$0xff] (%p842_p4)  ;;  %v1054_v19 = vmul.f32 (%p842_p4), %v1229_v12, %v1044_v14  ;;  %v1055_v16 = vmul.f32 (%p842_p4), %v1229_v12, %v1045_v15  ;;  %v1056_v21 = vmul.f32 (%p842_p4), %v1229_v12, %v1046_v18 }
 0x140   : >> { %v870_v47 = vrot.slane %v866_v44, %v858_v35  ;;  %v861_v50 = vmul.f32 %v859_v41, %v1643_v40  ;;  %v860_v51 = vmul.f32 %v859_v41, %v1638_v39  ;;  %v1053_v17 = vmul.f32 (%p842_p4), %v1229_v12, %v1043_v13 }
 0x142   : >> { %1300 = vmatprep.subr.mxu0 %v870_v47  ;;  %v864_v52 = vmul.f32 1.442695, %v861_v50  ;;  %v862_v53 = vmul.f32 1.442695, %v860_v51 }
 0x143   : >> { %1301 = vmatpush3.msra.mxu0 %v870_v47 }
 0x144   : >> { %1302 = vmatprep.subr.mxu0 %v870_v47  ;;  %1393 = vpow2.f32 %v864_v52 }
 0x145   : >> { %1303 = vmatpush3.msra.mxu0 %v870_v47  ;;  %1395 = vpow2.f32 %v862_v53 }
 0x146   : >> { %1305 = vmatmul.mubr.msk.f32.vlgmr.msra.gmra.mxu0 %vm737_vm6, %v876_v48  ;;  %1397 = vpow2.f32 (%p842_p4), %v1230_v0 }
 0x147   : > { %1399 = vpow2.f32 (%p842_p4), %v1231_v2 }
 0x148   : > { %1401 = vpow2.f32 (%p842_p4), %v1232_v6 }
 0x149   : > { %1403 = vpow2.f32 (%p842_p4), %v1233_v8 }
 0x151   : >> { %v1394_v54 = vpop.eup %1393 }
 0x152   : >> { %v1396_v55 = vpop.eup %1395  ;;  %v959_v56 = vmul.f32 %v1435_v33, %v1394_v54 }
 0x153   : >> { %v958_v57 = vmul.f32 %v1439_v34, %v1396_v55  ;;  %v1398_v4 = vpop.eup (%p842_p4), %1397 }
 0x154   : > { %v1400_v10 = vpop.eup (%p842_p4), %1399  ;;  %v1077_v11 = vadd.f32 (%p842_p4), 1.0, %v1398_v4 }
 0x155   : > { %v1402_v36 = vpop.eup (%p842_p4), %1401  ;;  %v1078_v39 = vadd.f32 (%p842_p4), 1.0, %v1400_v10 }
 0x156   : > { %v1404_v40 = vpop.eup (%p842_p4), %1403  ;;  %1405 = vrcp.f32 (%p842_p4), %v1077_v11  ;;  %v1079_v42 = vadd.f32 (%p842_p4), 1.0, %v1402_v36 }
 0x157   : > { %1407 = vrcp.f32 (%p842_p4), %v1078_v39  ;;  %v1080_v43 = vadd.f32 (%p842_p4), 1.0, %v1404_v40 }
 0x158   : > { %1409 = vrcp.f32 (%p842_p4), %v1079_v42 }
 0x159   : > { %1411 = vrcp.f32 (%p842_p4), %v1080_v43 }
 0x163   : > { %v1406_v24 = vpop.eup (%p842_p4), %1405 }
 0x164   : > { %v1408_v26 = vpop.eup (%p842_p4), %1407  ;;  %v1089_v27 = vmul.f32 (%p842_p4), %v1406_v24, %v1061_v63 }
 0x165   : > { %v1410_v29 = vpop.eup (%p842_p4), %1409  ;;  %v1090_v30 = vmul.f32 (%p842_p4), %v1408_v26, %v1062_v1 }
 0x166   : > { %v1412_v32 = vpop.eup (%p842_p4), %1411 }
 0x167   : > { %v1092_v37 = vmul.f32 (%p842_p4), %v1412_v32, %v1064_v7 }
 0x206   : >> { %v1306_v58 = vpop.f32.mrf.mxu0 }
 0x207   : >> { %v961_v33 = vadd.f32 %v1306_v58, %v959_v56  }
 0x208   : >> { %v949_v59 = vpop.f32.mrf.mxu0 }
 0x209   : >> { %v960_v34 = vadd.f32 %v958_v57, %v949_v59   ;;  %1308 = vmatpush3.msra.mxu1 %v961_v33 }
 0x20a   : >> { %1309 = vmatprep.subr.mxu1 %v1446_v49 }
 0x20b   : >> { %1310 = vmatpush3.msra.mxu1 %v960_v34  ;;  %v1091_v34 = vmul.f32 (%p842_p4), %v1410_v29, %v1063_v3 }
 0x20c   : >> { %1312 = vmatmul.mubr.msk.f32.vlgmr.msra.gmra.mxu1 %vm737_vm6, %v855_v60 }
 0x2ca   : > { %844 = sbr.rel (!%p842_p4) target bundleno = 311 (0x137), region = 105 }
 0x2cc   : >> { %v1031_v61 = vpop.f32.mrf.mxu1 }
 0x2cd   : >> { %1037 = vst.msk [vmem:[%s1035_s16] sm:$0x1] %vm1036_vm8, %v1031_v61 }
 0x2ce   : >> { %v1313_v62 = vpop.f32.mrf.mxu1 }
 0x2d4   : > { %v1038_v9 = vld [vmem:[%s1547_s19] sm:$0xff]  ;;  %v1039_v5 = vld [vmem:[%s1547_s19 + $0x8] sm:$0xff]  ;;  %v1040_v20 = vld [vmem:[%s1547_s19 + $0x10] sm:$0xff] }
 0x2d5   : > { %v1057_v22 = vadd.f32 %v1053_v17, %v1038_v9  ;;  %v1041_v23 = vld [vmem:[%s1547_s19 + $0x18] sm:$0xff]  ;;  %v1058_v25 = vadd.f32 %v1054_v19, %v1039_v5  ;;  %v1059_v28 = vadd.f32 %v1055_v16, %v1040_v20 }
 0x2d6   : > { %v1060_v31 = vadd.f32 %v1056_v21, %v1041_v23 }
 0x2d7   : > { %v1093_v33 = vmul.f32 %v1089_v27, %v1057_v22  ;;  %v1094_v35 = vmul.f32 %v1090_v30, %v1058_v25  ;;  %v1095_v38 = vmul.f32 %v1091_v34, %v1059_v28 }
 0x2d8   : > { %v1096_v41 = vmul.f32 %v1092_v37, %v1060_v31 }
 0x2d9   : > { %1097 = vst.msk [vmem:[%s1547_s19] sm:$0xff] %vm515_vm3, %v1093_v33  ;;  %1098 = vst.msk [vmem:[%s1547_s19 + $0x8] sm:$0xff] %vm515_vm3, %v1094_v35 }
 0x2da   : > { %1099 = vst.msk [vmem:[%s1547_s19 + $0x10] sm:$0xff] %vm515_vm3, %v1095_v38  ;;  %1100 = vst.msk [vmem:[%s1547_s19 + $0x18] sm:$0xff] %vm515_vm3, %v1096_v41 }
 0x2db PF: > { %s20_s13 = sadd.s32 1, %s1431_s13  }
 0x2dc   : > { %p17_p5 = scmp.ge.s32.totalorder %s20_s13, 6  }
 0x2de   :  { %19 = sbr.rel (!%p17_p5) target bundleno = 1 (0x1), region = 116 }

// kernel: mixer_model_forward.29
= control target key start
LH: loop header
LB: loop body
LE: loop exit
PB: predicated region body
PF: predicated region fallthrough
CT: control target
= control target key end

     0   :  { %vm23_vm0 = vcmask 261120   ;;  %s346_s0 = inlined_call_operand.vmem [shape: f32[64,32], index: 0, kind: input, shape index: {}]   ;;  %s347_s1 = inlined_call_operand.vmem [shape: f32[1,32], index: 1, kind: input, shape index: {}]   ;;  %s348_s2 = inlined_call_operand.vmem [shape: f32[1,32], index: 2, kind: input, shape index: {}]   ;;  %s349_s3 = inlined_call_operand.hbm [shape: f32[64,32], index: 3, kind: output, shape index: {}]  }
   0x1   :  { %v15_v0 = vld [vmem:[%s346_s0] sm:$0xff]  ;;  %v17_v1 = vld [vmem:[%s346_s0 + $0x10] sm:$0xff]  ;;  %v16_v2 = vld [vmem:[%s346_s0 + $0x8] sm:$0xff] }
   0x2   :  { %v24_v3 = vsel %vm23_vm0, %v15_v0, 0.0  ;;  %v30_v4 = vsel %vm23_vm0, %v17_v1, 0.0  ;;  %v18_v5 = vld [vmem:[%s346_s0 + $0x18] sm:$0xff]  ;;  %v27_v6 = vsel %vm23_vm0, %v16_v2, 0.0 }
   0x3   :  { %25 = vadd.xlane.f32.xlu0 %v24_v3  ;;  %31 = vadd.xlane.f32.xlu1 %v30_v4  ;;  %v33_v7 = vsel %vm23_vm0, %v18_v5, 0.0 }
   0x4   :  { %8 = vsyncpa [#allocation3], 0  ;;  %v19_v8 = vld [vmem:[%s346_s0 + $0x20] sm:$0xff]  ;;  %v20_v9 = vld [vmem:[%s346_s0 + $0x28] sm:$0xff] }
   0x5   :  { %v36_v10 = vsel %vm23_vm0, %v19_v8, 0.0  ;;  %v39_v11 = vsel %vm23_vm0, %v20_v9, 0.0  ;;  %v21_v12 = vld [vmem:[%s346_s0 + $0x30] sm:$0xff]  ;;  %v22_v13 = vld [vmem:[%s346_s0 + $0x38] sm:$0xff] }
   0x6   :  { %v42_v14 = vsel %vm23_vm0, %v21_v12, 0.0  ;;  %v45_v15 = vsel %vm23_vm0, %v22_v13, 0.0 }
   0x7   :  { %28 = vadd.xlane.f32.xlu0 %v27_v6  ;;  %34 = vadd.xlane.f32.xlu1 %v33_v7 }
   0xb   :  { %37 = vadd.xlane.f32.xlu0 %v36_v10  ;;  %40 = vadd.xlane.f32.xlu1 %v39_v11 }
   0xf   :  { %43 = vadd.xlane.f32.xlu0 %v42_v14  ;;  %46 = vadd.xlane.f32.xlu1 %v45_v15 }
  0x8c   :  { %v26_v16 = vpop.xlane.xlu0 %25  ;;  %v32_v17 = vpop.xlane.xlu1 %31 }
  0x8d   :  { %v49_v18 = vmul.f32 0.03125, %v26_v16  ;;  %v51_v19 = vmul.f32 0.03125, %v32_v17  ;;  %v183_v16 = vld [vmem:[%s347_s1] ss:$0 sm:$0xff]  ;;  %s226_s1 = smov [#allocation2]  }
  0x8f   :  { %v281_v20 = vsub.f32 %v15_v0, %v49_v18  ;;  %v283_v21 = vsub.f32 %v17_v1, %v51_v19  ;;  %v184_v19 = vld [vmem:[%s348_s2] ss:$0 sm:$0xff]  ;;  %s172_s2 = sshll.u32 %s226_s1, 4  ;;  %s173_s2 = int_to_ptr.vmem [resolvable:$true] %s172_s2 }
  0x90   :  { %v29_v22 = vpop.xlane.xlu0 %28  ;;  %v35_v23 = vpop.xlane.xlu1 %34  ;;  %s204_s4 = scalar_lea.vmem %s173_s2, 1024  ;;  %p209_p1 = scmp.lt.s32.totalorder %s173_s2, %s173_s2 }
  0x91   :  { %v50_v24 = vmul.f32 0.03125, %v29_v22  ;;  %v52_v25 = vmul.f32 0.03125, %v35_v23  ;;  %v65_v26 = vmul.f32 %v281_v20, %v281_v20  ;;  %v67_v27 = vmul.f32 %v283_v21, %v283_v21  ;;  %p205_p0 = scmp.ne.s32.totalorder %s173_s2, %s204_s4  ;;  %p210_p2 = scmp.lt.s32.totalorder %s204_s4, %s204_s4 }
  0x93   :  { %v289_v28 = vsub.f32 %v16_v2, %v50_v24  ;;  %v291_v29 = vsub.f32 %v18_v5, %v52_v25  ;;  %v73_v30 = vsel %vm23_vm0, %v65_v26, 0.0  ;;  %v79_v33 = vsel %vm23_vm0, %v67_v27, 0.0  ;;  %p211_p3 = por %p210_p2, %p209_p1 }
  0x94   :  { %74 = vadd.xlane.f32.xlu0 %v73_v30  ;;  %v38_v31 = vpop.xlane.xlu0 %37  ;;  %v41_v32 = vpop.xlane.xlu1 %40 }
  0x95   :  { %v53_v34 = vmul.f32 0.03125, %v38_v31  ;;  %v54_v35 = vmul.f32 0.03125, %v41_v32  ;;  %v66_v36 = vmul.f32 %v289_v28, %v289_v28  ;;  %v68_v37 = vmul.f32 %v291_v29, %v291_v29  ;;  %p212_p4 = pnand %p211_p3, %p205_p0 }
  0x97   :  { %v299_v38 = vsub.f32 %v19_v8, %v53_v34  ;;  %v301_v39 = vsub.f32 %v20_v9, %v54_v35  ;;  %v76_v40 = vsel %vm23_vm0, %v66_v36, 0.0  ;;  %v82_v43 = vsel %vm23_vm0, %v68_v37, 0.0 }
  0x98   :  { %80 = vadd.xlane.f32.xlu0 %v79_v33  ;;  %77 = vadd.xlane.f32.xlu1 %v76_v40  ;;  %v44_v41 = vpop.xlane.xlu0 %43  ;;  %v47_v42 = vpop.xlane.xlu1 %46 }
  0x99   :  { %v55_v44 = vmul.f32 0.03125, %v44_v41  ;;  %v56_v45 = vmul.f32 0.03125, %v47_v42  ;;  %v69_v46 = vmul.f32 %v299_v38, %v299_v38  ;;  %v70_v47 = vmul.f32 %v301_v39, %v301_v39 }
  0x9b   :  { %v309_v48 = vsub.f32 %v21_v12, %v55_v44  ;;  %v311_v49 = vsub.f32 %v22_v13, %v56_v45  ;;  %v85_v50 = vsel %vm23_vm0, %v69_v46, 0.0  ;;  %v88_v51 = vsel %vm23_vm0, %v70_v47, 0.0 }
  0x9c   :  { %83 = vadd.xlane.f32.xlu1 %v82_v43  ;;  %86 = vadd.xlane.f32.xlu0 %v85_v50 }
  0x9d   :  { %v71_v52 = vmul.f32 %v309_v48, %v309_v48  ;;  %v72_v53 = vmul.f32 %v311_v49, %v311_v49 }
  0x9f   :  { %v91_v54 = vsel %vm23_vm0, %v71_v52, 0.0  ;;  %v94_v55 = vsel %vm23_vm0, %v72_v53, 0.0 }
  0xa0   :  { %89 = vadd.xlane.f32.xlu1 %v88_v51  ;;  %92 = vadd.xlane.f32.xlu0 %v91_v54 }
  0xa4   :  { %95 = vadd.xlane.f32.xlu1 %v94_v55 }
 0x11d   :  { %v75_v56 = vpop.xlane.xlu0 %74 }
 0x11e   :  { %v97_v57 = vmul.f32 0.03125, %v75_v56 }
 0x120   :  { %v105_v58 = vadd.f32 1e-05, %v97_v57 }
 0x121   :  { %v78_v59 = vpop.xlane.xlu1 %77  ;;  %v81_v60 = vpop.xlane.xlu0 %80 }
 0x122   :  { %188 = vrsqrt.f32 %v105_v58  ;;  %v98_v61 = vmul.f32 0.03125, %v78_v59  ;;  %v99_v62 = vmul.f32 0.03125, %v81_v60 }
 0x124   :  { %v106_v63 = vadd.f32 1e-05, %v98_v61  ;;  %v107_v0 = vadd.f32 1e-05, %v99_v62 }
 0x125   :  { %v84_v1 = vpop.xlane.xlu1 %83  ;;  %v87_v2 = vpop.xlane.xlu0 %86 }
 0x126   :  { %190 = vrsqrt.f32 %v106_v63  ;;  %v100_v3 = vmul.f32 0.03125, %v84_v1  ;;  %v101_v4 = vmul.f32 0.03125, %v87_v2 }
 0x127   :  { %192 = vrsqrt.f32 %v107_v0 }
 0x128   :  { %v108_v5 = vadd.f32 1e-05, %v100_v3  ;;  %v109_v6 = vadd.f32 1e-05, %v101_v4 }
 0x129   :  { %v90_v7 = vpop.xlane.xlu1 %89  ;;  %v93_v8 = vpop.xlane.xlu0 %92 }
 0x12a   :  { %194 = vrsqrt.f32 %v108_v5  ;;  %v102_v9 = vmul.f32 0.03125, %v90_v7  ;;  %v103_v10 = vmul.f32 0.03125, %v93_v8 }
 0x12b   :  { %196 = vrsqrt.f32 %v109_v6 }
 0x12c   :  { %v110_v11 = vadd.f32 1e-05, %v102_v9  ;;  %v111_v12 = vadd.f32 1e-05, %v103_v10 }
 0x12d   :  { %v96_v13 = vpop.xlane.xlu1 %95 }
 0x12e   :  { %198 = vrsqrt.f32 %v110_v11  ;;  %v104_v14 = vmul.f32 0.03125, %v96_v13 }
 0x12f   :  { %v189_v15 = vpop.eup %188  ;;  %200 = vrsqrt.f32 %v111_v12 }
 0x130   :  { %v121_v17 = vmul.f32 %v189_v15, %v281_v20  ;;  %v112_v18 = vadd.f32 1e-05, %v104_v14 }
 0x132   :  { %v136_v22 = vmul.f32 %v183_v16, %v121_v17  ;;  %202 = vrsqrt.f32 %v112_v18 }
 0x133   :  { %v191_v23 = vpop.eup %190 }
 0x134   :  { %v193_v24 = vpop.eup %192  ;;  %v151_v25 = vadd.f32 %v184_v19, %v136_v22  ;;  %v122_v26 = vmul.f32 %v191_v23, %v289_v28 }
 0x135   :  { %v123_v27 = vmul.f32 %v193_v24, %v283_v21 }
 0x136   :  { %159 = vst.msk [vmem:[#allocation2] sm:$0xff] %vm23_vm0, %v151_v25  ;;  %v137_v30 = vmul.f32 %v183_v16, %v122_v26 }
 0x137   :  { %v195_v31 = vpop.eup %194  ;;  %v138_v32 = vmul.f32 %v183_v16, %v123_v27 }
 0x138   :  { %v197_v20 = vpop.eup %196  ;;  %v152_v33 = vadd.f32 %v184_v19, %v137_v30  ;;  %v124_v34 = vmul.f32 %v195_v31, %v291_v29 }
 0x139   :  { %v153_v35 = vadd.f32 %v184_v19, %v138_v32  ;;  %v125_v36 = vmul.f32 %v197_v20, %v299_v38 }
 0x13a   :  { %160 = vst.msk [vmem:[#allocation2 + $0x8] sm:$0xff] %vm23_vm0, %v152_v33  ;;  %v139_v37 = vmul.f32 %v183_v16, %v124_v34 }
 0x13b   :  { %v199_v40 = vpop.eup %198  ;;  %161 = vst.msk [vmem:[#allocation2 + $0x10] sm:$0xff] %vm23_vm0, %v153_v35  ;;  %v140_v28 = vmul.f32 %v183_v16, %v125_v36 }
 0x13c   :  { %v201_v21 = vpop.eup %200  ;;  %v154_v41 = vadd.f32 %v184_v19, %v139_v37  ;;  %v126_v42 = vmul.f32 %v199_v40, %v301_v39 }
 0x13d   :  { %v155_v43 = vadd.f32 %v184_v19, %v140_v28  ;;  %v127_v44 = vmul.f32 %v201_v21, %v309_v48 }
 0x13e   :  { %162 = vst.msk [vmem:[#allocation2 + $0x18] sm:$0xff] %vm23_vm0, %v154_v41  ;;  %v141_v29 = vmul.f32 %v183_v16, %v126_v42 }
 0x13f   :  { %v203_v45 = vpop.eup %202  ;;  %163 = vst.msk [vmem:[#allocation2 + $0x20] sm:$0xff] %vm23_vm0, %v155_v43  ;;  %v142_v38 = vmul.f32 %v183_v16, %v127_v44 }
 0x140   :  { %v156_v46 = vadd.f32 %v184_v19, %v141_v29  ;;  %v128_v47 = vmul.f32 %v203_v45, %v311_v49 }
 0x141   :  { %v157_v50 = vadd.f32 %v184_v19, %v142_v38 }
 0x142   :  { %164 = vst.msk [vmem:[#allocation2 + $0x28] sm:$0xff] %vm23_vm0, %v156_v46  ;;  %v143_v51 = vmul.f32 %v183_v16, %v128_v47 }
 0x143   :  { %165 = vst.msk [vmem:[#allocation2 + $0x30] sm:$0xff] %vm23_vm0, %v157_v50 }
 0x144   :  { %v158_v39 = vadd.f32 %v184_v19, %v143_v51 }
 0x146   :  { %166 = vst.msk [vmem:[#allocation2 + $0x38] sm:$0xff] %vm23_vm0, %v158_v39 }
 0x147   :  { %215 = shalt.err (!%p212_p4)
}
 0x148   :  { %s227_s5 = smov 128   ;;  %s228_s6 = smov 8  }
 0x149   :  { %178 = dma.vmem_to_hbm [thread:$0]  %s173_s2, 1024, %s349_s3, [#allocation3], %s227_s5, %s227_s5, %s228_s6  }
 0x14a   :  { %224 = dma.done.wait [#allocation3], 1024  }
 0x14b   :  { %225 = vsyncadd [#allocation3], 4294966272 }
 0x14c   :  { %182 = vsyncpa [#allocation3], 1 }

// kernel: mixer_model_forward.21
= control target key start
LH: loop header
LB: loop body
LE: loop exit
PB: predicated region body
PF: predicated region fallthrough
CT: control target
= control target key end

     0   :  { %s1032_s30 = smov 0   ;;  %s1159_s0 = inlined_call_operand.vmem [shape: f32[2,32,32], index: 0, kind: input, shape index: {}]   ;;  %s1160_s1 = inlined_call_operand.vmem [shape: f32[3,32], index: 1, kind: input, shape index: {}]   ;;  %s1161_s2 = inlined_call_operand.vmem [shape: f32[1,32], index: 2, kind: input, shape index: {}]   ;;  %s1162_s3 = inlined_call_operand.vmem [shape: f32[32,8], index: 3, kind: input, shape index: {}]   ;;  %s1163_s4 = inlined_call_operand.vmem [shape: f32[1,8], index: 4, kind: input, shape index: {}]   ;;  %s1164_s5 = inlined_call_operand.vmem [shape: f32[8,32], index: 5, kind: input, shape index: {}]   ;;  %s1165_s6 = inlined_call_operand.vmem [shape: f32[1,32], index: 6, kind: input, shape index: {}]   ;;  %s1166_s7 = inlined_call_operand.vmem [shape: f32[32,32], index: 7, kind: input, shape index: {}]   ;;  %s1167_s8 = inlined_call_operand.vmem [shape: f32[1,32], index: 8, kind: input, shape index: {}]   ;;  %s1168_s9 = inlined_call_operand.vmem [shape: f32[2,32,32], index: 9, kind: output, shape index: {}]  }
   0x1 LB: > { %s868_s10 = sadd.s32 4294967295, %s978_s30   ;;  %p872_p0 = scmp.ge.s32.totalorder %s978_s30, 1  ;;  %s978_s30 = sphi %s1032_s30, %s19_s30  }
   0x2   : > { %p287_p1 = scmp.lt.s32.totalorder %s978_s30, 3 }
   0x4   : > { %p288_p2 = pnand %p872_p0, %p287_p1 }
   0x5   : > { %p323_p3 = scmp.lt.s32.totalorder (!%p288_p2), %s868_s10, 1 }
   0x6   : > { %291 = sbr.rel (%p288_p2) target bundleno = 911 (0x38f), region = 56 }
   0xb   : > { %v468_v0 = vld [vmem:[%s1162_s3 + $0x18] sm:$0xff]  ;;  %v980_v1 = vmov 0.0   ;;  %v467_v2 = vld [vmem:[%s1162_s3 + $0x10] sm:$0xff]  ;;  %vm981_vm0 = vmmov 0   ;;  %s1170_s10 = smov (!%p323_p3, %s868_s10), 1  ;;  %v466_v3 = vld [vmem:[%s1162_s3 + $0x8] sm:$0xff] }
   0xc   : > { %908 = vmatprep.subr.mxu0 %v980_v1  ;;  %916 = vmatprep.mubr.msk.f32.mxu0 %vm981_vm0, %v980_v1  ;;  %s891_s17 = sshll.u32 %s1170_s10, 5  ;;  %vm449_vm1 = vcmask 261120   ;;  %v465_v4 = vld [vmem:[%s1162_s3] sm:$0xff]  ;;  %vm554_vm2 = vcmask 64512   ;;  %vm349_vm3 = vcmask 1040384   ;;  %vm388_vm4 = vcmask 1046528  }
   0xd   : > { %909 = vmatpush3.msra.mxu0 %v468_v0  ;;  %s327_s22 = scalar_lea.vmem %s1159_s0, %s891_s17  ;;  %v552_v23 = vld [vmem:[%s1164_s5] sm:$0xff]  ;;  %s332_s12 = scalar_lea.vmem %s1168_s9, %s891_s17 }
   0xe   : > { %910 = vmatprep.subr.mxu0 %v980_v1  ;;  %v1061_v5 = vld [vmem:[%s327_s22] sm:$0xff]  ;;  %v1063_v6 = vld [vmem:[%s327_s22 + $0x8] sm:$0xff]  ;;  %v1065_v7 = vld [vmem:[%s327_s22 + $0x10] sm:$0xff] }
   0xf   : > { %911 = vmatpush3.msra.mxu0 %v467_v2  ;;  %v1067_v8 = vld [vmem:[%s327_s22 + $0x18] sm:$0xff]  ;;  %v450_v9 = vsel %vm449_vm1, %v1061_v5, 0.0  ;;  %v451_v10 = vsel %vm449_vm1, %v1063_v6, 0.0  ;;  %v453_v11 = vsel %vm449_vm1, %v1065_v7, 0.0  ;;  %v469_v24 = vld [vmem:[%s1163_s4] sm:$0x1] }
  0x10   : > { %912 = vmatprep.subr.mxu0 %v980_v1  ;;  %v452_v12 = vadd.f32 %v451_v10, %v450_v9  ;;  %v455_v13 = vsel %vm449_vm1, %v1067_v8, 0.0  ;;  %v351_v37 = vrot.slane %v1063_v6, 7  ;;  %v353_v38 = vrot.slane %v1065_v7, 7  ;;  %v878_v41 = vld [vmem:[%s1160_s1] ss:$0 sm:$0xff] }
  0x11   : > { %913 = vmatpush3.msra.mxu0 %v466_v3  ;;  %v350_v39 = vrot.slane %v1061_v5, 7  ;;  %v355_v40 = vrot.slane %v1067_v8, 7  ;;  %v877_v47 = vld [vmem:[%s1161_s2] ss:$0 sm:$0xff]  ;;  %v879_v48 = vld [vmem:[%s1160_s1 + $0x1] ss:$0 sm:$0xff] }
  0x12   : > { %914 = vmatprep.subr.mxu0 %v980_v1  ;;  %v454_v14 = vadd.f32 %v453_v11, %v452_v12  ;;  %v354_v42 = vsel %vm349_vm3, %v351_v37, %v353_v38  ;;  %v392_v49 = vrot.slane %v1065_v7, 1  ;;  %v394_v50 = vrot.slane %v1067_v8, 1  ;;  %v880_v58 = vld [vmem:[%s1160_s1 + $0x2] ss:$0 sm:$0xff] }
  0x13   : > { %915 = vmatpush3.msra.mxu0 %v465_v4  ;;  %v361_v43 = vsel %vm349_vm3, 0.0, %v350_v39  ;;  %v356_v44 = vsel %vm349_vm3, %v353_v38, %v355_v40  ;;  %v368_v45 = vmul.f32 %v878_v41, %v354_v42  ;;  %v352_v46 = vsel %vm349_vm3, %v350_v39, %v351_v37 }
  0x14   : > { %919 = vmatprep.subr.mxu0 %v980_v1  ;;  %v456_v15 = vadd.f32 %v455_v13, %v454_v14  ;;  %v366_v51 = vmul.f32 %v878_v41, %v361_v43  ;;  %v389_v52 = vrot.slane %v1061_v5, 1  ;;  %v390_v53 = vrot.slane %v1063_v6, 1 }
  0x15   : > { %v369_v54 = vmul.f32 %v878_v41, %v356_v44  ;;  %v367_v55 = vmul.f32 %v878_v41, %v352_v46  ;;  %v372_v56 = vadd.f32 %v877_v47, %v368_v45  ;;  %v381_v57 = vmul.f32 %v879_v48, %v1065_v7 }
  0x16   : > { %v457_v16 = vrot.slane %v456_v15, 4  ;;  %v395_v59 = vsel %vm388_vm4, %v392_v49, %v394_v50  ;;  %v370_v60 = vadd.f32 %v877_v47, %v366_v51  ;;  %v379_v61 = vmul.f32 %v879_v48, %v1061_v5 }
  0x17   : > { %v391_v62 = vsel %vm388_vm4, %v389_v52, %v390_v53  ;;  %v373_v63 = vadd.f32 %v877_v47, %v369_v54  ;;  %v382_v0 = vmul.f32 %v879_v48, %v1067_v8  ;;  %v371_v2 = vadd.f32 %v877_v47, %v367_v55 }
  0x18   : > { %v458_v17 = vadd.f32 %v457_v16, %v456_v15  ;;  %v380_v3 = vmul.f32 %v879_v48, %v1063_v6  ;;  %v385_v4 = vadd.f32 %v381_v57, %v372_v56  ;;  %v407_v9 = vmul.f32 %v880_v58, %v395_v59 }
  0x19   : > { %v393_v10 = vsel %vm388_vm4, %v390_v53, %v392_v49  ;;  %v383_v11 = vadd.f32 %v379_v61, %v370_v60  ;;  %v405_v12 = vmul.f32 %v880_v58, %v391_v62  ;;  %v386_v13 = vadd.f32 %v382_v0, %v373_v63 }
  0x1a   : > { %v459_v18 = vrot.slane %v458_v17, 2  ;;  %v384_v15 = vadd.f32 %v380_v3, %v371_v2  ;;  %v406_v16 = vmul.f32 %v880_v58, %v393_v10  ;;  %v634_v48 = vlaneseq }
  0x1c   : > { %v460_v19 = vadd.f32 %v459_v18, %v458_v17  ;;  %v411_v17 = vadd.f32 %v407_v9, %v385_v4  ;;  %v409_v18 = vadd.f32 %v405_v12, %v383_v11  ;;  %v635_v51 = vshrl.u32 %v634_v48, 7 }
  0x1e   : > { %v461_v20 = vrot.slane %v460_v19, 1  ;;  %v415_v54 = vmul.f32 0.5, %v411_v17  ;;  %v636_v56 = vsub.s32 0, %v635_v51  ;;  %v413_v57 = vmul.f32 0.5, %v409_v18 }
  0x20   : > { %v462_v21 = vadd.f32 %v461_v20, %v460_v19  ;;  %v410_v20 = vadd.f32 %v406_v16, %v384_v15 }
  0x22   : > { %v464_v22 = vmul.f32 0.03125, %v462_v21  ;;  %v419_v21 = vmul.f32 0.044715, %v411_v17  ;;  %v414_v61 = vmul.f32 0.5, %v410_v20 }
  0x24   : > { %917 = vmatmul.mubr.msk.f32.vlgmr.msra.gmra.mxu0 %vm449_vm1, %v464_v22  ;;  %v417_v22 = vmul.f32 0.044715, %v409_v18 }
  0x25   : > { %921 = vmatprep.mubr.msk.f32.mxu0 %vm981_vm0, %v980_v1  ;;  %920 = vmatpush3.msra.mxu0 %v552_v23  ;;  %v400_v1 = vsel %vm388_vm4, %v394_v50, 0.0 }
  0x26   : > { %v408_v14 = vmul.f32 %v880_v58, %v400_v1 }
  0x28   : > { %v412_v19 = vadd.f32 %v408_v14, %v386_v13 }
  0x2a   : > { %v420_v23 = vmul.f32 0.044715, %v412_v19  ;;  %v416_v59 = vmul.f32 0.5, %v412_v19 }
  0xe4   : > { %v539_v25 = vpop.f32.mrf.mxu0 }
  0xe5   : > { %v540_v26 = vadd.f32 %v539_v25, %v469_v24  ;;  %v418_v24 = vmul.f32 0.044715, %v410_v20  ;;  %v423_v25 = vmul.f32 %v419_v21, %v411_v17  ;;  %v704_v21 = vld [vmem:[%s1166_s7 + $0x18] sm:$0xff] }
  0xe6   : > { %v918_v27 = vpop.f32.mrf.mxu0  ;;  %924 = vmatprep.subr.mxu1 %v704_v21 }
  0xe7   : > { %v544_v28 = vmul.f32 0.044715, %v540_v26  ;;  %v543_v34 = vmul.f32 0.5, %v540_v26  ;;  %v421_v27 = vmul.f32 %v417_v22, %v409_v18  ;;  %v703_v22 = vld [vmem:[%s1166_s7 + $0x10] sm:$0xff]  ;;  %925 = vmatpush3.msra.mxu1 %v704_v21 }
  0xe8   : > { %926 = vmatprep.subr.mxu1 %v703_v22 }
  0xe9   : > { %v545_v29 = vmul.f32 %v544_v28, %v540_v26  ;;  %v424_v28 = vmul.f32 %v420_v23, %v412_v19  ;;  %v702_v23 = vld [vmem:[%s1166_s7 + $0x8] sm:$0xff]  ;;  %927 = vmatpush3.msra.mxu1 %v703_v22 }
  0xea   : > { %928 = vmatprep.subr.mxu1 %v702_v23 }
  0xeb   : > { %v546_v30 = vmul.f32 %v545_v29, %v540_v26  ;;  %929 = vmatpush3.msra.mxu1 %v702_v23 }
  0xed   : > { %v547_v31 = vadd.f32 %v546_v30, %v540_v26  ;;  %v553_v26 = vld [vmem:[%s1165_s6] sm:$0x1]  ;;  %v422_v30 = vmul.f32 %v418_v24, %v410_v20 }
  0xee   : > { %v701_v24 = vld [vmem:[%s1166_s7] sm:$0xff] }
  0xef   : > { %v548_v32 = vmul.f32 0.7978846, %v547_v31  ;;  %v426_v37 = vmul.f32 %v422_v30, %v410_v20  ;;  %930 = vmatprep.subr.mxu1 %v701_v24 }
  0xf0   : > { %931 = vmatpush3.msra.mxu1 %v701_v24 }
  0xf1   : > { %948 = vtanh.f32 %v548_v32  ;;  %v427_v32 = vmul.f32 %v423_v25, %v411_v17  ;;  %v430_v41 = vadd.f32 %v426_v37, %v410_v20 }
  0xf3   : > { %v431_v38 = vadd.f32 %v427_v32, %v411_v17  ;;  %v434_v45 = vmul.f32 0.7978846, %v430_v41 }
  0xf5   : > { %v435_v42 = vmul.f32 0.7978846, %v431_v38 }
  0xfe   : > { %v949_v33 = vpop.eup %948 }
  0xff   : > { %v550_v35 = vadd.f32 1.0, %v949_v33 }
 0x101   : > { %v551_v36 = vmul.f32 %v550_v35, %v543_v34  ;;  %v425_v34 = vmul.f32 %v421_v27, %v409_v18 }
 0x103   : > { %922 = vmatmul.mubr.msk.f32.vlgmr.msra.gmra.mxu0 %vm554_vm2, %v551_v36  ;;  %v428_v36 = vmul.f32 %v424_v28, %v412_v19  ;;  %v429_v39 = vadd.f32 %v425_v34, %v409_v18 }
 0x105   : > { %v432_v40 = vadd.f32 %v428_v36, %v412_v19  ;;  %v433_v43 = vmul.f32 0.7978846, %v429_v39 }
 0x107   : > { %v436_v44 = vmul.f32 0.7978846, %v432_v40 }
 0x1c3   : > { %v624_v29 = vpop.f32.mrf.mxu0 }
 0x1c4   : > { %v625_v31 = vadd.f32 %v624_v29, %v553_v26 }
 0x1c5   : > { %v923_v33 = vpop.f32.mrf.mxu0 }
 0x1c6   : > { %v883_v35 = vmul.f32 -1.442695, %v625_v31 }
 0x1c8   : > { %950 = vpow2.f32 %v883_v35 }
 0x1c9   : > { %952 = vtanh.f32 %v435_v42 }
 0x1ca   : > { %954 = vtanh.f32 %v433_v43 }
 0x1cb   : > { %956 = vtanh.f32 %v436_v44 }
 0x1cc   : > { %958 = vtanh.f32 %v434_v45 }
 0x1d5   : > { %v951_v46 = vpop.eup %950 }
 0x1d6   : > { %v631_v47 = vadd.f32 1.0, %v951_v46  ;;  %v953_v49 = vpop.eup %952 }
 0x1d7   : > { %v955_v50 = vpop.eup %954  ;;  %v443_v55 = vadd.f32 1.0, %v953_v49 }
 0x1d8   : > { %960 = vrcp.f32 %v631_v47  ;;  %v957_v52 = vpop.eup %956  ;;  %v441_v58 = vadd.f32 1.0, %v955_v50 }
 0x1d9   : > { %v959_v53 = vpop.eup %958  ;;  %v444_v60 = vadd.f32 1.0, %v957_v52  ;;  %v447_v0 = vmul.f32 %v443_v55, %v415_v54 }
 0x1da   : > { %v442_v62 = vadd.f32 1.0, %v959_v53  ;;  %v445_v2 = vmul.f32 %v441_v58, %v413_v57 }
 0x1db   : > { %v448_v3 = vmul.f32 %v444_v60, %v416_v59 }
 0x1dc   : > { %v446_v4 = vmul.f32 %v442_v62, %v414_v61 }
 0x1e5   : > { %v961_v63 = vpop.eup %960 }
 0x1e6   : > { %v637_v1 = vrot.slane %v961_v63, %v636_v56 }
 0x1e8   : > { %v640_v9 = vmul.f32 %v637_v1, %v1065_v7  ;;  %v638_v10 = vmul.f32 %v637_v1, %v1061_v5  ;;  %v641_v11 = vmul.f32 %v637_v1, %v1067_v8  ;;  %v639_v12 = vmul.f32 %v637_v1, %v1063_v6 }
 0x1ea   : > { %v644_v13 = vadd.f32 %v640_v9, %v447_v0  ;;  %v642_v14 = vadd.f32 %v638_v10, %v445_v2  ;;  %v645_v17 = vadd.f32 %v641_v11, %v448_v3  ;;  %v643_v18 = vadd.f32 %v639_v12, %v446_v4  ;;  %v884_v12 = vld [vmem:[%s1167_s8] ss:$0 sm:$0xff] }
 0x1ec   : > { %v652_v15 = vsel %vm449_vm1, %v644_v13, 0.0  ;;  %v646_v16 = vsel %vm449_vm1, %v642_v14, 0.0  ;;  %v655_v19 = vsel %vm449_vm1, %v645_v17, 0.0  ;;  %v649_v20 = vsel %vm449_vm1, %v643_v18, 0.0 }
 0x1ed   : > { %653 = vadd.xlane.f32.xlu1 %v652_v15  ;;  %647 = vadd.xlane.f32.xlu0 %v646_v16 }
 0x1f1   : > { %656 = vadd.xlane.f32.xlu1 %v655_v19  ;;  %650 = vadd.xlane.f32.xlu0 %v649_v20 }
 0x276   : > { %v654_v25 = vpop.xlane.xlu1 %653  ;;  %v648_v26 = vpop.xlane.xlu0 %647 }
 0x277   : > { %v660_v29 = vmul.f32 0.03125, %v654_v25  ;;  %v658_v30 = vmul.f32 0.03125, %v648_v26 }
 0x27a   : > { %v657_v27 = vpop.xlane.xlu1 %656  ;;  %v651_v28 = vpop.xlane.xlu0 %650 }
 0x27b   : > { %v661_v31 = vmul.f32 0.03125, %v657_v27  ;;  %v659_v32 = vmul.f32 0.03125, %v651_v28 }
 0x27d   : > { %v663_v33 = vmax.f32 %v660_v29, %v661_v31  ;;  %v662_v34 = vmax.f32 %v658_v30, %v659_v32 }
 0x27f   : > { %v664_v35 = vmax.f32 %v662_v34, %v663_v33 }
 0x281   : > { %v665_v36 = vrot.slane %v664_v35, 4 }
 0x283   : > { %v666_v37 = vmax.f32 %v664_v35, %v665_v36 }
 0x285   : > { %v667_v38 = vrot.slane %v666_v37, 2 }
 0x287   : > { %v668_v39 = vmax.f32 %v666_v37, %v667_v38 }
 0x289   : > { %v669_v40 = vrot.slane %v668_v39, 1 }
 0x28b   : > { %v670_v41 = vmax.f32 %v668_v39, %v669_v40 }
 0x28d   : > { %v671_v42 = vsub.f32 %v658_v30, %v670_v41  ;;  %v672_v43 = vsub.f32 %v659_v32, %v670_v41  ;;  %v673_v44 = vsub.f32 %v660_v29, %v670_v41  ;;  %v674_v45 = vsub.f32 %v661_v31, %v670_v41 }
 0x28f   : > { %v675_v46 = vmul.f32 1.442695, %v671_v42  ;;  %v677_v47 = vmul.f32 1.442695, %v672_v43  ;;  %v679_v48 = vmul.f32 1.442695, %v673_v44 }
 0x290   : > { %v681_v49 = vmul.f32 1.442695, %v674_v45 }
 0x291   : > { %962 = vpow2.f32 %v675_v46 }
 0x292   : > { %964 = vpow2.f32 %v677_v47 }
 0x293   : > { %966 = vpow2.f32 %v679_v48 }
 0x294   : > { %968 = vpow2.f32 %v681_v49 }
 0x29e   : > { %v963_v50 = vpop.eup %962 }
 0x29f   : > { %v965_v51 = vpop.eup %964 }
 0x2a0   : > { %v683_v52 = vadd.f32 %v965_v51, %v963_v50  ;;  %v967_v53 = vpop.eup %966 }
 0x2a1   : > { %v969_v55 = vpop.eup %968 }
 0x2a2   : > { %v684_v54 = vadd.f32 %v967_v53, %v683_v52 }
 0x2a4   : > { %v685_v56 = vadd.f32 %v969_v55, %v684_v54 }
 0x2a6   : > { %v686_v57 = vrot.slane %v685_v56, 4 }
 0x2a8   : > { %v687_v58 = vadd.f32 %v686_v57, %v685_v56 }
 0x2aa   : > { %v688_v59 = vrot.slane %v687_v58, 2 }
 0x2ac   : > { %v689_v60 = vadd.f32 %v688_v59, %v687_v58 }
 0x2ae   : > { %v690_v61 = vrot.slane %v689_v60, 1 }
 0x2b0   : > { %v691_v62 = vadd.f32 %v690_v61, %v689_v60 }
 0x2b2   : > { %970 = vrcp.f32 %v691_v62 }
 0x2bf   : > { %v971_v63 = vpop.eup %970 }
 0x2c0   : > { %v693_v0 = vmul.f32 %v971_v63, %v963_v50  ;;  %v694_v1 = vmul.f32 %v971_v63, %v965_v51  ;;  %v695_v2 = vmul.f32 %v971_v63, %v967_v53  ;;  %v696_v9 = vmul.f32 %v971_v63, %v969_v55 }
 0x2c2   : > { %v697_v3 = vmul.f32 %v693_v0, %v1061_v5  ;;  %v698_v4 = vmul.f32 %v694_v1, %v1063_v6  ;;  %v699_v10 = vmul.f32 %v695_v2, %v1065_v7  ;;  %v700_v11 = vmul.f32 %v696_v9, %v1067_v8 }
 0x2c4   : > { %932 = vmatprep.mubr.msk.f32.mxu1 %vm449_vm1, %v697_v3 }
 0x2c5   : > { %933 = vmatmul.mubr.msk.f32.vlgmr.msra.gmra.mxu1 %vm449_vm1, %v698_v4 }
 0x2c6   : > { %935 = vmatprep.mubr.msk.f32.mxu1 %vm449_vm1, %v699_v10 }
 0x2c9   : > { %936 = vmatmul.mubr.msk.f32.gmra.mxu1 %vm449_vm1, %v700_v11 }
 0x385   : > { %v934_v5 = vpop.f32.mrf.mxu1 }
 0x386   : > { %v796_v6 = vadd.f32 %v934_v5, %v884_v12 }
 0x387   : > { %v790_v7 = vpop.f32.mrf.mxu1 }
 0x388   : > { %810 = vst.msk [vmem:[%s332_s12 + $0x8] sm:$0xff] %vm449_vm1, %v796_v6  ;;  %v791_v13 = vadd.f32 %v884_v12, %v790_v7 }
 0x389   : > { %v937_v14 = vpop.f32.mrf.mxu1 }
 0x38a   : > { %809 = vst.msk [vmem:[%s332_s12] sm:$0xff] %vm449_vm1, %v791_v13  ;;  %v806_v8 = vadd.f32 %v937_v14, %v884_v12 }
 0x38b   : > { %v800_v15 = vpop.f32.mrf.mxu1 }
 0x38c   : > { %812 = vst.msk [vmem:[%s332_s12 + $0x18] sm:$0xff] %vm449_vm1, %v806_v8  ;;  %v801_v16 = vadd.f32 %v884_v12, %v800_v15 }
 0x38e   : > { %811 = vst.msk [vmem:[%s332_s12 + $0x10] sm:$0xff] %vm449_vm1, %v801_v16 }
 0x38f PF: > { %s19_s30 = sadd.s32 1, %s978_s30  }
 0x390   : > { %p16_p4 = scmp.ge.s32.totalorder %s19_s30, 4  }
 0x392   :  { %18 = sbr.rel (!%p16_p4) target bundleno = 1 (0x1), region = 86 }

</bundles_post_ra>
